<compile_context>
chip_gen: v7x
topology: tpu7x:2x2x1
jax: 0.10.0
libtpu: 0.0.40
codegen_flags: <defaults>
</compile_context>

<pallas_src>
import functools

import jax
import jax.numpy as jnp
from jax import lax
from jax.experimental import pallas as pl
from jax.experimental.pallas import tpu as pltpu


def _round_up(x, m):
    return (x + m - 1) // m * m


# ----------------------------------------------------------------------------
# Pallas kernel: all three heads fused, 3x3 taps built in-kernel
# ----------------------------------------------------------------------------
def _fused_heads_kernel(cur_ref, nxt_ref, w1_ref, b1_ref, w2_ref, b2_ref,
                        out_ref, *, tap_offsets, n_sigmoid):
    # cur_ref : (tm, C)    bf16  padded-pixel rows [i*tm, (i+1)*tm)
    # nxt_ref : (tm, C)    bf16  rows [(i+1)*tm, (i+2)*tm)   (halo for the taps)
    # w1_ref  : (9, C, N1) bf16  fused 3x3 weights, tap-major (t = dy*3 + dx)
    # b1_ref  : (1, N1)    f32
    # w2_ref  : (N1, OUTW) bf16  block-diagonal fused 1x1 weights (128-lane padded)
    # b2_ref  : (1, OUTW)  f32
    # out_ref : (tm, OUTW) f32   lane-dense output slab
    tm = out_ref.shape[0]
    n1 = b1_ref.shape[1]

    # Halo window (2*tm rows, f32 in VMEM): output row j reads rows j + off.
    window = jnp.concatenate(
        [cur_ref[...].astype(jnp.float32), nxt_ref[...].astype(jnp.float32)],
        axis=0)

    # conv1 (3x3) as 9 accumulating MXU dots over row-shifted slices (bf16 in,
    # f32 accumulate).
    h = jnp.zeros((tm, n1), jnp.float32)
    for t, s in enumerate(tap_offsets):            # statically unrolled (9 taps)
        h = h + jnp.dot(window[s:s + tm, :].astype(jnp.bfloat16), w1_ref[t],
                        preferred_element_type=jnp.float32)
    h = jnp.maximum(h + b1_ref[...], 0.0)          # conv1 bias + ReLU (f32, VPU)

    # conv2 (1x1), block-diagonal across the three heads, 128-lane output.
    y = jnp.dot(h.astype(w2_ref.dtype), w2_ref[...],
                preferred_element_type=jnp.float32) + b2_ref[...]

    # sigmoid only on the cls lanes (first n_sigmoid columns).
    col = lax.broadcasted_iota(jnp.int32, y.shape, dimension=1)
    y = jnp.where(col < n_sigmoid, jax.nn.sigmoid(y), y)
    out_ref[...] = y.astype(out_ref.dtype)


def _fused_heads_pallas(xg, w1, b1, w2, b2, *, tm, num_tiles, tap_offsets,
                        n_sigmoid):
    L, C = xg.shape
    N1 = w1.shape[2]
    OUTW = w2.shape[1]
    m_total = num_tiles * tm

    kern = functools.partial(_fused_heads_kernel, tap_offsets=tap_offsets,
                             n_sigmoid=n_sigmoid)
    cost = pl.CostEstimate(
        flops=2 * m_total * N1 * (9 * C + OUTW),
        transcendentals=m_total * OUTW,
        bytes_accessed=(2 * L * C * 2                       # pixel stream (x2, bf16)
                        + 9 * C * N1 * 2 + N1 * OUTW * 2    # weights (bf16)
                        + (N1 + OUTW) * 4                   # biases (f32)
                        + m_total * OUTW * 4))              # output (f32)

    return pl.pallas_call(
        kern,
        out_shape=jax.ShapeDtypeStruct((m_total, OUTW), jnp.float32),
        grid_spec=pltpu.PrefetchScalarGridSpec(
            num_scalar_prefetch=0,
            grid=(num_tiles,),
            in_specs=[
                pl.BlockSpec((tm, C), lambda i: (i, 0)),        # current rows
                pl.BlockSpec((tm, C), lambda i: (i + 1, 0)),    # next-block halo
                # constant index_maps -> DMA'd once, resident in VMEM thereafter
                pl.BlockSpec((9, C, N1), lambda i: (0, 0, 0)),
                pl.BlockSpec((1, N1), lambda i: (0, 0)),
                pl.BlockSpec((N1, OUTW), lambda i: (0, 0)),
                pl.BlockSpec((1, OUTW), lambda i: (0, 0)),
            ],
            out_specs=pl.BlockSpec((tm, OUTW), lambda i: (i, 0)),
        ),
        compiler_params=pltpu.CompilerParams(
            dimension_semantics=("parallel",)),
        cost_estimate=cost,
    )(xg, xg, w1, b1, w2, b2)


# ----------------------------------------------------------------------------
# Parameter init (deterministic, synthetic — mirrors Head.__init__ shapes)
# ----------------------------------------------------------------------------
def _init_head_params(key, in_ch, out_ch, bias_fill=False, bias_value=0.0):
    k1, k2, k3 = jax.random.split(key, 3)
    # conv1: 3x3, in_ch -> in_ch, flattened (9*in_ch, in_ch), rows (dy, dx, cin)
    w1 = jax.random.normal(k1, (9 * in_ch, in_ch), jnp.float32) * 0.1
    b1 = jax.random.normal(k2, (1, in_ch), jnp.float32) * 0.1
    # conv2: 1x1, in_ch -> out_ch
    w2 = jax.random.normal(k3, (in_ch, out_ch), jnp.float32) * 0.1
    if bias_fill:
        b2 = jnp.full((1, out_ch), bias_value, jnp.float32)
    else:
        b2 = jnp.zeros((1, out_ch), jnp.float32)
    return dict(w1=w1, b1=b1, w2=w2, b2=b2)


def init_sharenet_params(key, channels, num_classes):
    channels = channels[::-1]
    in_ch = channels[-1]
    kc, kw, kr = jax.random.split(key, 3)
    return {
        "cls": _init_head_params(kc, in_ch, num_classes, bias_fill=True,
                                 bias_value=-2.19),
        "wh": _init_head_params(kw, in_ch, 2),
        "reg": _init_head_params(kr, in_ch, 2),
    }


_HEAD_ORDER = ("cls", "wh", "reg")


# ----------------------------------------------------------------------------
# Forward pass (NCHW in, NCHW out — matching the PyTorch module)
# ----------------------------------------------------------------------------
def sharenet_det_forward(params, x_nchw, *, tm=512):
    B, C, H, W = x_nchw.shape
    n_cls = params["cls"]["w2"].shape[1]
    out_sizes = [params[h]["w2"].shape[1] for h in _HEAD_ORDER]   # [n_cls, 2, 2]
    out_total = sum(out_sizes)

    # ---- fuse the three heads' parameters --------------------------------
    w1_all = jnp.concatenate(
        [params[h]["w1"].reshape(9, C, C) for h in _HEAD_ORDER], axis=-1)  # (9,C,3C)
    b1_all = jnp.concatenate([params[h]["b1"] for h in _HEAD_ORDER], axis=-1)
    n1 = 3 * C
    outw = max(128, _round_up(out_total, 128))       # lane-dense output width
    w2_all = jnp.zeros((n1, outw), jnp.float32)
    b2_all = jnp.zeros((1, outw), jnp.float32)
    col = 0
    for k, h in enumerate(_HEAD_ORDER):
        oc = out_sizes[k]
        w2_all = w2_all.at[k * C:(k + 1) * C, col:col + oc].set(params[h]["w2"])
        b2_all = b2_all.at[:, col:col + oc].set(params[h]["b2"])
        col += oc

    # ---- padded / flattened bf16 pixel stream (3x3 taps built in-kernel) --
    x_nhwc = jnp.transpose(x_nchw, (0, 2, 3, 1))
    xp = jnp.pad(x_nhwc, ((0, 0), (1, 1), (1, 1), (0, 0)))   # (B, H+2, W+2, C)
    Hp, Wp = H + 2, W + 2
    mp = B * Hp * Wp
    xf = xp.reshape(mp, C).astype(jnp.bfloat16)

    halo = Wp + 1                                   # max |tap offset|
    tm = max(tm, _round_up(2 * halo, 8))            # kernel requires 2*halo <= tm
    assert 2 * halo <= tm
    num_tiles = -(-mp // tm)                        # ceil; tail padded, sliced later
    L = (num_tiles + 1) * tm                        # +1 block for the "next" stream
    xg = jnp.pad(xf, ((halo, L - mp - halo), (0, 0)))

    # tap t = dy*3 + dx reads window row j + halo + (dy-1)*Wp + (dx-1)
    tap_offsets = tuple(halo + (dy - 1) * Wp + (dx - 1)
                        for dy in range(3) for dx in range(3))

    out_full = _fused_heads_pallas(
        xg, w1_all.astype(jnp.bfloat16), b1_all,
        w2_all.astype(jnp.bfloat16), b2_all,
        tm=tm, num_tiles=num_tiles, tap_offsets=tap_offsets, n_sigmoid=n_cls)

    y = out_full[:mp].reshape(B, Hp, Wp, outw)[:, 1:H + 1, 1:W + 1, :out_total]
    y = jnp.transpose(y, (0, 3, 1, 2))              # back to NCHW
    return {
        "cls": y[:, :n_cls],
        "wh": y[:, n_cls:n_cls + 2],
        "reg": y[:, n_cls + 2:n_cls + 4],
    }


# ----------------------------------------------------------------------------
# Pure-JAX reference (lax.conv, same bf16 quantization) for the cross-check
# ----------------------------------------------------------------------------
def _ref_forward(params, x_nchw):
    B, C, H, W = x_nchw.shape
    xb = jnp.transpose(x_nchw, (0, 2, 3, 1)).astype(jnp.bfloat16)   # NHWC
    dn = ("NHWC", "HWIO", "NHWC")

    def head(p, apply_sigmoid):
        w1 = p["w1"].reshape(3, 3, C, C).astype(jnp.bfloat16)
        h = lax.conv_general_dilated(xb, w1, (1, 1), "SAME",
                                     dimension_numbers=dn,
                                     preferred_element_type=jnp.float32)
        h = jnp.maximum(h + p["b1"].reshape(1, 1, 1, C), 0.0)
        oc = p["w2"].shape[1]
        w2 = p["w2"].reshape(1, 1, C, oc).astype(jnp.bfloat16)
        y = lax.conv_general_dilated(h.astype(jnp.bfloat16), w2, (1, 1), "SAME",
                                     dimension_numbers=dn,
                                     preferred_element_type=jnp.float32)
        y = y + p["b2"].reshape(1, 1, 1, oc)
        if apply_sigmoid:
            y = jax.nn.sigmoid(y)
        return jnp.transpose(y, (0, 3, 1, 2))

    return {"cls": head(params["cls"], True),
            "wh": head(params["wh"], False),
            "reg": head(params["reg"], False)}


if __name__ == "__main__":
    key = jax.random.PRNGKey(0)
    kx, kp = jax.random.split(key)

    B, C, H, W = 2, 4, 16, 16
    num_classes = 3
    channels = [C, 16, 32, 64]      # reversed[-1] == channels[0] == input C

    x = jax.random.normal(kx, (B, C, H, W), jnp.float32)
    params = init_sharenet_params(kp, channels, num_classes)

    out = jax.jit(sharenet_det_forward)(params, x)
    jax.block_until_ready(out)

    # shapes match the PyTorch module
    assert out["cls"].shape == (B, num_classes, H, W)
    assert out["wh"].shape == (B, 2, H, W)
    assert out["reg"].shape == (B, 2, H, W)

    # numerical cross-check vs. lax.conv reference (same bf16 quantization)
    ref = _ref_forward(params, x)
    for name in ("cls", "wh", "reg"):
        assert jnp.allclose(out[name], ref[name], atol=1e-2, rtol=1e-2), name

    print("KERNEL_OK")
</pallas_src>

<mosaic_0001>
module attributes {stable_mosaic.version = 11 : i64} {
  func.func @_fused_heads_kernel(%arg0: i32, %arg1: memref<512x4xbf16, #tpu.memory_space<vmem>>, %arg2: memref<512x4xbf16, #tpu.memory_space<vmem>>, %arg3: memref<9x4x12xbf16, #tpu.memory_space<vmem>>, %arg4: memref<1x12xf32, #tpu.memory_space<vmem>>, %arg5: memref<12x128xbf16, #tpu.memory_space<vmem>>, %arg6: memref<1x128xf32, #tpu.memory_space<vmem>>, %arg7: memref<512x128xf32, #tpu.memory_space<vmem>>) attributes {dimension_semantics = [#tpu.dimension_semantics<parallel>], iteration_bounds = array<i64: 2>, scalar_prefetch = 0 : i64, scratch_operands = 0 : i64, tpu.core_type = #tpu.core_type<tc>, window_params = [{transform_indices = @transform_0, window_bounds = array<i64: 512, 4>}, {transform_indices = @transform_1, window_bounds = array<i64: 512, 4>}, {pipeline_mode = #tpu.pipeline_mode<synchronous>, transform_indices = @transform_2, window_bounds = array<i64: 9, 4, 12>}, {pipeline_mode = #tpu.pipeline_mode<synchronous>, transform_indices = @transform_3, window_bounds = array<i64: 1, 12>}, {pipeline_mode = #tpu.pipeline_mode<synchronous>, transform_indices = @transform_4, window_bounds = array<i64: 12, 128>}, {pipeline_mode = #tpu.pipeline_mode<synchronous>, transform_indices = @transform_5, window_bounds = array<i64: 1, 128>}, {transform_indices = @transform_6, window_bounds = array<i64: 512, 128>}]} {
    %c0 = arith.constant 0 : index
    %c0_0 = arith.constant 0 : index
    %0 = vector.load %arg1[%c0, %c0_0] : memref<512x4xbf16, #tpu.memory_space<vmem>>, vector<512x4xbf16>
    %1 = arith.extf %0 : vector<512x4xbf16> to vector<512x4xf32>
    %c0_1 = arith.constant 0 : index
    %c0_2 = arith.constant 0 : index
    %2 = vector.load %arg2[%c0_1, %c0_2] : memref<512x4xbf16, #tpu.memory_space<vmem>>, vector<512x4xbf16>
    %3 = arith.extf %2 : vector<512x4xbf16> to vector<512x4xf32>
    %4 = tpu.concatenate %1, %3 in 0 : vector<512x4xf32>, vector<512x4xf32> -> vector<1024x4xf32>
    %cst = arith.constant 0.000000e+00 : f32
    %5 = vector.broadcast %cst : f32 to vector<512x12xf32>
    %6 = vector.extract_strided_slice %4 {offsets = [0, 0], sizes = [512, 4], strides = [1, 1]} : vector<1024x4xf32> to vector<512x4xf32>
    %7 = arith.truncf %6 : vector<512x4xf32> to vector<512x4xbf16>
    %c0_3 = arith.constant 0 : index
    %c0_4 = arith.constant 0 : index
    %c0_5 = arith.constant 0 : index
    %8 = vector.load %arg3[%c0_3, %c0_4, %c0_5] : memref<9x4x12xbf16, #tpu.memory_space<vmem>>, vector<1x4x12xbf16>
    %9 = vector.shape_cast %8 : vector<1x4x12xbf16> to vector<4x12xbf16>
    %cst_6 = arith.constant dense<0.000000e+00> : vector<512x12xf32>
    %10 = tpu.matmul %7, %9, %cst_6 {dimension_numbers = #tpu.dot_dimension_numbers<[1], [0], [0], [1], [0, 0, 1, 1], [], []>} : vector<512x4xbf16>, vector<4x12xbf16>, vector<512x12xf32> -> vector<512x12xf32>
    %11 = arith.addf %5, %10 : vector<512x12xf32>
    %12 = vector.extract_strided_slice %4 {offsets = [1, 0], sizes = [512, 4], strides = [1, 1]} : vector<1024x4xf32> to vector<512x4xf32>
    %13 = arith.truncf %12 : vector<512x4xf32> to vector<512x4xbf16>
    %c1 = arith.constant 1 : index
    %c0_7 = arith.constant 0 : index
    %c0_8 = arith.constant 0 : index
    %14 = vector.load %arg3[%c1, %c0_7, %c0_8] : memref<9x4x12xbf16, #tpu.memory_space<vmem>>, vector<1x4x12xbf16>
    %15 = vector.shape_cast %14 : vector<1x4x12xbf16> to vector<4x12xbf16>
    %cst_9 = arith.constant dense<0.000000e+00> : vector<512x12xf32>
    %16 = tpu.matmul %13, %15, %cst_9 {dimension_numbers = #tpu.dot_dimension_numbers<[1], [0], [0], [1], [0, 0, 1, 1], [], []>} : vector<512x4xbf16>, vector<4x12xbf16>, vector<512x12xf32> -> vector<512x12xf32>
    %17 = arith.addf %11, %16 : vector<512x12xf32>
    %18 = vector.extract_strided_slice %4 {offsets = [2, 0], sizes = [512, 4], strides = [1, 1]} : vector<1024x4xf32> to vector<512x4xf32>
    %19 = arith.truncf %18 : vector<512x4xf32> to vector<512x4xbf16>
    %c2 = arith.constant 2 : index
    %c0_10 = arith.constant 0 : index
    %c0_11 = arith.constant 0 : index
    %20 = vector.load %arg3[%c2, %c0_10, %c0_11] : memref<9x4x12xbf16, #tpu.memory_space<vmem>>, vector<1x4x12xbf16>
    %21 = vector.shape_cast %20 : vector<1x4x12xbf16> to vector<4x12xbf16>
    %cst_12 = arith.constant dense<0.000000e+00> : vector<512x12xf32>
    %22 = tpu.matmul %19, %21, %cst_12 {dimension_numbers = #tpu.dot_dimension_numbers<[1], [0], [0], [1], [0, 0, 1, 1], [], []>} : vector<512x4xbf16>, vector<4x12xbf16>, vector<512x12xf32> -> vector<512x12xf32>
    %23 = arith.addf %17, %22 : vector<512x12xf32>
    %24 = vector.extract_strided_slice %4 {offsets = [18, 0], sizes = [512, 4], strides = [1, 1]} : vector<1024x4xf32> to vector<512x4xf32>
    %25 = arith.truncf %24 : vector<512x4xf32> to vector<512x4xbf16>
    %c3 = arith.constant 3 : index
    %c0_13 = arith.constant 0 : index
    %c0_14 = arith.constant 0 : index
    %26 = vector.load %arg3[%c3, %c0_13, %c0_14] : memref<9x4x12xbf16, #tpu.memory_space<vmem>>, vector<1x4x12xbf16>
    %27 = vector.shape_cast %26 : vector<1x4x12xbf16> to vector<4x12xbf16>
    %cst_15 = arith.constant dense<0.000000e+00> : vector<512x12xf32>
    %28 = tpu.matmul %25, %27, %cst_15 {dimension_numbers = #tpu.dot_dimension_numbers<[1], [0], [0], [1], [0, 0, 1, 1], [], []>} : vector<512x4xbf16>, vector<4x12xbf16>, vector<512x12xf32> -> vector<512x12xf32>
    %29 = arith.addf %23, %28 : vector<512x12xf32>
    %30 = vector.extract_strided_slice %4 {offsets = [19, 0], sizes = [512, 4], strides = [1, 1]} : vector<1024x4xf32> to vector<512x4xf32>
    %31 = arith.truncf %30 : vector<512x4xf32> to vector<512x4xbf16>
    %c4 = arith.constant 4 : index
    %c0_16 = arith.constant 0 : index
    %c0_17 = arith.constant 0 : index
    %32 = vector.load %arg3[%c4, %c0_16, %c0_17] : memref<9x4x12xbf16, #tpu.memory_space<vmem>>, vector<1x4x12xbf16>
    %33 = vector.shape_cast %32 : vector<1x4x12xbf16> to vector<4x12xbf16>
    %cst_18 = arith.constant dense<0.000000e+00> : vector<512x12xf32>
    %34 = tpu.matmul %31, %33, %cst_18 {dimension_numbers = #tpu.dot_dimension_numbers<[1], [0], [0], [1], [0, 0, 1, 1], [], []>} : vector<512x4xbf16>, vector<4x12xbf16>, vector<512x12xf32> -> vector<512x12xf32>
    %35 = arith.addf %29, %34 : vector<512x12xf32>
    %36 = vector.extract_strided_slice %4 {offsets = [20, 0], sizes = [512, 4], strides = [1, 1]} : vector<1024x4xf32> to vector<512x4xf32>
    %37 = arith.truncf %36 : vector<512x4xf32> to vector<512x4xbf16>
    %c5 = arith.constant 5 : index
    %c0_19 = arith.constant 0 : index
    %c0_20 = arith.constant 0 : index
    %38 = vector.load %arg3[%c5, %c0_19, %c0_20] : memref<9x4x12xbf16, #tpu.memory_space<vmem>>, vector<1x4x12xbf16>
    %39 = vector.shape_cast %38 : vector<1x4x12xbf16> to vector<4x12xbf16>
    %cst_21 = arith.constant dense<0.000000e+00> : vector<512x12xf32>
    %40 = tpu.matmul %37, %39, %cst_21 {dimension_numbers = #tpu.dot_dimension_numbers<[1], [0], [0], [1], [0, 0, 1, 1], [], []>} : vector<512x4xbf16>, vector<4x12xbf16>, vector<512x12xf32> -> vector<512x12xf32>
    %41 = arith.addf %35, %40 : vector<512x12xf32>
    %42 = vector.extract_strided_slice %4 {offsets = [36, 0], sizes = [512, 4], strides = [1, 1]} : vector<1024x4xf32> to vector<512x4xf32>
    %43 = arith.truncf %42 : vector<512x4xf32> to vector<512x4xbf16>
    %c6 = arith.constant 6 : index
    %c0_22 = arith.constant 0 : index
    %c0_23 = arith.constant 0 : index
    %44 = vector.load %arg3[%c6, %c0_22, %c0_23] : memref<9x4x12xbf16, #tpu.memory_space<vmem>>, vector<1x4x12xbf16>
    %45 = vector.shape_cast %44 : vector<1x4x12xbf16> to vector<4x12xbf16>
    %cst_24 = arith.constant dense<0.000000e+00> : vector<512x12xf32>
    %46 = tpu.matmul %43, %45, %cst_24 {dimension_numbers = #tpu.dot_dimension_numbers<[1], [0], [0], [1], [0, 0, 1, 1], [], []>} : vector<512x4xbf16>, vector<4x12xbf16>, vector<512x12xf32> -> vector<512x12xf32>
    %47 = arith.addf %41, %46 : vector<512x12xf32>
    %48 = vector.extract_strided_slice %4 {offsets = [37, 0], sizes = [512, 4], strides = [1, 1]} : vector<1024x4xf32> to vector<512x4xf32>
    %49 = arith.truncf %48 : vector<512x4xf32> to vector<512x4xbf16>
    %c7 = arith.constant 7 : index
    %c0_25 = arith.constant 0 : index
    %c0_26 = arith.constant 0 : index
    %50 = vector.load %arg3[%c7, %c0_25, %c0_26] : memref<9x4x12xbf16, #tpu.memory_space<vmem>>, vector<1x4x12xbf16>
    %51 = vector.shape_cast %50 : vector<1x4x12xbf16> to vector<4x12xbf16>
    %cst_27 = arith.constant dense<0.000000e+00> : vector<512x12xf32>
    %52 = tpu.matmul %49, %51, %cst_27 {dimension_numbers = #tpu.dot_dimension_numbers<[1], [0], [0], [1], [0, 0, 1, 1], [], []>} : vector<512x4xbf16>, vector<4x12xbf16>, vector<512x12xf32> -> vector<512x12xf32>
    %53 = arith.addf %47, %52 : vector<512x12xf32>
    %54 = vector.extract_strided_slice %4 {offsets = [38, 0], sizes = [512, 4], strides = [1, 1]} : vector<1024x4xf32> to vector<512x4xf32>
    %55 = arith.truncf %54 : vector<512x4xf32> to vector<512x4xbf16>
    %c8 = arith.constant 8 : index
    %c0_28 = arith.constant 0 : index
    %c0_29 = arith.constant 0 : index
    %56 = vector.load %arg3[%c8, %c0_28, %c0_29] : memref<9x4x12xbf16, #tpu.memory_space<vmem>>, vector<1x4x12xbf16>
    %57 = vector.shape_cast %56 : vector<1x4x12xbf16> to vector<4x12xbf16>
    %cst_30 = arith.constant dense<0.000000e+00> : vector<512x12xf32>
    %58 = tpu.matmul %55, %57, %cst_30 {dimension_numbers = #tpu.dot_dimension_numbers<[1], [0], [0], [1], [0, 0, 1, 1], [], []>} : vector<512x4xbf16>, vector<4x12xbf16>, vector<512x12xf32> -> vector<512x12xf32>
    %59 = arith.addf %53, %58 : vector<512x12xf32>
    %c0_31 = arith.constant 0 : index
    %c0_32 = arith.constant 0 : index
    %60 = vector.load %arg4[%c0_31, %c0_32] : memref<1x12xf32, #tpu.memory_space<vmem>>, vector<1x12xf32>
    %61 = vector.broadcast %60 : vector<1x12xf32> to vector<512x12xf32>
    %62 = arith.addf %59, %61 : vector<512x12xf32>
    %cst_33 = arith.constant 0.000000e+00 : f32
    %63 = vector.broadcast %cst_33 : f32 to vector<512x12xf32>
    %64 = arith.maximumf %62, %63 : vector<512x12xf32>
    %65 = arith.truncf %64 : vector<512x12xf32> to vector<512x12xbf16>
    %c0_34 = arith.constant 0 : index
    %c0_35 = arith.constant 0 : index
    %66 = vector.load %arg5[%c0_34, %c0_35] : memref<12x128xbf16, #tpu.memory_space<vmem>>, vector<12x128xbf16>
    %cst_36 = arith.constant dense<0.000000e+00> : vector<512x128xf32>
    %67 = tpu.matmul %65, %66, %cst_36 {dimension_numbers = #tpu.dot_dimension_numbers<[1], [0], [0], [1], [0, 0, 1, 1], [], []>} : vector<512x12xbf16>, vector<12x128xbf16>, vector<512x128xf32> -> vector<512x128xf32>
    %c0_37 = arith.constant 0 : index
    %c0_38 = arith.constant 0 : index
    %68 = vector.load %arg6[%c0_37, %c0_38] : memref<1x128xf32, #tpu.memory_space<vmem>>, vector<1x128xf32>
    %69 = vector.broadcast %68 : vector<1x128xf32> to vector<512x128xf32>
    %70 = arith.addf %67, %69 : vector<512x128xf32>
    %71 = tpu.iota {dimensions = array<i32: 1>} : vector<512x128xi32>
    %c3_i32 = arith.constant 3 : i32
    %72 = vector.broadcast %c3_i32 : i32 to vector<512x128xi32>
    %73 = arith.cmpi slt, %71, %72 : vector<512x128xi32>
    %74 = arith.negf %70 : vector<512x128xf32>
    %75 = math.exp %74 : vector<512x128xf32>
    %cst_39 = arith.constant 1.000000e+00 : f32
    %76 = vector.broadcast %cst_39 : f32 to vector<512x128xf32>
    %77 = arith.addf %76, %75 : vector<512x128xf32>
    %78 = arith.divf %76, %77 : vector<512x128xf32>
    %79 = arith.select %73, %78, %70 : vector<512x128xi1>, vector<512x128xf32>
    %c0_40 = arith.constant 0 : index
    %c0_41 = arith.constant 0 : index
    %80 = vector.load %arg7[%c0_40, %c0_41] : memref<512x128xf32, #tpu.memory_space<vmem>>, vector<512x128xf32>
    tpu.vector_store %arg7[%c0_40, %c0_41], %79 {strides = array<i32>} : memref<512x128xf32, #tpu.memory_space<vmem>>, vector<512x128xf32>,
    return
  }
  func.func @transform_0(%arg0: i32) -> (i32, i32) {
    %c0_i32 = arith.constant 0 : i32
    %c0_i32_0 = arith.constant 0 : i32
    return %arg0, %c0_i32 : i32, i32
  }
  func.func @transform_1(%arg0: i32) -> (i32, i32) {
    %c1_i32 = arith.constant 1 : i32
    %0 = arith.addi %arg0, %c1_i32 : i32
    %c0_i32 = arith.constant 0 : i32
    %c0_i32_0 = arith.constant 0 : i32
    return %0, %c0_i32 : i32, i32
  }
  func.func @transform_2(%arg0: i32) -> (i32, i32, i32) {
    %c0_i32 = arith.constant 0 : i32
    %c0_i32_0 = arith.constant 0 : i32
    %c0_i32_1 = arith.constant 0 : i32
    %c0_i32_2 = arith.constant 0 : i32
    return %c0_i32, %c0_i32_0, %c0_i32_1 : i32, i32, i32
  }
  func.func @transform_3(%arg0: i32) -> (i32, i32) {
    %c0_i32 = arith.constant 0 : i32
    %c0_i32_0 = arith.constant 0 : i32
    %c0_i32_1 = arith.constant 0 : i32
    return %c0_i32, %c0_i32_0 : i32, i32
  }
  func.func @transform_4(%arg0: i32) -> (i32, i32) {
    %c0_i32 = arith.constant 0 : i32
    %c0_i32_0 = arith.constant 0 : i32
    %c0_i32_1 = arith.constant 0 : i32
    return %c0_i32, %c0_i32_0 : i32, i32
  }
  func.func @transform_5(%arg0: i32) -> (i32, i32) {
    %c0_i32 = arith.constant 0 : i32
    %c0_i32_0 = arith.constant 0 : i32
    %c0_i32_1 = arith.constant 0 : i32
    return %c0_i32, %c0_i32_0 : i32, i32
  }
  func.func @transform_6(%arg0: i32) -> (i32, i32) {
    %c0_i32 = arith.constant 0 : i32
    %c0_i32_0 = arith.constant 0 : i32
    return %arg0, %c0_i32 : i32, i32
  }
}

</mosaic_0001>

<bundles_post_ra>
// kernel: sharenet_det_forward.1
= control target key start
LH: loop header
LB: loop body
LE: loop exit
PB: predicated region body
PF: predicated region fallthrough
CT: control target
= control target key end

     0   :  { %s8486_s21 = smov 0   ;;  %s10802_s0 = inlined_call_operand.vmem [shape: bf16[1536,4], index: 0, kind: input, shape index: {}, may-alias: {0,1}]   ;;  %s10803_s1 = inlined_call_operand.vmem [shape: bf16[1536,4], index: 1, kind: input, shape index: {}, may-alias: {0,1}]   ;;  %s10804_s2 = inlined_call_operand.vmem [shape: bf16[9,4,12], index: 2, kind: input, shape index: {}]   ;;  %s10805_s3 = inlined_call_operand.vmem [shape: f32[1,12], index: 3, kind: input, shape index: {}]   ;;  %s10806_s4 = inlined_call_operand.vmem [shape: bf16[12,128], index: 4, kind: input, shape index: {}]   ;;  %s10807_s5 = inlined_call_operand.vmem [shape: f32[1,128], index: 5, kind: input, shape index: {}]   ;;  %s10808_s6 = inlined_call_operand.vmem [shape: f32[1024,128], index: 6, kind: output, shape index: {}]  }
   0x1 LB: > { %s6149_s22 = sadd.s32 4294967295, %s8449_s21   ;;  %p6153_p0 = scmp.ge.s32.totalorder %s8449_s21, 1  ;;  %s8449_s21 = sphi %s8486_s21, %s16_s21  }
   0x2   : > { %p228_p1 = scmp.lt.s32.totalorder %s8449_s21, 3 }
   0x4   : > { %p229_p2 = pnand %p6153_p0, %p228_p1 }
   0x6   : > { %232 = sbr.rel (%p229_p2) target bundleno = 1138 (0x472), region = 44 }
   0xd   : > { %vm817_vm0 = vcmask 1041408   ;;  %v6326_v0 = vld [vmem:[%s10804_s2 + $0x8] sm:$0x3]  ;;  %v6193_v1 = vld [vmem:[%s10804_s2 + $0x2] sm:$0x3]  ;;  %s8500_s27 = sshll.u32 %s6149_s22, 6 }
   0xe   : > { %8102 = vmatprep.subr.msk.bf16.mxu0 %vm817_vm0, %v6326_v0  ;;  %8098 = vmatprep.subr.msk.bf16.mxu1 %vm817_vm0, %v6193_v1  ;;  %v2632_v2 = vsel %vm817_vm0, %v6326_v0, 0  ;;  %v819_v3 = vsel %vm817_vm0, %v6193_v1, 0  ;;  %p265_p3 = scmp.lt.s32.totalorder %s8500_s27, 191  ;;  %v6359_v4 = vld [vmem:[%s10804_s2 + $0xa] sm:$0x3]  ;;  %vm720_vm2 = vcmask 31744  }
   0xf   : > { %7191 = vmatpush3.bf16.msra.mxu0 %v2632_v2  ;;  %6927 = vmatpush3.bf16.msra.mxu1 %v819_v3  ;;  %vm459_vm1 = vsmask.f32 7424  ;;  %vm2393_vm3 = vsmask.f32 6400  ;;  %v3152_v8 = vsel %vm817_vm0, %v6359_v4, 0  ;;  %s6595_s11 = sadd.s32 64, %s8500_s27 }
  0x10   : > { %s266_s30 = scalar_select %p265_p3, %s8500_s27, 191  ;;  %8103 = vmatprep.subr.msk.bf16.mxu0 %vm817_vm0, %v6359_v4  ;;  %vm2989_vm4 = vcmask 1045504   ;;  %vm1501_vm5 = vcmask 1046528   ;;  %vm3881_vm6 = vsmask.f32 5376  ;;  %vm4477_vm7 = vcmask 1044480  }
  0x11   : > { %p8694_p4 = scmp.lt.s32.totalorder %s6595_s11, 191  ;;  %vm5176_vm8 = vcmask 97280   ;;  %p279_p5 = scmp.lt.s32.totalorder %s8500_s27, 127 }
  0x12   : > { %s6155_s7 = sshll.u32 %s266_s30, 2 }
  0x13   : > { %s8515_s10 = scalar_lea.vmem %s10802_s0, %s6155_s7  ;;  %s11055_s11 = smov (!%p8694_p4, %s6595_s11), 191 }
  0x14   : > { %v8518_v5 = vld [vmem:[%s8515_s10] sm:$0xff]   ;;  %v8521_v6 = vld [vmem:[%s8515_s10 + $0x8] sm:$0xff]   ;;  %v8524_v7 = vld [vmem:[%s8515_s10 + $0x10] sm:$0xff]   ;;  %s6157_s13 = sshll.u32 %s11055_s11, 2  ;;  %s11057_s27 = smov (!%p279_p5, %s8500_s27), 127 }
  0x15   : > { %v461_v9 = vshrl.u32 %v8518_v5, 16  ;;  %v463_v10 = vshll.u32 %v8518_v5, 16  ;;  %v468_v11 = vshll.u32 %v8521_v6, 16  ;;  %v472_v12 = vshrl.u32 %v8521_v6, 16  ;;  %v8538_v15 = vld [vmem:[%s8515_s10 + $0x18] sm:$0xff]   ;;  %v8541_v16 = vld [vmem:[%s8515_s10 + $0x20] sm:$0xff]   ;;  %s8760_s20 = scalar_lea.vmem %s10803_s1, %s6157_s13 }
  0x16   : > { %v8532_v13 = vshll.u32 %v8524_v7, 16  ;;  %v8535_v14 = vshrl.u32 %v8524_v7, 16  ;;  %v8547_v24 = vshll.u32 %v8538_v15, 16  ;;  %v8550_v28 = vshrl.u32 %v8538_v15, 16  ;;  %v8553_v29 = vld [vmem:[%s8515_s10 + $0x28] sm:$0xff]   ;;  %v8565_v38 = vld [vmem:[%s8515_s10 + $0x30] sm:$0xff]  }
  0x17   : > { %v465_v17 = vrot.slane %v463_v10, 1  ;;  %v470_v18 = vrot.slane %v468_v11, 1  ;;  %v2394_v19 = vrot.slane %v472_v12, 1  ;;  %v2395_v20 = vrot.slane %v468_v11, 2  ;;  %v8582_v47 = vld [vmem:[%s8515_s10 + $0x38] sm:$0xff]   ;;  %v8603_v59 = vld [vmem:[%s8515_s10 + $0x40] sm:$0xff]  }
  0x18   : > { %v2397_v21 = vrot.slane %v8535_v14, 1  ;;  %v2398_v22 = vrot.slane %v8532_v13, 2  ;;  %v478_v23 = vrot.slane %v8532_v13, 1  ;;  %10881 = vst [vmem:[#allocation2_spill] sm:$0xff] %v8547_v24  ;;  %10882 = vst [vmem:[#allocation3_spill] sm:$0xff] %v8550_v28  ;;  %v2402_v31 = vrot.slane %v8547_v24, 2 }
  0x19   : > { %v466_v25 = vor.u32 %v465_v17, %v461_v9  ;;  %v474_v26 = vor.u32 %v472_v12, %v470_v18  ;;  %v2396_v27 = vor.u32 %v2395_v20, %v2394_v19  ;;  %v486_v33 = vrot.slane %v8547_v24, 1  ;;  %v8628_v17 = vld [vmem:[%s8515_s10 + $0x48] sm:$0xff]   ;;  %s6159_s13 = sshll.u32 %s11057_s27, 3 }
  0x1a   : > { %v2399_v30 = vor.u32 %v2398_v22, %v2397_v21  ;;  %v482_v32 = vor.u32 %v8535_v14, %v478_v23  ;;  %v2401_v36 = vrot.slane %v8550_v28, 1  ;;  %v8562_v37 = vshll.u32 %v8541_v16, 16  ;;  %v8635_v21 = vld [vmem:[%s8515_s10 + $0x50] sm:$0xff]   ;;  %s10342_s15 = scalar_lea.vmem %s10808_s6, %s6159_s13 }
  0x1b   : > { %v471_v34 = vsel %vm459_vm1, %v466_v25, %v470_v18  ;;  %v479_v35 = vsel %vm459_vm1, %v474_v26, %v478_v23  ;;  %v8571_v41 = vshrl.u32 %v8541_v16, 16  ;;  %v490_v42 = vor.u32 %v8550_v28, %v486_v33  ;;  %v9373_v28 = vld [vmem:[%s8515_s10 + $0x18] sm:$0xff]  }
  0x1c   : > { %10883 = vst [vmem:[#allocation4_spill] sm:$0xff] %v8562_v37  ;;  %6928 = vmatprep.mubr.msk.bf16.mxu1 %vm720_vm2, %v471_v34  ;;  %v2400_v39 = vsel %vm2393_vm3, %v2396_v27, %v2399_v30  ;;  %v487_v40 = vsel %vm459_vm1, %v482_v32, %v486_v33  ;;  %v2403_v43 = vor.u32 %v2402_v31, %v2401_v36  ;;  %v2406_v44 = vrot.slane %v8562_v37, 2  ;;  %v8657_v36 = vld [vmem:[%s8515_s10 + $0x58] sm:$0xff]  }
  0x1d   : > { %10884 = vst [vmem:[#allocation5_spill] sm:$0xff] %v8571_v41  ;;  %7192 = vmatprep.mubr.msk.bf16.mxu0 %vm720_vm2, %v2400_v39  ;;  %6929 = vmatmul.mubr.msk.bf16.vlgmr.msra.gmra.mrb[0].mxu1 %vm720_vm2, %v479_v35  ;;  %v494_v45 = vrot.slane %v8562_v37, 1  ;;  %v8579_v46 = vshll.u32 %v8553_v29, 16  ;;  %v2405_v48 = vrot.slane %v8571_v41, 1  ;;  %v8587_v49 = vshrl.u32 %v8553_v29, 16  ;;  %10943 = vst [vmem:[#allocation63_spill] sm:$0xff] %v9373_v28 }
  0x1e   : > { %6932 = vmatprep.mubr.msk.bf16.mxu1 %vm720_vm2, %v487_v40  ;;  %v8590_v50 = vshll.u32 %v8565_v38, 16  ;;  %v8593_v51 = vshrl.u32 %v8565_v38, 16  ;;  %v2404_v52 = vsel %vm2393_vm3, %v2399_v30, %v2403_v43  ;;  %v8607_v61 = vshll.u32 %v8582_v47, 16 }
  0x1f   : > { %10885 = vst [vmem:[#allocation6_spill] sm:$0xff] %v8579_v46  ;;  %10886 = vst [vmem:[#allocation7_spill] sm:$0xff] %v8587_v49  ;;  %v2410_v53 = vrot.slane %v8579_v46, 2  ;;  %v498_v54 = vor.u32 %v8571_v41, %v494_v45  ;;  %7193 = vmatmul.mubr.msk.bf16.vlgmr.msra.gmra.mrb[0].mxu0 %vm720_vm2, %v2404_v52  ;;  %v2407_v55 = vor.u32 %v2406_v44, %v2405_v48  ;;  %v2409_v56 = vrot.slane %v8587_v49, 1  ;;  %v8665_v44 = vld [vmem:[%s8515_s10 + $0x60] sm:$0xff]   ;;  %v8411_v41 = vld [vmem:[%s8515_s10 + $0x8] sm:$0xff]  }
  0x20   : > { %10887 = vst [vmem:[#allocation8_spill] sm:$0xff] %v8590_v50  ;;  %10888 = vst [vmem:[#allocation9_spill] sm:$0xff] %v8593_v51  ;;  %v502_v57 = vrot.slane %v8579_v46, 1  ;;  %v2413_v58 = vrot.slane %v8593_v51, 1  ;;  %7257 = vmatpush3.bf16.msra.mxu0 %v3152_v8  ;;  %v2414_v60 = vrot.slane %v8590_v50, 2  ;;  %v8610_v62 = vshrl.u32 %v8582_v47, 16 }
  0x21   : > { %10889 = vst [vmem:[#allocation10_spill] sm:$0xff] %v8607_v61  ;;  %v2408_v63 = vsel %vm2393_vm3, %v2403_v43, %v2407_v55  ;;  %v495_v0 = vsel %vm459_vm1, %v490_v42, %v494_v45  ;;  %v2411_v1 = vor.u32 %v2410_v53, %v2409_v56  ;;  %v510_v4 = vrot.slane %v8590_v50, 1 }
  0x22   : > { %10890 = vst [vmem:[#allocation11_spill] sm:$0xff] %v8610_v62  ;;  %7196 = vmatprep.mubr.msk.bf16.mxu0 %vm720_vm2, %v2408_v63  ;;  %v503_v2 = vsel %vm459_vm1, %v498_v54, %v502_v57  ;;  %v2415_v3 = vor.u32 %v2414_v60, %v2413_v58  ;;  %v8618_v8 = vshll.u32 %v8603_v59, 16  ;;  %v2417_v10 = vrot.slane %v8610_v62, 1 }
  0x23   : > { %v2412_v9 = vsel %vm2393_vm3, %v2407_v55, %v2411_v1  ;;  %v2418_v11 = vrot.slane %v8607_v61, 2  ;;  %v8625_v12 = vshrl.u32 %v8603_v59, 16  ;;  %v506_v19 = vor.u32 %v8587_v49, %v502_v57  ;;  %v9055_v49 = vld [vmem:[%s8760_s20 + $0x8] sm:$0xf] }
  0x24   : > { %10891 = vst [vmem:[#allocation12_spill] sm:$0xff] %v8618_v8  ;;  %v2416_v18 = vsel %vm2393_vm3, %v2411_v1, %v2415_v3  ;;  %v2422_v20 = vrot.slane %v8618_v8, 2  ;;  %v514_v22 = vor.u32 %v8593_v51, %v510_v4  ;;  %v518_v23 = vrot.slane %v8607_v61, 1 }
  0x25   : > { %6933 = vmatmul.mubr.msk.bf16.gmra.mrb[4].mxu1 %vm720_vm2, %v495_v0  ;;  %10892 = vst [vmem:[#allocation13_spill] sm:$0xff] %v8625_v12  ;;  %v2421_v25 = vrot.slane %v8625_v12, 1  ;;  %v2419_v26 = vor.u32 %v2418_v11, %v2417_v10  ;;  %v8643_v27 = vshll.u32 %v8628_v17, 16  ;;  %v8646_v30 = vshrl.u32 %v8628_v17, 16 }
  0x26   : > { %6936 = vmatprep.mubr.msk.bf16.mxu1 %vm720_vm2, %v503_v2  ;;  %v511_v31 = vsel %vm459_vm1, %v506_v19, %v510_v4  ;;  %v8650_v33 = vshll.u32 %v8635_v21, 16  ;;  %v8653_v34 = vshrl.u32 %v8635_v21, 16  ;;  %v519_v35 = vsel %vm459_vm1, %v514_v22, %v518_v23 }
  0x27   : > { %7197 = vmatmul.mubr.msk.bf16.gmra.mrb[4].mxu0 %vm720_vm2, %v2412_v9  ;;  %10893 = vst [vmem:[#allocation14_spill] sm:$0xff] %v8643_v27  ;;  %10894 = vst [vmem:[#allocation15_spill] sm:$0xff] %v8646_v30  ;;  %v2423_v32 = vor.u32 %v2422_v20, %v2421_v25  ;;  %v2420_v39 = vsel %vm2393_vm3, %v2415_v3, %v2419_v26  ;;  %v526_v40 = vrot.slane %v8618_v8, 1  ;;  %v2425_v42 = vrot.slane %v8646_v30, 1  ;;  %v8692_v3 = vld [vmem:[%s8515_s10 + $0x68] sm:$0xff]  }
  0x28   : > { %7200 = vmatprep.mubr.msk.bf16.mxu0 %vm720_vm2, %v2416_v18  ;;  %10895 = vst [vmem:[#allocation16_spill] sm:$0xff] %v8650_v33  ;;  %10896 = vst [vmem:[#allocation17_spill] sm:$0xff] %v8653_v34  ;;  %v2426_v43 = vrot.slane %v8643_v27, 2  ;;  %v522_v48 = vor.u32 %v8610_v62, %v518_v23  ;;  %v2429_v52 = vrot.slane %v8653_v34, 1  ;;  %v2430_v53 = vrot.slane %v8650_v33, 2  ;;  %v8704_v18 = vld [vmem:[%s8515_s10 + $0x70] sm:$0xff]  }
  0x29   : > { %v2424_v45 = vsel %vm2393_vm3, %v2419_v26, %v2423_v32  ;;  %v530_v54 = vor.u32 %v8625_v12, %v526_v40  ;;  %v534_v55 = vrot.slane %v8643_v27, 1  ;;  %v8678_v57 = vshll.u32 %v8657_v36, 16 }
  0x2a   : > { %v2427_v56 = vor.u32 %v2426_v43, %v2425_v42  ;;  %v8681_v58 = vshrl.u32 %v8657_v36, 16  ;;  %v527_v60 = vsel %vm459_vm1, %v522_v48, %v526_v40  ;;  %v2431_v63 = vor.u32 %v2430_v53, %v2429_v52  ;;  %v8733_v52 = vld [vmem:[%s8515_s10 + $0x78] sm:$0xff]  }
  0x2b   : > { %10897 = vst [vmem:[#allocation18_spill] sm:$0xff] %v8678_v57  ;;  %v8685_v0 = vshll.u32 %v8665_v44, 16  ;;  %v8688_v1 = vshrl.u32 %v8665_v44, 16  ;;  %v535_v2 = vsel %vm459_vm1, %v530_v54, %v534_v55  ;;  %v542_v9 = vrot.slane %v8650_v33, 1 }
  0x2c   : > { %10898 = vst [vmem:[#allocation19_spill] sm:$0xff] %v8681_v58  ;;  %v2428_v4 = vsel %vm2393_vm3, %v2423_v32, %v2427_v56  ;;  %v2433_v10 = vrot.slane %v8681_v58, 1  ;;  %v2434_v11 = vrot.slane %v8678_v57, 2  ;;  %v2432_v19 = vsel %vm2393_vm3, %v2427_v56, %v2431_v63  ;;  %v8742_v56 = vld [vmem:[%s10804_s2] sm:$0x3] }
  0x2d   : > { %6937 = vmatmul.mubr.msk.bf16.gmra.mrb[8].mxu1 %vm720_vm2, %v511_v31  ;;  %10899 = vst [vmem:[#allocation20_spill] sm:$0xff] %v8685_v0  ;;  %10900 = vst [vmem:[#allocation21_spill] sm:$0xff] %v8688_v1  ;;  %v538_v20 = vor.u32 %v8646_v30, %v534_v55  ;;  %v2437_v22 = vrot.slane %v8688_v1, 1  ;;  %v2438_v23 = vrot.slane %v8685_v0, 2  ;;  %v546_v25 = vor.u32 %v8653_v34, %v542_v9  ;;  %v8970_v30 = vld [vmem:[%s8515_s10 + $0xe0] sm:$0xff]  }
  0x2e   : > { %6940 = vmatprep.mubr.msk.bf16.mxu1 %vm720_vm2, %v519_v35  ;;  %v550_v26 = vrot.slane %v8678_v57, 1  ;;  %v2435_v31 = vor.u32 %v2434_v11, %v2433_v10  ;;  %v8718_v32 = vshll.u32 %v8692_v3, 16  ;;  %v8721_v35 = vshrl.u32 %v8692_v3, 16  ;;  %v8755_v10 = vld [vmem:[%s8515_s10 + $0x80] sm:$0xff]   ;;  %8099 = vmatprep.subr.msk.bf16.mxu1 %vm817_vm0, %v8742_v56  ;;  %v8866_v57 = vld [vmem:[%s8515_s10 + $0xb0] sm:$0xff]  }
  0x2f   : > { %7201 = vmatmul.mubr.msk.bf16.gmra.mrb[8].mxu0 %vm720_vm2, %v2420_v39  ;;  %v543_v39 = vsel %vm459_vm1, %v538_v20, %v542_v9  ;;  %v2439_v40 = vor.u32 %v2438_v23, %v2437_v22  ;;  %v8725_v42 = vshll.u32 %v8704_v18, 16  ;;  %v8728_v43 = vshrl.u32 %v8704_v18, 16 }
  0x30   : > { %7204 = vmatprep.mubr.msk.bf16.mxu0 %vm720_vm2, %v2424_v45  ;;  %10902 = vst [vmem:[#allocation22_spill] sm:$0xff] %v8718_v32  ;;  %10903 = vst [vmem:[#allocation23_spill] sm:$0xff] %v8721_v35  ;;  %v551_v45 = vsel %vm459_vm1, %v546_v25, %v550_v26  ;;  %v558_v48 = vrot.slane %v8685_v0, 1  ;;  %v2436_v53 = vsel %vm2393_vm3, %v2431_v63, %v2435_v31  ;;  %v2441_v54 = vrot.slane %v8721_v35, 1  ;;  %v8832_v0 = vld [vmem:[%s8515_s10 + $0xa0] sm:$0xff]  }
  0x31   : > { %10904 = vst [vmem:[#allocation24_spill] sm:$0xff] %v8725_v42  ;;  %10905 = vst [vmem:[#allocation25_spill] sm:$0xff] %v8728_v43  ;;  %v2442_v55 = vrot.slane %v8718_v32, 2  ;;  %v554_v63 = vor.u32 %v8681_v58, %v550_v26  ;;  %v2446_v9 = vrot.slane %v8725_v42, 2  ;;  %v8771_v22 = vshll.u32 %v8733_v52, 16 }
  0x32   : > { %v562_v11 = vor.u32 %v8688_v1, %v558_v48  ;;  %v8774_v23 = vshrl.u32 %v8733_v52, 16 }
  0x33   : > { %v2443_v20 = vor.u32 %v2442_v55, %v2441_v54  ;;  %10906 = vst [vmem:[#allocation26_spill] sm:$0xff] %v8771_v22  ;;  %v559_v25 = vsel %vm459_vm1, %v554_v63, %v558_v48  ;;  %v574_v54 = vrot.slane %v8725_v42, 1  ;;  %v2450_v48 = vrot.slane %v8771_v22, 2 }
  0x34   : > { %10907 = vst [vmem:[#allocation27_spill] sm:$0xff] %v8774_v23  ;;  %v2449_v55 = vrot.slane %v8774_v23, 1  ;;  %v582_v42 = vrot.slane %v8771_v22, 1 }
  0x35   : > { %6941 = vmatmul.mubr.msk.bf16.gmra.mrb[12].mxu1 %vm720_vm2, %v527_v60  ;;  %v8747_v60 = vld [vmem:[%s10804_s2 + $0xc] sm:$0x3] }
  0x36   : > { %6944 = vmatprep.mubr.msk.bf16.mxu1 %vm720_vm2, %v535_v2  ;;  %v2440_v2 = vsel %vm2393_vm3, %v2435_v31, %v2439_v40  ;;  %8104 = vmatprep.subr.msk.bf16.mxu0 %vm817_vm0, %v8747_v60  ;;  %v8778_v31 = vshll.u32 %v8755_v10, 16 }
  0x37   : > { %7205 = vmatmul.mubr.msk.bf16.gmra.mrb[12].mxu0 %vm720_vm2, %v2428_v4  ;;  %v2445_v4 = vrot.slane %v8728_v43, 1 }
  0x38   : > { %7208 = vmatprep.mubr.msk.bf16.mxu0 %vm720_vm2, %v2432_v19  ;;  %v566_v19 = vrot.slane %v8718_v32, 1  ;;  %10908 = vst [vmem:[#allocation28_spill] sm:$0xff] %v8778_v31 }
  0x39   : > { %v2447_v26 = vor.u32 %v2446_v9, %v2445_v4 }
  0x3a   : > { %v570_v4 = vor.u32 %v8721_v35, %v566_v19 }
  0x3b   : > { %v2448_v63 = vsel %vm2393_vm3, %v2443_v20, %v2447_v26 }
  0x3c   : > { %v575_v32 = vsel %vm459_vm1, %v570_v4, %v574_v54  ;;  %v8824_v4 = vld [vmem:[%s8515_s10 + $0x98] sm:$0xff]  }
  0x3d   : > { %6945 = vmatmul.mubr.msk.bf16.gmra.mrb[16].mxu1 %vm720_vm2, %v543_v39  ;;  %v8781_v39 = vshrl.u32 %v8755_v10, 16 }
  0x3e   : > { %6948 = vmatprep.mubr.msk.bf16.mxu1 %vm720_vm2, %v551_v45  ;;  %v567_v45 = vsel %vm459_vm1, %v562_v11, %v566_v19  ;;  %v2454_v11 = vrot.slane %v8778_v31, 2 }
  0x3f   : > { %7209 = vmatmul.mubr.msk.bf16.gmra.mrb[16].mxu0 %vm720_vm2, %v2436_v53  ;;  %10909 = vst [vmem:[#allocation29_spill] sm:$0xff] %v8781_v39  ;;  %v2444_v53 = vsel %vm2393_vm3, %v2439_v40, %v2443_v20  ;;  %v2453_v9 = vrot.slane %v8781_v39, 1  ;;  %v578_v40 = vor.u32 %v8728_v43, %v574_v54 }
  0x40   : > { %7212 = vmatprep.mubr.msk.bf16.mxu0 %vm720_vm2, %v2440_v2  ;;  %v8790_v2 = vld [vmem:[%s8515_s10 + $0x88] sm:$0xff]  }
  0x41   : > { %v8805_v20 = vshll.u32 %v8790_v2, 16  ;;  %v8808_v19 = vshrl.u32 %v8790_v2, 16  ;;  %v2455_v35 = vor.u32 %v2454_v11, %v2453_v9  ;;  %v586_v11 = vor.u32 %v8774_v23, %v582_v42 }
  0x43   : > { %10910 = vst [vmem:[#allocation30_spill] sm:$0xff] %v8805_v20  ;;  %10911 = vst [vmem:[#allocation31_spill] sm:$0xff] %v8808_v19  ;;  %v2458_v54 = vrot.slane %v8805_v20, 2 }
  0x45   : > { %6949 = vmatmul.mubr.msk.bf16.gmra.mrb[20].mxu1 %vm720_vm2, %v559_v25  ;;  %v8798_v25 = vld [vmem:[%s8515_s10 + $0x90] sm:$0xff]  }
  0x46   : > { %6952 = vmatprep.mubr.msk.bf16.mxu1 %vm720_vm2, %v567_v45  ;;  %v2451_v45 = vor.u32 %v2450_v48, %v2449_v55  ;;  %v8812_v43 = vshll.u32 %v8798_v25, 16  ;;  %v8815_v22 = vshrl.u32 %v8798_v25, 16  ;;  %v590_v48 = vrot.slane %v8778_v31, 1 }
  0x47   : > { %7213 = vmatmul.mubr.msk.bf16.gmra.mrb[20].mxu0 %vm720_vm2, %v2444_v53  ;;  %v583_v53 = vsel %vm459_vm1, %v578_v40, %v582_v42  ;;  %v598_v31 = vrot.slane %v8805_v20, 1  ;;  %v8842_v42 = vshrl.u32 %v8824_v4, 16  ;;  %v8849_v20 = vshrl.u32 %v8832_v0, 16 }
  0x48   : > { %7216 = vmatprep.mubr.msk.bf16.mxu0 %vm720_vm2, %v2448_v63  ;;  %10912 = vst [vmem:[#allocation32_spill] sm:$0xff] %v8812_v43  ;;  %10913 = vst [vmem:[#allocation33_spill] sm:$0xff] %v8815_v22  ;;  %v2452_v55 = vsel %vm2393_vm3, %v2447_v26, %v2451_v45  ;;  %v2457_v63 = vrot.slane %v8808_v19, 1  ;;  %v2456_v9 = vsel %vm2393_vm3, %v2451_v45, %v2455_v35  ;;  %v2461_v40 = vrot.slane %v8815_v22, 1 }
  0x49   : > { %v594_v26 = vor.u32 %v8781_v39, %v590_v48  ;;  %v8839_v45 = vshll.u32 %v8824_v4, 16  ;;  %10915 = vst [vmem:[#allocation35_spill] sm:$0xff] %v8842_v42  ;;  %v591_v23 = vsel %vm459_vm1, %v586_v11, %v590_v48  ;;  %v8846_v39 = vshll.u32 %v8832_v0, 16  ;;  %10917 = vst [vmem:[#allocation37_spill] sm:$0xff] %v8849_v20  ;;  %v8858_v11 = vld [vmem:[%s8515_s10 + $0xa8] sm:$0xff]  }
  0x4b   : > { %10914 = vst [vmem:[#allocation34_spill] sm:$0xff] %v8839_v45  ;;  %10916 = vst [vmem:[#allocation36_spill] sm:$0xff] %v8846_v39  ;;  %v2466_v48 = vrot.slane %v8839_v45, 2 }
  0x4d   : > { %6953 = vmatmul.mubr.msk.bf16.gmra.mrb[24].mxu1 %vm720_vm2, %v575_v32  ;;  %v2462_v32 = vrot.slane %v8812_v43, 2 }
  0x4e   : > { %6956 = vmatprep.mubr.msk.bf16.mxu1 %vm720_vm2, %v583_v53  ;;  %v2459_v53 = vor.u32 %v2458_v54, %v2457_v63  ;;  %v606_v54 = vrot.slane %v8812_v43, 1  ;;  %v614_v43 = vrot.slane %v8839_v45, 1  ;;  %v8883_v45 = vshrl.u32 %v8866_v57, 16 }
  0x4f   : > { %7217 = vmatmul.mubr.msk.bf16.gmra.mrb[24].mxu0 %vm720_vm2, %v2452_v55  ;;  %v2463_v1 = vor.u32 %v2462_v32, %v2461_v40  ;;  %v599_v55 = vsel %vm459_vm1, %v594_v26, %v598_v31  ;;  %v602_v32 = vor.u32 %v8808_v19, %v598_v31  ;;  %v2469_v26 = vrot.slane %v8849_v20, 1 }
  0x50   : > { %7220 = vmatprep.mubr.msk.bf16.mxu0 %vm720_vm2, %v2456_v9  ;;  %v2460_v63 = vsel %vm2393_vm3, %v2455_v35, %v2459_v53  ;;  %v2465_v9 = vrot.slane %v8842_v42, 1  ;;  %v610_v35 = vor.u32 %v8815_v22, %v606_v54  ;;  %v8876_v31 = vshrl.u32 %v8858_v11, 16  ;;  %10921 = vst [vmem:[#allocation41_spill] sm:$0xff] %v8883_v45 }
  0x51   : > { %v2464_v40 = vsel %vm2393_vm3, %v2459_v53, %v2463_v1  ;;  %v8873_v53 = vshll.u32 %v8858_v11, 16  ;;  %v607_v19 = vsel %vm459_vm1, %v602_v32, %v606_v54  ;;  %v8880_v22 = vshll.u32 %v8866_v57, 16  ;;  %v8892_v32 = vld [vmem:[%s8515_s10 + $0xb8] sm:$0xff]  }
  0x52   : > { %10919 = vst [vmem:[#allocation39_spill] sm:$0xff] %v8876_v31 }
  0x53   : > { %10918 = vst [vmem:[#allocation38_spill] sm:$0xff] %v8873_v53  ;;  %10920 = vst [vmem:[#allocation40_spill] sm:$0xff] %v8880_v22  ;;  %v2474_v54 = vrot.slane %v8873_v53, 2  ;;  %v630_v34 = vrot.slane %v8873_v53, 1 }
  0x55   : > { %6957 = vmatmul.mubr.msk.bf16.gmra.mrb[28].mxu1 %vm720_vm2, %v591_v23  ;;  %v2470_v23 = vrot.slane %v8846_v39, 2 }
  0x56   : > { %6960 = vmatprep.mubr.msk.bf16.mxu1 %vm720_vm2, %v599_v55  ;;  %v2467_v55 = vor.u32 %v2466_v48, %v2465_v9  ;;  %v622_v9 = vrot.slane %v8846_v39, 1  ;;  %v2477_v39 = vrot.slane %v8883_v45, 1 }
  0x57   : > { %7221 = vmatmul.mubr.msk.bf16.gmra.mrb[28].mxu0 %vm720_vm2, %v2460_v63  ;;  %v2471_v58 = vor.u32 %v2470_v23, %v2469_v26  ;;  %v615_v63 = vsel %vm459_vm1, %v610_v35, %v614_v43  ;;  %v1175_v26 = vsel %vm817_vm0, %v8742_v56, 0  ;;  %v618_v35 = vor.u32 %v8842_v42, %v614_v43  ;;  %v8936_v42 = vld [vmem:[%s8515_s10 + $0xd0] sm:$0xff]  }
  0x58   : > { %7224 = vmatprep.mubr.msk.bf16.mxu0 %vm720_vm2, %v2464_v40  ;;  %v2468_v48 = vsel %vm2393_vm3, %v2463_v1, %v2467_v55  ;;  %v2473_v40 = vrot.slane %v8876_v31, 1  ;;  %v8902_v1 = vld [vmem:[%s8515_s10 + $0xc0] sm:$0xff]   ;;  %6993 = vmatpush3.bf16.msra.mxu1 %v1175_v26  ;;  %v626_v33 = vor.u32 %v8849_v20, %v622_v9  ;;  %v8912_v43 = vshrl.u32 %v8892_v32, 16 }
  0x59   : > { %v2472_v23 = vsel %vm2393_vm3, %v2467_v55, %v2471_v58  ;;  %v8909_v55 = vshll.u32 %v8892_v32, 16  ;;  %v8916_v20 = vshll.u32 %v8902_v1, 16  ;;  %v8919_v53 = vshrl.u32 %v8902_v1, 16 }
  0x5a   : > { %v2475_v56 = vor.u32 %v2474_v54, %v2473_v40  ;;  %10923 = vst [vmem:[#allocation43_spill] sm:$0xff] %v8912_v43  ;;  %v638_v54 = vrot.slane %v8880_v22, 1 }
  0x5b   : > { %10922 = vst [vmem:[#allocation42_spill] sm:$0xff] %v8909_v55  ;;  %10924 = vst [vmem:[#allocation44_spill] sm:$0xff] %v8916_v20 }
  0x5c   : > { %10925 = vst [vmem:[#allocation45_spill] sm:$0xff] %v8919_v53  ;;  %v2476_v40 = vsel %vm2393_vm3, %v2471_v58, %v2475_v56  ;;  %v642_v58 = vor.u32 %v8883_v45, %v638_v54  ;;  %v8950_v45 = vshll.u32 %v8936_v42, 16 }
  0x5d   : > { %6961 = vmatmul.mubr.msk.bf16.gmra.mrb[32].mxu1 %vm720_vm2, %v607_v19  ;;  %v2478_v19 = vrot.slane %v8880_v22, 2  ;;  %v646_v22 = vrot.slane %v8909_v55, 1 }
  0x5e   : > { %6964 = vmatprep.mubr.msk.bf16.mxu1 %vm720_vm2, %v615_v63  ;;  %v623_v63 = vsel %vm459_vm1, %v618_v35, %v622_v9  ;;  %v2482_v9 = vrot.slane %v8909_v55, 2  ;;  %v8928_v35 = vld [vmem:[%s8515_s10 + $0xc8] sm:$0xff]   ;;  %10928 = vst [vmem:[#allocation48_spill] sm:$0xff] %v8950_v45  ;;  %v8953_v55 = vshrl.u32 %v8936_v42, 16 }
  0x5f   : > { %7225 = vmatmul.mubr.msk.bf16.gmra.mrb[32].mxu0 %vm720_vm2, %v2468_v48  ;;  %v2479_v26 = vor.u32 %v2478_v19, %v2477_v39  ;;  %v631_v48 = vsel %vm459_vm1, %v626_v33, %v630_v34  ;;  %v634_v19 = vor.u32 %v8876_v31, %v630_v34  ;;  %v2485_v33 = vrot.slane %v8919_v53, 1 }
  0x60   : > { %7228 = vmatprep.mubr.msk.bf16.mxu0 %vm720_vm2, %v2472_v23  ;;  %v2481_v23 = vrot.slane %v8912_v43, 1  ;;  %v8946_v34 = vshrl.u32 %v8928_v35, 16  ;;  %10929 = vst [vmem:[#allocation49_spill] sm:$0xff] %v8953_v55 }
  0x61   : > { %v2480_v39 = vsel %vm2393_vm3, %v2475_v56, %v2479_v26  ;;  %v8943_v56 = vshll.u32 %v8928_v35, 16  ;;  %v639_v31 = vsel %vm459_vm1, %v634_v19, %v638_v54  ;;  %v8962_v19 = vld [vmem:[%s8515_s10 + $0xd8] sm:$0xff]  }
  0x62   : > { %10927 = vst [vmem:[#allocation47_spill] sm:$0xff] %v8946_v34 }
  0x63   : > { %10926 = vst [vmem:[#allocation46_spill] sm:$0xff] %v8943_v56  ;;  %v2490_v54 = vrot.slane %v8943_v56, 2 }
  0x65   : > { %6965 = vmatmul.mubr.msk.bf16.gmra.mrb[36].mxu1 %vm720_vm2, %v623_v63  ;;  %v2486_v63 = vrot.slane %v8916_v20, 2 }
  0x66   : > { %6968 = vmatprep.mubr.msk.bf16.mxu1 %vm720_vm2, %v631_v48  ;;  %v2483_v48 = vor.u32 %v2482_v9, %v2481_v23  ;;  %v654_v9 = vrot.slane %v8916_v20, 1  ;;  %v662_v20 = vrot.slane %v8943_v56, 1  ;;  %v8987_v56 = vshrl.u32 %v8970_v30, 16 }
  0x67   : > { %7229 = vmatmul.mubr.msk.bf16.gmra.mrb[36].mxu0 %vm720_vm2, %v2476_v40  ;;  %v2487_v27 = vor.u32 %v2486_v63, %v2485_v33  ;;  %v647_v40 = vsel %vm459_vm1, %v642_v58, %v646_v22  ;;  %v650_v63 = vor.u32 %v8912_v43, %v646_v22  ;;  %v2493_v58 = vrot.slane %v8953_v55, 1 }
  0x68   : > { %7232 = vmatprep.mubr.msk.bf16.mxu0 %vm720_vm2, %v2480_v39  ;;  %v2484_v23 = vsel %vm2393_vm3, %v2479_v26, %v2483_v48  ;;  %v2489_v39 = vrot.slane %v8946_v34, 1  ;;  %v658_v26 = vor.u32 %v8919_v53, %v654_v9  ;;  %v8980_v22 = vshrl.u32 %v8962_v19, 16  ;;  %10933 = vst [vmem:[#allocation53_spill] sm:$0xff] %v8987_v56 }
  0x69   : > { %v2488_v33 = vsel %vm2393_vm3, %v2483_v48, %v2487_v27  ;;  %v8977_v48 = vshll.u32 %v8962_v19, 16  ;;  %v655_v43 = vsel %vm459_vm1, %v650_v63, %v654_v9  ;;  %v8984_v53 = vshll.u32 %v8970_v30, 16  ;;  %v8996_v63 = vld [vmem:[%s8515_s10 + $0xe8] sm:$0xff]  }
  0x6a   : > { %10931 = vst [vmem:[#allocation51_spill] sm:$0xff] %v8980_v22 }
  0x6b   : > { %10930 = vst [vmem:[#allocation50_spill] sm:$0xff] %v8977_v48  ;;  %10932 = vst [vmem:[#allocation52_spill] sm:$0xff] %v8984_v53  ;;  %v2498_v9 = vrot.slane %v8977_v48, 2  ;;  %v678_v12 = vrot.slane %v8977_v48, 1  ;;  %v686_v50 = vrot.slane %v8984_v53, 1 }
  0x6d   : > { %6969 = vmatmul.mubr.msk.bf16.gmra.mrb[40].mxu1 %vm720_vm2, %v639_v31  ;;  %v2494_v31 = vrot.slane %v8950_v45, 2 }
  0x6e   : > { %6972 = vmatprep.mubr.msk.bf16.mxu1 %vm720_vm2, %v647_v40  ;;  %v2491_v40 = vor.u32 %v2490_v54, %v2489_v39  ;;  %v670_v54 = vrot.slane %v8950_v45, 1 }
  0x6f   : > { %7233 = vmatmul.mubr.msk.bf16.gmra.mrb[40].mxu0 %vm720_vm2, %v2484_v23  ;;  %v2495_v8 = vor.u32 %v2494_v31, %v2493_v58  ;;  %v663_v23 = vsel %vm459_vm1, %v658_v26, %v662_v20  ;;  %v666_v31 = vor.u32 %v8946_v34, %v662_v20  ;;  %v2501_v26 = vrot.slane %v8987_v56, 1 }
  0x70   : > { %7236 = vmatprep.mubr.msk.bf16.mxu0 %vm720_vm2, %v2488_v33  ;;  %v2492_v39 = vsel %vm2393_vm3, %v2487_v27, %v2491_v40  ;;  %v2497_v33 = vrot.slane %v8980_v22, 1  ;;  %v2502_v27 = vrot.slane %v8984_v53, 2  ;;  %v674_v45 = vor.u32 %v8953_v55, %v670_v54 }
  0x71   : > { %v2496_v58 = vsel %vm2393_vm3, %v2491_v40, %v2495_v8  ;;  %v9011_v20 = vshll.u32 %v8996_v63, 16  ;;  %v9014_v40 = vshrl.u32 %v8996_v63, 16  ;;  %v671_v34 = vsel %vm459_vm1, %v666_v31, %v670_v54 }
  0x72   : > { %v2503_v61 = vor.u32 %v2502_v27, %v2501_v26  ;;  %v9033_v26 = vld [vmem:[%s8515_s10 + $0xf8] sm:$0xff]  }
  0x73   : > { %10934 = vst [vmem:[#allocation54_spill] sm:$0xff] %v9011_v20  ;;  %10935 = vst [vmem:[#allocation55_spill] sm:$0xff] %v9014_v40  ;;  %v2505_v54 = vrot.slane %v9014_v40, 1  ;;  %v2506_v31 = vrot.slane %v9011_v20, 2  ;;  %v694_v53 = vrot.slane %v9011_v20, 1 }
  0x75   : > { %6973 = vmatmul.mubr.msk.bf16.gmra.mrb[44].mxu1 %vm720_vm2, %v655_v43  ;;  %v9004_v43 = vld [vmem:[%s8515_s10 + $0xf0] sm:$0xff]  }
  0x76   : > { %6976 = vmatprep.mubr.msk.bf16.mxu1 %vm720_vm2, %v663_v23  ;;  %v2499_v23 = vor.u32 %v2498_v9, %v2497_v33  ;;  %v9018_v62 = vshll.u32 %v9004_v43, 16  ;;  %v9021_v48 = vshrl.u32 %v9004_v43, 16  ;;  %v414_v33 = vld [vmem:[%s8760_s20 + $0x4] sm:$0xf]  ;;  %v682_v9 = vor.u32 %v8980_v22, %v678_v12 }
  0x77   : > { %7237 = vmatmul.mubr.msk.bf16.gmra.mrb[44].mxu0 %vm720_vm2, %v2492_v39  ;;  %v679_v39 = vsel %vm459_vm1, %v674_v45, %v678_v12  ;;  %v2507_v22 = vor.u32 %v2506_v31, %v2505_v54 }
  0x78   : > { %7240 = vmatprep.mubr.msk.bf16.mxu0 %vm720_vm2, %v2496_v58  ;;  %10936 = vst [vmem:[#allocation56_spill] sm:$0xff] %v9018_v62  ;;  %10937 = vst [vmem:[#allocation57_spill] sm:$0xff] %v9021_v48  ;;  %v413_v58 = vld [vmem:[%s8760_s20] sm:$0xf]  ;;  %v2500_v55 = vsel %vm2393_vm3, %v2495_v8, %v2499_v23  ;;  %v2504_v45 = vsel %vm2393_vm3, %v2499_v23, %v2503_v61  ;;  %v2509_v27 = vrot.slane %v9021_v48, 1  ;;  %v2510_v12 = vrot.slane %v9018_v62, 2 }
  0x79   : > { %v690_v8 = vor.u32 %v8987_v56, %v686_v50  ;;  %v9049_v23 = vshrl.u32 %v9033_v26, 16  ;;  %v687_v51 = vsel %vm459_vm1, %v682_v9, %v686_v50  ;;  %v702_v54 = vrot.slane %v9018_v62, 1 }
  0x7a   : > { %v2511_v46 = vor.u32 %v2510_v12, %v2509_v27  ;;  %v2508_v31 = vsel %vm2393_vm3, %v2503_v61, %v2507_v22  ;;  %v9066_v9 = vcombine.low %v9055_v49, %v9055_v49  ;;  %v9074_v12 = vcombine.low %v413_v58, %v413_v58 }
  0x7b   : > { %10940 = vst [vmem:[#allocation60_spill] sm:$0xff] %v9049_v23  ;;  %v2513_v20 = vrot.slane %v9049_v23, 1  ;;  %v706_v61 = vor.u32 %v9021_v48, %v702_v54 }
  0x7c   : > { %10941 = vst [vmem:[#allocation61_spill] sm:$0xff] %v9066_v9  ;;  %v2512_v27 = vsel %vm2393_vm3, %v2507_v22, %v2511_v46  ;;  %v2530_v22 = vshll.u32 %v9066_v9, 16 }
  0x7d   : > { %6977 = vmatmul.mubr.msk.bf16.gmra.mrb[48].mxu1 %vm720_vm2, %v671_v34  ;;  %v9039_v34 = vcombine.low %v413_v58, %v414_v33 }
  0x7e   : > { %6980 = vmatprep.mubr.msk.bf16.mxu1 %vm720_vm2, %v679_v39  ;;  %v9046_v39 = vshll.u32 %v9033_v26, 16 }
  0x7f   : > { %10938 = vst [vmem:[#allocation58_spill] sm:$0xff] %v9039_v34  ;;  %7241 = vmatmul.mubr.msk.bf16.gmra.mrb[48].mxu0 %vm720_vm2, %v2500_v55  ;;  %v10859_v33 = vshrl.u32 %v9039_v34, 16  ;;  %v10861_v56 = vshll.u32 %v9039_v34, 16  ;;  %v695_v55 = vsel %vm459_vm1, %v690_v8, %v694_v53 }
  0x80   : > { %7244 = vmatprep.mubr.msk.bf16.mxu0 %vm720_vm2, %v2504_v45  ;;  %10939 = vst [vmem:[#allocation59_spill] sm:$0xff] %v9046_v39  ;;  %v698_v45 = vor.u32 %v9014_v40, %v694_v53  ;;  %v2514_v50 = vrot.slane %v9046_v39, 2  ;;  %v710_v8 = vrot.slane %v9046_v39, 1 }
  0x81   : > { %v2520_v53 = vrot.slane %v10859_v33, 1 }
  0x82   : > { %v2515_v62 = vor.u32 %v2514_v50, %v2513_v20  ;;  %v703_v33 = vsel %vm459_vm1, %v698_v45, %v702_v54  ;;  %v711_v58 = vsel %vm459_vm1, %v706_v61, %v710_v8  ;;  %v714_v50 = vor.u32 %v9049_v23, %v710_v8  ;;  %v9124_v8 = vld [vmem:[%s10804_s2 + $0xe] sm:$0x3]  ;;  %v8410_v23 = vld [vmem:[%s8515_s10] sm:$0xff]  }
  0x83   : > { %v1502_v37 = vrot.slane %v8410_v23, 1 }
  0x84   : > { %v2516_v39 = vsel %vm2393_vm3, %v2511_v46, %v2515_v62  ;;  %v2991_v46 = vrot.slane %v8524_v7, 2 }
  0x85   : > { %6981 = vmatmul.mubr.msk.bf16.gmra.mrb[52].mxu1 %vm720_vm2, %v687_v51  ;;  %v2523_v51 = vrot.slane %v10861_v56, 2  ;;  %v716_v56 = vshll.u32 %v9074_v12, 16 }
  0x86   : > { %6984 = vmatprep.mubr.msk.bf16.mxu1 %vm720_vm2, %v695_v55  ;;  %v2527_v55 = vshrl.u32 %v9066_v9, 16 }
  0x87   : > { %7245 = vmatmul.mubr.msk.bf16.gmra.mrb[52].mxu0 %vm720_vm2, %v2508_v31  ;;  %v2524_v40 = vor.u32 %v2523_v51, %v2520_v53  ;;  %v2532_v31 = vrot.slane %v2530_v22, 2  ;;  %v3524_v51 = vsel %vm817_vm0, %v8747_v60, 0  ;;  %v3001_v22 = vrot.slane %v8582_v47, 2 }
  0x88   : > { %7248 = vmatprep.mubr.msk.bf16.mxu0 %vm720_vm2, %v2512_v27  ;;  %v2529_v48 = vrot.slane %v2527_v55, 1  ;;  %v718_v27 = vrot.slane %v716_v56, 1  ;;  %v6258_v56 = vld [vmem:[%s10804_s2 + $0x4] sm:$0x3] }
  0x89   : > { %v2525_v20 = vsel %vm2393_vm3, %v2515_v62, %v2524_v40  ;;  %8100 = vmatprep.subr.msk.bf16.mxu1 %vm817_vm0, %v6258_v56 }
  0x8a   : > { %v2533_v45 = vor.u32 %v2532_v31, %v2529_v48  ;;  %v719_v54 = vsel %vm459_vm1, %v714_v50, %v718_v27  ;;  %v2993_v48 = vrot.slane %v8538_v15, 2  ;;  %v3005_v31 = vrot.slane %v8628_v17, 2 }
  0x8b   : > { %v3009_v50 = vrot.slane %v8657_v36, 2  ;;  %v3011_v27 = vrot.slane %v8665_v44, 2 }
  0x8c   : > { %v2534_v53 = vsel %vm2393_vm3, %v2524_v40, %v2533_v45  ;;  %v1664_v40 = vsel %vm817_vm0, %v6258_v56, 0  ;;  %v3013_v45 = vrot.slane %v8692_v3, 2 }
  0x8d   : > { %6985 = vmatmul.mubr.msk.bf16.gmra.mrb[56].mxu1 %vm720_vm2, %v703_v33  ;;  %v2990_v33 = vrot.slane %v8521_v6, 2 }
  0x8e   : > { %6988 = vmatprep.mubr.msk.bf16.mxu1 %vm720_vm2, %v711_v58  ;;  %v3003_v58 = vrot.slane %v8603_v59, 2 }
  0x8f   : > { %7249 = vmatmul.mubr.msk.bf16.gmra.mrb[56].mxu0 %vm720_vm2, %v2516_v39  ;;  %v2992_v62 = vsel %vm2989_vm4, %v2990_v33, %v2991_v46  ;;  %v2995_v39 = vrot.slane %v8541_v16, 2  ;;  %v3017_v33 = vrot.slane %v8733_v52, 2 }
  0x90   : > { %7252 = vmatprep.mubr.msk.bf16.mxu0 %vm720_vm2, %v2525_v20  ;;  %v3007_v20 = vrot.slane %v8635_v21, 2 }
  0x91   : > { %v9119_v61 = vsel %vm2989_vm4, %v2993_v48, %v2995_v39 }
  0x95   : > { %6989 = vmatmul.mubr.msk.bf16.gmra.mrb[60].mxu1 %vm720_vm2, %v719_v54  ;;  %v3015_v54 = vrot.slane %v8704_v18, 2 }
  0x96   : > { %6994 = vmatprep.mubr.msk.bf16.mxu1 %vm720_vm2, %v8518_v5  ;;  %v9112_v5 = vsel %vm2989_vm4, %v2991_v46, %v2993_v48  ;;  %v3019_v46 = vrot.slane %v8755_v10, 2 }
  0x97   : > { %7253 = vmatmul.mubr.msk.bf16.gmra.mrb[60].mxu0 %vm720_vm2, %v2534_v53  ;;  %v3021_v53 = vrot.slane %v8790_v2, 2 }
  0x98   : > { %7258 = vmatprep.mubr.msk.bf16.mxu0 %vm720_vm2, %v2992_v62  ;;  %v3023_v62 = vrot.slane %v8798_v25, 2 }
  0x99   : > { %v9233_v56 = vsel %vm2989_vm4, %v3019_v46, %v3021_v53 }
  0x9a   : > { %v9238_v48 = vsel %vm2989_vm4, %v3021_v53, %v3023_v62 }
  0x9d   : > { %6995 = vmatmul.mubr.msk.bf16.vlgmr.msra.gmra.mrb[0].mxu1 %vm720_vm2, %v8521_v6  ;;  %v2997_v6 = vrot.slane %v8553_v29, 2 }
  0x9e   : > { %6998 = vmatprep.mubr.msk.bf16.mxu1 %vm720_vm2, %v8524_v7  ;;  %7059 = vmatpush3.bf16.msra.mxu1 %v1664_v40  ;;  %v2999_v7 = vrot.slane %v8565_v38, 2  ;;  %v3027_v40 = vrot.slane %v8832_v0, 2 }
  0x9f   : > { %7259 = vmatmul.mubr.msk.bf16.vlgmr.msra.gmra.mrb[0].mxu0 %vm720_vm2, %v9112_v5  ;;  %v9137_v60 = vsel %vm2989_vm4, %v2995_v39, %v2997_v6  ;;  %v3025_v39 = vrot.slane %v8824_v4, 2 }
  0xa0   : > { %7323 = vmatpush3.bf16.msra.mxu0 %v3524_v51  ;;  %7262 = vmatprep.mubr.msk.bf16.mxu0 %vm720_vm2, %v9119_v61  ;;  %v9142_v55 = vsel %vm2989_vm4, %v2997_v6, %v2999_v7 }
  0xa1   : > { %8105 = vmatprep.subr.msk.bf16.mxu0 %vm817_vm0, %v9124_v8  ;;  %v9249_v51 = vsel %vm2989_vm4, %v3023_v62, %v3025_v39  ;;  %v9254_v6 = vsel %vm2989_vm4, %v3025_v39, %v3027_v40  ;;  %v3041_v62 = vrot.slane %v8962_v19, 2  ;;  %v3043_v39 = vrot.slane %v8970_v30, 2 }
  0xa5   : > { %6999 = vmatmul.mubr.msk.bf16.gmra.mrb[4].mxu1 %vm720_vm2, %v8538_v15  ;;  %v9153_v15 = vsel %vm2989_vm4, %v2999_v7, %v3001_v22  ;;  %v3029_v7 = vrot.slane %v8858_v11, 2 }
  0xa6   : > { %7002 = vmatprep.mubr.msk.bf16.mxu1 %vm720_vm2, %v8541_v16  ;;  %v9158_v16 = vsel %vm2989_vm4, %v3001_v22, %v3003_v58  ;;  %v3031_v22 = vrot.slane %v8866_v57, 2 }
  0xa7   : > { %7263 = vmatmul.mubr.msk.bf16.gmra.mrb[4].mxu0 %vm720_vm2, %v9137_v60 }
  0xa8   : > { %7266 = vmatprep.mubr.msk.bf16.mxu0 %vm720_vm2, %v9142_v55 }
  0xad   : > { %7003 = vmatmul.mubr.msk.bf16.gmra.mrb[8].mxu1 %vm720_vm2, %v8553_v29  ;;  %v9169_v29 = vsel %vm2989_vm4, %v3003_v58, %v3005_v31  ;;  %v9265_v58 = vsel %vm2989_vm4, %v3027_v40, %v3029_v7 }
  0xae   : > { %7006 = vmatprep.mubr.msk.bf16.mxu1 %vm720_vm2, %v8565_v38  ;;  %v9174_v38 = vsel %vm2989_vm4, %v3005_v31, %v3007_v20  ;;  %v9270_v31 = vsel %vm2989_vm4, %v3029_v7, %v3031_v22  ;;  %v9318_v7 = vsel %vm2989_vm4, %v3041_v62, %v3043_v39 }
  0xaf   : > { %7267 = vmatmul.mubr.msk.bf16.gmra.mrb[8].mxu0 %vm720_vm2, %v9153_v15 }
  0xb0   : > { %7270 = vmatprep.mubr.msk.bf16.mxu0 %vm720_vm2, %v9158_v16 }
  0xb5   : > { %7007 = vmatmul.mubr.msk.bf16.gmra.mrb[12].mxu1 %vm720_vm2, %v8582_v47  ;;  %v9185_v47 = vsel %vm2989_vm4, %v3007_v20, %v3009_v50  ;;  %v3033_v20 = vrot.slane %v8892_v32, 2 }
  0xb6   : > { %7010 = vmatprep.mubr.msk.bf16.mxu1 %vm720_vm2, %v8603_v59  ;;  %v9190_v59 = vsel %vm2989_vm4, %v3009_v50, %v3011_v27  ;;  %v3035_v50 = vrot.slane %v8902_v1, 2 }
  0xb7   : > { %7271 = vmatmul.mubr.msk.bf16.gmra.mrb[12].mxu0 %vm720_vm2, %v9169_v29 }
  0xb8   : > { %7274 = vmatprep.mubr.msk.bf16.mxu0 %vm720_vm2, %v9174_v38 }
  0xbd   : > { %7011 = vmatmul.mubr.msk.bf16.gmra.mrb[16].mxu1 %vm720_vm2, %v8628_v17  ;;  %v9201_v17 = vsel %vm2989_vm4, %v3011_v27, %v3013_v45  ;;  %v9281_v27 = vsel %vm2989_vm4, %v3031_v22, %v3033_v20  ;;  %v3045_v22 = vrot.slane %v8996_v63, 2 }
  0xbe   : > { %7014 = vmatprep.mubr.msk.bf16.mxu1 %vm720_vm2, %v8635_v21  ;;  %v9206_v21 = vsel %vm2989_vm4, %v3013_v45, %v3015_v54  ;;  %v9286_v45 = vsel %vm2989_vm4, %v3033_v20, %v3035_v50  ;;  %v3047_v20 = vrot.slane %v9004_v43, 2 }
  0xbf   : > { %7275 = vmatmul.mubr.msk.bf16.gmra.mrb[16].mxu0 %vm720_vm2, %v9185_v47 }
  0xc0   : > { %7278 = vmatprep.mubr.msk.bf16.mxu0 %vm720_vm2, %v9190_v59 }
  0xc5   : > { %7015 = vmatmul.mubr.msk.bf16.gmra.mrb[20].mxu1 %vm720_vm2, %v8657_v36  ;;  %v9217_v36 = vsel %vm2989_vm4, %v3015_v54, %v3017_v33  ;;  %v3037_v54 = vrot.slane %v8928_v35, 2 }
  0xc6   : > { %7018 = vmatprep.mubr.msk.bf16.mxu1 %vm720_vm2, %v8665_v44  ;;  %v9222_v44 = vsel %vm2989_vm4, %v3017_v33, %v3019_v46  ;;  %v3039_v33 = vrot.slane %v8936_v42, 2 }
  0xc7   : > { %7279 = vmatmul.mubr.msk.bf16.gmra.mrb[20].mxu0 %vm720_vm2, %v9201_v17  ;;  %v9297_v46 = vsel %vm2989_vm4, %v3035_v50, %v3037_v54  ;;  %v9329_v50 = vsel %vm2989_vm4, %v3043_v39, %v3045_v22 }
  0xc8   : > { %7282 = vmatprep.mubr.msk.bf16.mxu0 %vm720_vm2, %v9206_v21  ;;  %v9302_v53 = vsel %vm2989_vm4, %v3037_v54, %v3039_v33  ;;  %v9313_v40 = vsel %vm2989_vm4, %v3039_v33, %v3041_v62  ;;  %v9334_v54 = vsel %vm2989_vm4, %v3045_v22, %v3047_v20  ;;  %v3049_v33 = vrot.slane %v9033_v26, 2 }
  0xc9   : > { %v9342_v62 = vrot.slane %v9039_v34, 2  ;;  %v1503_v34 = vrot.slane %v8411_v41, 1  ;;  %v9369_v41 = vld [vmem:[%s8515_s10 + $0x10] sm:$0xff]  }
  0xca   : > { %v9347_v39 = vsel %vm2989_vm4, %v3047_v20, %v3049_v33  ;;  %v3053_v20 = vrot.slane %v9066_v9, 2  ;;  %10942 = vst [vmem:[#allocation62_spill] sm:$0xff] %v9369_v41  ;;  %v1505_v23 = vrot.slane %v9369_v41, 1  ;;  %v1507_v9 = vrot.slane %v9373_v28, 1  ;;  %v9407_v28 = vld [vmem:[%s10804_s2 + $0x10] sm:$0x3] }
  0xcb   : > { %v9353_v22 = vsel %vm2989_vm4, %v3049_v33, %v9342_v62  ;;  %v1504_v24 = vsel %vm1501_vm5, %v1502_v37, %v1503_v34  ;;  %v6293_v37 = vld [vmem:[%s10804_s2 + $0x6] sm:$0x3] }
  0xcc   : > { %v3054_v33 = vsel %vm2989_vm4, %v9342_v62, %v3053_v20  ;;  %8101 = vmatprep.subr.msk.bf16.mxu1 %vm817_vm0, %v6293_v37  ;;  %v9387_v20 = vsel %vm1501_vm5, %v1505_v23, %v1507_v9  ;;  %v2036_v41 = vsel %vm817_vm0, %v6293_v37, 0 }
  0xcd   : > { %7019 = vmatmul.mubr.msk.bf16.gmra.mrb[24].mxu1 %vm720_vm2, %v8692_v3 }
  0xce   : > { %7022 = vmatprep.mubr.msk.bf16.mxu1 %vm720_vm2, %v8704_v18 }
  0xcf   : > { %7283 = vmatmul.mubr.msk.bf16.gmra.mrb[24].mxu0 %vm720_vm2, %v9217_v36 }
  0xd0   : > { %7286 = vmatprep.mubr.msk.bf16.mxu0 %vm720_vm2, %v9222_v44 }
  0xd5   : > { %7023 = vmatmul.mubr.msk.bf16.gmra.mrb[28].mxu1 %vm720_vm2, %v8733_v52 }
  0xd6   : > { %7026 = vmatprep.mubr.msk.bf16.mxu1 %vm720_vm2, %v8755_v10 }
  0xd7   : > { %7287 = vmatmul.mubr.msk.bf16.gmra.mrb[28].mxu0 %vm720_vm2, %v9233_v56 }
  0xd8   : > { %7290 = vmatprep.mubr.msk.bf16.mxu0 %vm720_vm2, %v9238_v48 }
  0xdd   : > { %7027 = vmatmul.mubr.msk.bf16.gmra.mrb[32].mxu1 %vm720_vm2, %v8790_v2 }
  0xde   : > { %7030 = vmatprep.mubr.msk.bf16.mxu1 %vm720_vm2, %v8798_v25 }
  0xdf   : > { %7291 = vmatmul.mubr.msk.bf16.gmra.mrb[32].mxu0 %vm720_vm2, %v9249_v51 }
  0xe0   : > { %7294 = vmatprep.mubr.msk.bf16.mxu0 %vm720_vm2, %v9254_v6 }
  0xe5   : > { %7031 = vmatmul.mubr.msk.bf16.gmra.mrb[36].mxu1 %vm720_vm2, %v8824_v4 }
  0xe6   : > { %7034 = vmatprep.mubr.msk.bf16.mxu1 %vm720_vm2, %v8832_v0 }
  0xe7   : > { %7295 = vmatmul.mubr.msk.bf16.gmra.mrb[36].mxu0 %vm720_vm2, %v9265_v58 }
  0xe8   : > { %7298 = vmatprep.mubr.msk.bf16.mxu0 %vm720_vm2, %v9270_v31 }
  0xed   : > { %7035 = vmatmul.mubr.msk.bf16.gmra.mrb[40].mxu1 %vm720_vm2, %v8858_v11 }
  0xee   : > { %7038 = vmatprep.mubr.msk.bf16.mxu1 %vm720_vm2, %v8866_v57 }
  0xef   : > { %7299 = vmatmul.mubr.msk.bf16.gmra.mrb[40].mxu0 %vm720_vm2, %v9281_v27 }
  0xf0   : > { %7302 = vmatprep.mubr.msk.bf16.mxu0 %vm720_vm2, %v9286_v45 }
  0xf5   : > { %7039 = vmatmul.mubr.msk.bf16.gmra.mrb[44].mxu1 %vm720_vm2, %v8892_v32 }
  0xf6   : > { %7042 = vmatprep.mubr.msk.bf16.mxu1 %vm720_vm2, %v8902_v1 }
  0xf7   : > { %7303 = vmatmul.mubr.msk.bf16.gmra.mrb[44].mxu0 %vm720_vm2, %v9297_v46 }
  0xf8   : > { %7306 = vmatprep.mubr.msk.bf16.mxu0 %vm720_vm2, %v9302_v53 }
  0xfd   : > { %7043 = vmatmul.mubr.msk.bf16.gmra.mrb[48].mxu1 %vm720_vm2, %v8928_v35 }
  0xfe   : > { %7046 = vmatprep.mubr.msk.bf16.mxu1 %vm720_vm2, %v8936_v42 }
  0xff   : > { %7307 = vmatmul.mubr.msk.bf16.gmra.mrb[48].mxu0 %vm720_vm2, %v9313_v40 }
 0x100   : > { %7310 = vmatprep.mubr.msk.bf16.mxu0 %vm720_vm2, %v9318_v7 }
 0x105   : > { %7047 = vmatmul.mubr.msk.bf16.gmra.mrb[52].mxu1 %vm720_vm2, %v8962_v19 }
 0x106   : > { %7050 = vmatprep.mubr.msk.bf16.mxu1 %vm720_vm2, %v8970_v30 }
 0x107   : > { %7311 = vmatmul.mubr.msk.bf16.gmra.mrb[52].mxu0 %vm720_vm2, %v9329_v50 }
 0x108   : > { %7314 = vmatprep.mubr.msk.bf16.mxu0 %vm720_vm2, %v9334_v54 }
 0x10d   : > { %7051 = vmatmul.mubr.msk.bf16.gmra.mrb[56].mxu1 %vm720_vm2, %v8996_v63 }
 0x10e   : > { %7054 = vmatprep.mubr.msk.bf16.mxu1 %vm720_vm2, %v9004_v43 }
 0x10f   : > { %7315 = vmatmul.mubr.msk.bf16.gmra.mrb[56].mxu0 %vm720_vm2, %v9347_v39 }
 0x110   : > { %7318 = vmatprep.mubr.msk.bf16.mxu0 %vm720_vm2, %v9353_v22 }
 0x115   : > { %7055 = vmatmul.mubr.msk.bf16.gmra.mrb[60].mxu1 %vm720_vm2, %v9033_v26 }
 0x116   : > { %7060 = vmatprep.mubr.msk.bf16.mxu1 %vm720_vm2, %v1504_v24  ;;  %v9384_v24 = vsel %vm1501_vm5, %v1503_v34, %v1505_v23  ;;  %v9401_v23 = vld [vmem:[%s8515_s10 + $0x28] sm:$0xff]  }
 0x117   : > { %7319 = vmatmul.mubr.msk.bf16.gmra.mrb[60].mxu0 %vm720_vm2, %v3054_v33  ;;  %v4120_v33 = vsel %vm817_vm0, %v9124_v8, 0  ;;  %10944 = vst [vmem:[#allocation64_spill] sm:$0xff] %v9401_v23  ;;  %v1511_v37 = vrot.slane %v9401_v23, 1 }
 0x118   : > { %7324 = vmatprep.mubr.msk.bf16.mxu0 %vm720_vm2, %v9112_v5  ;;  %v9397_v5 = vld [vmem:[%s8515_s10 + $0x20] sm:$0xff]  }
 0x119   : > { %v1509_v34 = vrot.slane %v9397_v5, 1 }
 0x11b   : > { %v9414_v8 = vsel %vm1501_vm5, %v1507_v9, %v1509_v34 }
 0x11d   : > { %7061 = vmatmul.mubr.msk.bf16.vlgmr.msra.gmra.mrb[0].mxu1 %vm720_vm2, %v9384_v24 }
 0x11e   : > { %7064 = vmatprep.mubr.msk.bf16.mxu1 %vm720_vm2, %v9387_v20  ;;  %7125 = vmatpush3.bf16.msra.mxu1 %v2036_v41  ;;  %v9419_v41 = vsel %vm1501_vm5, %v1509_v34, %v1511_v37 }
 0x11f   : > { %7325 = vmatmul.mubr.msk.bf16.vlgmr.msra.gmra.mrb[0].mxu0 %vm720_vm2, %v9119_v61  ;;  %v9426_v61 = vld [vmem:[%s8515_s10 + $0x30] sm:$0xff]  }
 0x120   : > { %7389 = vmatpush3.bf16.msra.mxu0 %v4120_v33  ;;  %7328 = vmatprep.mubr.msk.bf16.mxu0 %vm720_vm2, %v9137_v60  ;;  %10945 = vst [vmem:[#allocation65_spill] sm:$0xff] %v9426_v61  ;;  %v1513_v60 = vrot.slane %v9426_v61, 1  ;;  %v9430_v33 = vld [vmem:[%s8515_s10 + $0x38] sm:$0xff]   ;;  %v9452_v61 = vld [vmem:[%s8515_s10 + $0x48] sm:$0xff]  }
 0x121   : > { %8106 = vmatprep.subr.msk.bf16.mxu0 %vm817_vm0, %v9407_v28  ;;  %10946 = vst [vmem:[#allocation66_spill] sm:$0xff] %v9430_v33  ;;  %v1515_v9 = vrot.slane %v9430_v33, 1  ;;  %v9448_v33 = vld [vmem:[%s8515_s10 + $0x40] sm:$0xff]   ;;  %10948 = vst [vmem:[#allocation68_spill] sm:$0xff] %v9452_v61 }
 0x122   : > { %v9438_v34 = vsel %vm1501_vm5, %v1511_v37, %v1513_v60  ;;  %10947 = vst [vmem:[#allocation67_spill] sm:$0xff] %v9448_v33 }
 0x123   : > { %v9441_v23 = vsel %vm1501_vm5, %v1513_v60, %v1515_v9 }
 0x125   : > { %7065 = vmatmul.mubr.msk.bf16.gmra.mrb[4].mxu1 %vm720_vm2, %v9414_v8 }
 0x126   : > { %7068 = vmatprep.mubr.msk.bf16.mxu1 %vm720_vm2, %v9419_v41 }
 0x127   : > { %7329 = vmatmul.mubr.msk.bf16.gmra.mrb[4].mxu0 %vm720_vm2, %v9142_v55  ;;  %v1517_v55 = vrot.slane %v9448_v33, 1  ;;  %v9474_v33 = vld [vmem:[%s8515_s10 + $0x58] sm:$0xff]  }
 0x128   : > { %7332 = vmatprep.mubr.msk.bf16.mxu0 %vm720_vm2, %v9153_v15  ;;  %v1519_v15 = vrot.slane %v9452_v61, 1  ;;  %v9470_v61 = vld [vmem:[%s8515_s10 + $0x50] sm:$0xff]   ;;  %10950 = vst [vmem:[#allocation70_spill] sm:$0xff] %v9474_v33 }
 0x129   : > { %v9460_v37 = vsel %vm1501_vm5, %v1515_v9, %v1517_v55  ;;  %10949 = vst [vmem:[#allocation69_spill] sm:$0xff] %v9470_v61 }
 0x12a   : > { %v9463_v60 = vsel %vm1501_vm5, %v1517_v55, %v1519_v15 }
 0x12d   : > { %7069 = vmatmul.mubr.msk.bf16.gmra.mrb[8].mxu1 %vm720_vm2, %v9438_v34 }
 0x12e   : > { %7072 = vmatprep.mubr.msk.bf16.mxu1 %vm720_vm2, %v9441_v23 }
 0x12f   : > { %7333 = vmatmul.mubr.msk.bf16.gmra.mrb[8].mxu0 %vm720_vm2, %v9158_v16  ;;  %v1521_v16 = vrot.slane %v9470_v61, 1  ;;  %v9492_v61 = vld [vmem:[%s8515_s10 + $0x60] sm:$0xff]  }
 0x130   : > { %7336 = vmatprep.mubr.msk.bf16.mxu0 %vm720_vm2, %v9169_v29  ;;  %v1523_v29 = vrot.slane %v9474_v33, 1  ;;  %v1525_v33 = vrot.slane %v9492_v61, 1 }
 0x131   : > { %v9482_v9 = vsel %vm1501_vm5, %v1519_v15, %v1521_v16 }
 0x132   : > { %v9485_v55 = vsel %vm1501_vm5, %v1521_v16, %v1523_v29  ;;  %v1531_v16 = vrot.slane %v8733_v52, 1  ;;  %v1535_v52 = vrot.slane %v8790_v2, 1  ;;  %v1539_v2 = vrot.slane %v8824_v4, 1 }
 0x133   : > { %v1543_v4 = vrot.slane %v8858_v11, 1  ;;  %v1547_v11 = vrot.slane %v8892_v32, 1  ;;  %v1551_v32 = vrot.slane %v8928_v35, 1  ;;  %v1555_v35 = vrot.slane %v8962_v19, 1 }
 0x134   : > { %v1559_v19 = vrot.slane %v8996_v63, 1  ;;  %v1561_v63 = vrot.slane %v9004_v43, 1 }
 0x135   : > { %7073 = vmatmul.mubr.msk.bf16.gmra.mrb[12].mxu1 %vm720_vm2, %v9460_v37 }
 0x136   : > { %7076 = vmatprep.mubr.msk.bf16.mxu1 %vm720_vm2, %v9463_v60 }
 0x137   : > { %7337 = vmatmul.mubr.msk.bf16.gmra.mrb[12].mxu0 %vm720_vm2, %v9174_v38  ;;  %v1527_v38 = vrot.slane %v8692_v3, 1  ;;  %v1529_v3 = vrot.slane %v8704_v18, 1  ;;  %v1533_v18 = vrot.slane %v8755_v10, 1  ;;  %v1537_v10 = vrot.slane %v8798_v25, 1 }
 0x138   : > { %7340 = vmatprep.mubr.msk.bf16.mxu0 %vm720_vm2, %v9185_v47  ;;  %v9501_v47 = vsel %vm1501_vm5, %v1523_v29, %v1525_v33  ;;  %v1541_v25 = vrot.slane %v8832_v0, 1  ;;  %v1545_v0 = vrot.slane %v8866_v57, 1  ;;  %v1549_v57 = vrot.slane %v8902_v1, 1 }
 0x139   : > { %v9504_v15 = vsel %vm1501_vm5, %v1525_v33, %v1527_v38  ;;  %v1553_v1 = vrot.slane %v8936_v42, 1  ;;  %v1557_v42 = vrot.slane %v8970_v30, 1  ;;  %v9652_v29 = vsel %vm1501_vm5, %v1559_v19, %v1561_v63 }
 0x13b   : > { %v9633_v33 = vsel %vm1501_vm5, %v1557_v42, %v1559_v19 }
 0x13d   : > { %7077 = vmatmul.mubr.msk.bf16.gmra.mrb[16].mxu1 %vm720_vm2, %v9482_v9 }
 0x13e   : > { %7080 = vmatprep.mubr.msk.bf16.mxu1 %vm720_vm2, %v9485_v55 }
 0x13f   : > { %7341 = vmatmul.mubr.msk.bf16.gmra.mrb[16].mxu0 %vm720_vm2, %v9190_v59  ;;  %v9517_v59 = vsel %vm1501_vm5, %v1527_v38, %v1529_v3  ;;  %v3883_v38 = vrot.slane %v8532_v13, 3 }
 0x140   : > { %7344 = vmatprep.mubr.msk.bf16.mxu0 %vm720_vm2, %v9201_v17  ;;  %v9520_v17 = vsel %vm1501_vm5, %v1529_v3, %v1531_v16  ;;  %v10951_v3 = vld [vmem:[#allocation3_spill] sm:$0xff] }
 0x145   : > { %7081 = vmatmul.mubr.msk.bf16.gmra.mrb[20].mxu1 %vm720_vm2, %v9501_v47 }
 0x146   : > { %7084 = vmatprep.mubr.msk.bf16.mxu1 %vm720_vm2, %v9504_v15 }
 0x147   : > { %7345 = vmatmul.mubr.msk.bf16.gmra.mrb[20].mxu0 %vm720_vm2, %v9206_v21  ;;  %v9533_v21 = vsel %vm1501_vm5, %v1531_v16, %v1533_v18  ;;  %v3885_v16 = vrot.slane %v10951_v3, 2  ;;  %v10960_v3 = vld [vmem:[#allocation10_spill] sm:$0xff] }
 0x148   : > { %7348 = vmatprep.mubr.msk.bf16.mxu0 %vm720_vm2, %v9217_v36  ;;  %v9536_v36 = vsel %vm1501_vm5, %v1533_v18, %v1535_v52  ;;  %v10952_v18 = vld [vmem:[#allocation2_spill] sm:$0xff] }
 0x14d   : > { %7085 = vmatmul.mubr.msk.bf16.gmra.mrb[24].mxu1 %vm720_vm2, %v9517_v59 }
 0x14e   : > { %7088 = vmatprep.mubr.msk.bf16.mxu1 %vm720_vm2, %v9520_v17 }
 0x14f   : > { %7349 = vmatmul.mubr.msk.bf16.gmra.mrb[24].mxu0 %vm720_vm2, %v9222_v44  ;;  %v9549_v44 = vsel %vm1501_vm5, %v1535_v52, %v1537_v10  ;;  %v3886_v52 = vrot.slane %v10952_v18, 3 }
 0x150   : > { %7352 = vmatprep.mubr.msk.bf16.mxu0 %vm720_vm2, %v9233_v56  ;;  %v9552_v56 = vsel %vm1501_vm5, %v1537_v10, %v1539_v2 }
 0x155   : > { %7089 = vmatmul.mubr.msk.bf16.gmra.mrb[28].mxu1 %vm720_vm2, %v9533_v21 }
 0x156   : > { %7092 = vmatprep.mubr.msk.bf16.mxu1 %vm720_vm2, %v9536_v36 }
 0x157   : > { %7353 = vmatmul.mubr.msk.bf16.gmra.mrb[28].mxu0 %vm720_vm2, %v9238_v48  ;;  %v9565_v48 = vsel %vm1501_vm5, %v1539_v2, %v1541_v25  ;;  %v3887_v2 = vor.u32 %v3886_v52, %v3885_v16  ;;  %v3902_v16 = vrot.slane %v10960_v3, 3  ;;  %v10961_v52 = vld [vmem:[#allocation13_spill] sm:$0xff]  ;;  %v10972_v3 = vld [vmem:[#allocation22_spill] sm:$0xff] }
 0x158   : > { %7356 = vmatprep.mubr.msk.bf16.mxu0 %vm720_vm2, %v9249_v51  ;;  %v9568_v51 = vsel %vm1501_vm5, %v1541_v25, %v1543_v4 }
 0x15d   : > { %7093 = vmatmul.mubr.msk.bf16.gmra.mrb[32].mxu1 %vm720_vm2, %v9549_v44 }
 0x15e   : > { %7096 = vmatprep.mubr.msk.bf16.mxu1 %vm720_vm2, %v9552_v56 }
 0x15f   : > { %7357 = vmatmul.mubr.msk.bf16.gmra.mrb[32].mxu0 %vm720_vm2, %v9254_v6  ;;  %v9581_v6 = vsel %vm1501_vm5, %v1543_v4, %v1545_v0  ;;  %v10954_v4 = vld [vmem:[#allocation4_spill] sm:$0xff] }
 0x160   : > { %7360 = vmatprep.mubr.msk.bf16.mxu0 %vm720_vm2, %v9265_v58  ;;  %v9584_v58 = vsel %vm1501_vm5, %v1545_v0, %v1547_v11  ;;  %v3890_v0 = vrot.slane %v10954_v4, 3 }
 0x165   : > { %7097 = vmatmul.mubr.msk.bf16.gmra.mrb[36].mxu1 %vm720_vm2, %v9565_v48 }
 0x166   : > { %7100 = vmatprep.mubr.msk.bf16.mxu1 %vm720_vm2, %v9568_v51 }
 0x167   : > { %7361 = vmatmul.mubr.msk.bf16.gmra.mrb[36].mxu0 %vm720_vm2, %v9270_v31  ;;  %v9597_v31 = vsel %vm1501_vm5, %v1547_v11, %v1549_v57  ;;  %v10955_v11 = vld [vmem:[#allocation7_spill] sm:$0xff] }
 0x168   : > { %7364 = vmatprep.mubr.msk.bf16.mxu0 %vm720_vm2, %v9281_v27  ;;  %v9600_v27 = vsel %vm1501_vm5, %v1549_v57, %v1551_v32  ;;  %v3893_v57 = vrot.slane %v10955_v11, 2 }
 0x16d   : > { %7101 = vmatmul.mubr.msk.bf16.gmra.mrb[40].mxu1 %vm720_vm2, %v9581_v6 }
 0x16e   : > { %7104 = vmatprep.mubr.msk.bf16.mxu1 %vm720_vm2, %v9584_v58 }
 0x16f   : > { %7365 = vmatmul.mubr.msk.bf16.gmra.mrb[40].mxu0 %vm720_vm2, %v9286_v45  ;;  %v9613_v45 = vsel %vm1501_vm5, %v1551_v32, %v1553_v1  ;;  %v10956_v32 = vld [vmem:[#allocation6_spill] sm:$0xff] }
 0x170   : > { %7368 = vmatprep.mubr.msk.bf16.mxu0 %vm720_vm2, %v9297_v46  ;;  %v9616_v46 = vsel %vm1501_vm5, %v1553_v1, %v1555_v35  ;;  %v3894_v1 = vrot.slane %v10956_v32, 3 }
 0x175   : > { %7105 = vmatmul.mubr.msk.bf16.gmra.mrb[44].mxu1 %vm720_vm2, %v9597_v31 }
 0x176   : > { %7108 = vmatprep.mubr.msk.bf16.mxu1 %vm720_vm2, %v9600_v27 }
 0x177   : > { %7369 = vmatmul.mubr.msk.bf16.gmra.mrb[44].mxu0 %vm720_vm2, %v9302_v53  ;;  %v9629_v53 = vsel %vm1501_vm5, %v1555_v35, %v1557_v42  ;;  %v3895_v42 = vor.u32 %v3894_v1, %v3893_v57  ;;  %v10967_v1 = vld [vmem:[#allocation19_spill] sm:$0xff] }
 0x178   : > { %7372 = vmatprep.mubr.msk.bf16.mxu0 %vm720_vm2, %v9313_v40  ;;  %v416_v40 = vld [vmem:[%s8760_s20 + $0xc] sm:$0xf] }
 0x179   : > { %v9638_v30 = vcombine.low %v9055_v49, %v416_v40  ;;  %v10957_v40 = vld [vmem:[#allocation9_spill] sm:$0xff] }
 0x17d   : > { %7109 = vmatmul.mubr.msk.bf16.gmra.mrb[48].mxu1 %vm720_vm2, %v9613_v45 }
 0x17e   : > { %7112 = vmatprep.mubr.msk.bf16.mxu1 %vm720_vm2, %v9616_v46 }
 0x17f   : > { %7373 = vmatmul.mubr.msk.bf16.gmra.mrb[48].mxu0 %vm720_vm2, %v9318_v7  ;;  %v9644_v7 = vrot.slane %v9033_v26, 1  ;;  %v1565_v26 = vrot.slane %v9074_v12, 1 }
 0x180   : > { %7376 = vmatprep.mubr.msk.bf16.mxu0 %vm720_vm2, %v9329_v50  ;;  %v3513_v50 = vrot.slane %v9638_v30, 2 }
 0x181   : > { %v9656_v49 = vsel %vm1501_vm5, %v1561_v63, %v9644_v7  ;;  %v3897_v63 = vrot.slane %v10957_v40, 2 }
 0x182   : > { %v3514_v43 = vsel %vm2989_vm4, %v9342_v62, %v3513_v50  ;;  %v1566_v62 = vsel %vm1501_vm5, %v9644_v7, %v1565_v26 }
 0x185   : > { %7113 = vmatmul.mubr.msk.bf16.gmra.mrb[52].mxu1 %vm720_vm2, %v9629_v53 }
 0x186   : > { %7116 = vmatprep.mubr.msk.bf16.mxu1 %vm720_vm2, %v9633_v33 }
 0x187   : > { %7377 = vmatmul.mubr.msk.bf16.gmra.mrb[52].mxu0 %vm720_vm2, %v9334_v54  ;;  %v9664_v54 = vld [vmem:[%s8760_s20 + $0x10] ss:$0 sps:$4 sm:$0xff]  }
 0x188   : > { %7380 = vmatprep.mubr.msk.bf16.mxu0 %vm720_vm2, %v9347_v39  ;;  %v3882_v39 = vrot.slane %v8535_v14, 2  ;;  %v3515_v12 = vrot.slane %v9664_v54, 2  ;;  %v10953_v14 = vld [vmem:[#allocation5_spill] sm:$0xff] }
 0x189   : > { %v3889_v25 = vrot.slane %v10953_v14, 2  ;;  %v10964_v14 = vld [vmem:[#allocation14_spill] sm:$0xff] }
 0x18a   : > { %v3884_v10 = vor.u32 %v3883_v38, %v3882_v39  ;;  %v3516_v13 = vsel %vm2989_vm4, %v3513_v50, %v3515_v12  ;;  %v10959_v39 = vld [vmem:[#allocation11_spill] sm:$0xff]  ;;  %v10962_v12 = vld [vmem:[#allocation12_spill] sm:$0xff] }
 0x18b   : > { %v3891_v35 = vor.u32 %v3890_v0, %v3889_v25  ;;  %v3901_v38 = vrot.slane %v10959_v39, 2  ;;  %v3910_v25 = vrot.slane %v10964_v14, 3  ;;  %v10971_v39 = vld [vmem:[#allocation23_spill] sm:$0xff] }
 0x18d   : > { %7117 = vmatmul.mubr.msk.bf16.gmra.mrb[56].mxu1 %vm720_vm2, %v9652_v29  ;;  %v3892_v19 = vsel %vm3881_vm6, %v3887_v2, %v3891_v35  ;;  %v3896_v26 = vsel %vm3881_vm6, %v3891_v35, %v3895_v42  ;;  %v3903_v18 = vor.u32 %v3902_v16, %v3901_v38  ;;  %v3917_v35 = vrot.slane %v10967_v1, 2 }
 0x18e   : > { %7120 = vmatprep.mubr.msk.bf16.mxu1 %vm720_vm2, %v9656_v49  ;;  %v3925_v38 = vrot.slane %v10971_v39, 2  ;;  %v3926_v16 = vrot.slane %v10972_v3, 3  ;;  %v10985_v39 = vld [vmem:[#allocation37_spill] sm:$0xff] }
 0x18f   : > { %7381 = vmatmul.mubr.msk.bf16.gmra.mrb[56].mxu0 %vm720_vm2, %v9353_v22  ;;  %v3888_v22 = vsel %vm3881_vm6, %v3884_v10, %v3887_v2  ;;  %v10963_v2 = vld [vmem:[#allocation15_spill] sm:$0xff] }
 0x190   : > { %7384 = vmatprep.mubr.msk.bf16.mxu0 %vm720_vm2, %v3514_v43  ;;  %v4640_v43 = vsel %vm817_vm0, %v9407_v28, 0 }
 0x195   : > { %7121 = vmatmul.mubr.msk.bf16.gmra.mrb[60].mxu1 %vm720_vm2, %v1566_v62  ;;  %v3906_v62 = vrot.slane %v10962_v12, 3 }
 0x196   : > { %7126 = vmatprep.mubr.msk.bf16.mxu1 %vm720_vm2, %v9384_v24  ;;  %v10958_v24 = vld [vmem:[#allocation8_spill] sm:$0xff] }
 0x197   : > { %7385 = vmatmul.mubr.msk.bf16.gmra.mrb[60].mxu0 %vm720_vm2, %v3516_v13  ;;  %v3898_v50 = vrot.slane %v10958_v24, 3  ;;  %v3909_v13 = vrot.slane %v10963_v2, 2  ;;  %v10969_v24 = vld [vmem:[#allocation21_spill] sm:$0xff]  ;;  %v10976_v2 = vld [vmem:[#allocation26_spill] sm:$0xff] }
 0x198   : > { %7390 = vmatprep.mubr.msk.bf16.mxu0 %vm720_vm2, %v3888_v22  ;;  %v10965_v22 = vld [vmem:[#allocation17_spill] sm:$0xff] }
 0x199   : > { %v3911_v4 = vor.u32 %v3910_v25, %v3909_v13  ;;  %v3913_v11 = vrot.slane %v10965_v22, 2  ;;  %v3934_v13 = vrot.slane %v10976_v2, 3  ;;  %v10991_v2 = vld [vmem:[#allocation43_spill] sm:$0xff] }
 0x19d   : > { %7127 = vmatmul.mubr.msk.bf16.vlgmr.msra.gmra.mrb[0].mxu1 %vm720_vm2, %v9387_v20  ;;  %v3899_v20 = vor.u32 %v3898_v50, %v3897_v63  ;;  %v3921_v50 = vrot.slane %v10969_v24, 2 }
 0x19e   : > { %7130 = vmatprep.mubr.msk.bf16.mxu1 %vm720_vm2, %v9414_v8  ;;  %v3905_v8 = vrot.slane %v10961_v52, 2 }
 0x19f   : > { %7391 = vmatmul.mubr.msk.bf16.vlgmr.msra.gmra.mrb[0].mxu0 %vm720_vm2, %v3892_v19  ;;  %v3900_v28 = vsel %vm3881_vm6, %v3895_v42, %v3899_v20  ;;  %v3904_v10 = vsel %vm3881_vm6, %v3899_v20, %v3903_v18  ;;  %v10968_v42 = vld [vmem:[#allocation18_spill] sm:$0xff]  ;;  %v3927_v20 = vor.u32 %v3926_v16, %v3925_v38  ;;  %v3953_v38 = vrot.slane %v10985_v39, 2 }
 0x1a0   : > { %7455 = vmatpush3.bf16.msra.mxu0 %v4640_v43  ;;  %7394 = vmatprep.mubr.msk.bf16.mxu0 %vm720_vm2, %v3896_v26  ;;  %v3918_v19 = vrot.slane %v10968_v42, 3  ;;  %v10981_v42 = vld [vmem:[#allocation33_spill] sm:$0xff] }
 0x1a2   : > { %v3919_v40 = vor.u32 %v3918_v19, %v3917_v35  ;;  %v3945_v19 = vrot.slane %v10981_v42, 2 }
 0x1a5   : > { %7131 = vmatmul.mubr.msk.bf16.gmra.mrb[4].mxu1 %vm720_vm2, %v9419_v41  ;;  %v3907_v41 = vor.u32 %v3906_v62, %v3905_v8  ;;  %v10975_v62 = vld [vmem:[#allocation27_spill] sm:$0xff] }
 0x1a6   : > { %7134 = vmatprep.mubr.msk.bf16.mxu1 %vm720_vm2, %v9438_v34  ;;  %v10966_v34 = vld [vmem:[#allocation16_spill] sm:$0xff] }
 0x1a7   : > { %7395 = vmatmul.mubr.msk.bf16.gmra.mrb[4].mxu0 %vm720_vm2, %v3900_v28  ;;  %v3908_v0 = vsel %vm3881_vm6, %v3903_v18, %v3907_v41  ;;  %v3914_v57 = vrot.slane %v10966_v34, 3  ;;  %v3912_v32 = vsel %vm3881_vm6, %v3907_v41, %v3911_v4  ;;  %v10973_v28 = vld [vmem:[#allocation25_spill] sm:$0xff] }
 0x1a8   : > { %7398 = vmatprep.mubr.msk.bf16.mxu0 %vm720_vm2, %v3904_v10  ;;  %v3929_v52 = vrot.slane %v10973_v28, 2  ;;  %v3933_v10 = vrot.slane %v10975_v62, 2  ;;  %v10977_v41 = vld [vmem:[#allocation29_spill] sm:$0xff] }
 0x1aa   : > { %v3935_v14 = vor.u32 %v3934_v13, %v3933_v10  ;;  %v3965_v13 = vrot.slane %v10991_v2, 2 }
 0x1ad   : > { %7135 = vmatmul.mubr.msk.bf16.gmra.mrb[8].mxu1 %vm720_vm2, %v9441_v23  ;;  %v3915_v23 = vor.u32 %v3914_v57, %v3913_v11  ;;  %v10979_v11 = vld [vmem:[#allocation31_spill] sm:$0xff]  ;;  %v10980_v57 = vld [vmem:[#allocation30_spill] sm:$0xff] }
 0x1ae   : > { %7138 = vmatprep.mubr.msk.bf16.mxu1 %vm720_vm2, %v9460_v37  ;;  %v10970_v37 = vld [vmem:[#allocation20_spill] sm:$0xff]  ;;  %v3941_v34 = vrot.slane %v10979_v11, 2  ;;  %v10995_v11 = vld [vmem:[#allocation47_spill] sm:$0xff] }
 0x1af   : > { %7399 = vmatmul.mubr.msk.bf16.gmra.mrb[8].mxu0 %vm720_vm2, %v3908_v0  ;;  %v3916_v63 = vsel %vm3881_vm6, %v3911_v4, %v3915_v23  ;;  %v3922_v43 = vrot.slane %v10970_v37, 3  ;;  %v3920_v26 = vsel %vm3881_vm6, %v3915_v23, %v3919_v40  ;;  %v3937_v4 = vrot.slane %v10977_v41, 2 }
 0x1b0   : > { %7402 = vmatprep.mubr.msk.bf16.mxu0 %vm720_vm2, %v3912_v32  ;;  %v3942_v32 = vrot.slane %v10980_v57, 3  ;;  %v10996_v57 = vld [vmem:[#allocation46_spill] sm:$0xff] }
 0x1b2   : > { %v3943_v1 = vor.u32 %v3942_v32, %v3941_v34  ;;  %v3973_v34 = vrot.slane %v10995_v11, 2  ;;  %v3974_v32 = vrot.slane %v10996_v57, 3  ;;  %v4015_v11 = vshrl.u32 %v9664_v54, 16 }
 0x1b5   : > { %7139 = vmatmul.mubr.msk.bf16.gmra.mrb[12].mxu1 %vm720_vm2, %v9463_v60  ;;  %v3923_v60 = vor.u32 %v3922_v43, %v3921_v50  ;;  %v10984_v50 = vld [vmem:[#allocation34_spill] sm:$0xff] }
 0x1b6   : > { %7142 = vmatprep.mubr.msk.bf16.mxu1 %vm720_vm2, %v9482_v9  ;;  %v10974_v9 = vld [vmem:[#allocation24_spill] sm:$0xff]  ;;  %v3950_v37 = vrot.slane %v10984_v50, 3 }
 0x1b7   : > { %7403 = vmatmul.mubr.msk.bf16.gmra.mrb[12].mxu0 %vm720_vm2, %v3916_v63  ;;  %v3924_v18 = vsel %vm3881_vm6, %v3919_v40, %v3923_v60  ;;  %v3930_v8 = vrot.slane %v10974_v9, 3  ;;  %v3928_v12 = vsel %vm3881_vm6, %v3923_v60, %v3927_v20  ;;  %v10983_v63 = vld [vmem:[#allocation35_spill] sm:$0xff] }
 0x1b8   : > { %7406 = vmatprep.mubr.msk.bf16.mxu0 %vm720_vm2, %v3920_v26  ;;  %v3949_v24 = vrot.slane %v10983_v63, 2  ;;  %v10987_v60 = vld [vmem:[#allocation39_spill] sm:$0xff]  ;;  %v11000_v63 = vld [vmem:[#allocation50_spill] sm:$0xff] }
 0x1ba   : > { %v3951_v43 = vor.u32 %v3950_v37, %v3949_v24  ;;  %v3982_v24 = vrot.slane %v11000_v63, 3 }
 0x1bd   : > { %7143 = vmatmul.mubr.msk.bf16.gmra.mrb[16].mxu1 %vm720_vm2, %v9485_v55  ;;  %v3931_v55 = vor.u32 %v3930_v8, %v3929_v52  ;;  %v10989_v8 = vld [vmem:[#allocation41_spill] sm:$0xff] }
 0x1be   : > { %7146 = vmatprep.mubr.msk.bf16.mxu1 %vm720_vm2, %v9501_v47  ;;  %v10978_v47 = vld [vmem:[#allocation28_spill] sm:$0xff] }
 0x1bf   : > { %7407 = vmatmul.mubr.msk.bf16.gmra.mrb[16].mxu0 %vm720_vm2, %v3924_v18  ;;  %v3932_v25 = vsel %vm3881_vm6, %v3927_v20, %v3931_v55  ;;  %v3938_v0 = vrot.slane %v10978_v47, 3  ;;  %v3936_v22 = vsel %vm3881_vm6, %v3931_v55, %v3935_v14  ;;  %v3957_v20 = vrot.slane %v10987_v60, 2  ;;  %v10988_v18 = vld [vmem:[#allocation38_spill] sm:$0xff] }
 0x1c0   : > { %7410 = vmatprep.mubr.msk.bf16.mxu0 %vm720_vm2, %v3928_v12  ;;  %v3958_v28 = vrot.slane %v10988_v18, 3  ;;  %v3961_v12 = vrot.slane %v10989_v8, 2  ;;  %v10992_v55 = vld [vmem:[#allocation42_spill] sm:$0xff]  ;;  %v11005_v18 = vld [vmem:[#allocation57_spill] sm:$0xff]  ;;  %v11007_v8 = vld [vmem:[#allocation60_spill] sm:$0xff] }
 0x1c2   : > { %v3959_v52 = vor.u32 %v3958_v28, %v3957_v20  ;;  %v8153_v20 = vld [vmem:[%s10806_s4] sm:$0x3f]   ;;  %v3993_v28 = vrot.slane %v11005_v18, 2 }
 0x1c3   : > { %8107 = vmatprep.subr.msk.bf16.mxu1 %vm2989_vm4, %v8153_v20 }
 0x1c5   : > { %7147 = vmatmul.mubr.msk.bf16.gmra.mrb[20].mxu1 %vm720_vm2, %v9504_v15  ;;  %v3939_v15 = vor.u32 %v3938_v0, %v3937_v4  ;;  %v10993_v4 = vld [vmem:[#allocation45_spill] sm:$0xff] }
 0x1c6   : > { %7150 = vmatprep.mubr.msk.bf16.mxu1 %vm720_vm2, %v9517_v59  ;;  %v10982_v59 = vld [vmem:[#allocation32_spill] sm:$0xff]  ;;  %v3969_v47 = vrot.slane %v10993_v4, 2 }
 0x1c7   : > { %7411 = vmatmul.mubr.msk.bf16.gmra.mrb[20].mxu0 %vm720_vm2, %v3932_v25  ;;  %v3940_v35 = vsel %vm3881_vm6, %v3935_v14, %v3939_v15  ;;  %v3946_v23 = vrot.slane %v10982_v59, 3  ;;  %v3944_v40 = vsel %vm3881_vm6, %v3939_v15, %v3943_v1  ;;  %v3966_v14 = vrot.slane %v10992_v55, 3 }
 0x1c8   : > { %7414 = vmatprep.mubr.msk.bf16.mxu0 %vm720_vm2, %v3936_v22  ;;  %v3975_v15 = vor.u32 %v3974_v32, %v3973_v34  ;;  %v4009_v55 = vshll.u32 %v9638_v30, 16  ;;  %v4018_v34 = vshll.u32 %v9664_v54, 16 }
 0x1c9   : > { %v3967_v25 = vor.u32 %v3966_v14, %v3965_v13  ;;  %v4006_v13 = vshrl.u32 %v9638_v30, 16  ;;  %v11009_v14 = vld [vmem:[#allocation58_spill] sm:$0xff] }
 0x1cd   : > { %7151 = vmatmul.mubr.msk.bf16.gmra.mrb[24].mxu1 %vm720_vm2, %v9520_v17  ;;  %v3947_v17 = vor.u32 %v3946_v23, %v3945_v19  ;;  %v10999_v23 = vld [vmem:[#allocation51_spill] sm:$0xff] }
 0x1ce   : > { %7154 = vmatprep.mubr.msk.bf16.mxu1 %vm720_vm2, %v9533_v21  ;;  %v10986_v21 = vld [vmem:[#allocation36_spill] sm:$0xff] }
 0x1cf   : > { %7415 = vmatmul.mubr.msk.bf16.gmra.mrb[24].mxu0 %vm720_vm2, %v3940_v35  ;;  %v3948_v26 = vsel %vm3881_vm6, %v3943_v1, %v3947_v17  ;;  %v3954_v3 = vrot.slane %v10986_v21, 3  ;;  %v3952_v16 = vsel %vm3881_vm6, %v3947_v17, %v3951_v43  ;;  %v10997_v35 = vld [vmem:[#allocation49_spill] sm:$0xff] }
 0x1d0   : > { %7418 = vmatprep.mubr.msk.bf16.mxu0 %vm720_vm2, %v3944_v40  ;;  %v3977_v42 = vrot.slane %v10997_v35, 2  ;;  %v3981_v40 = vrot.slane %v10999_v23, 2  ;;  %v11001_v17 = vld [vmem:[#allocation53_spill] sm:$0xff] }
 0x1d1   : > { %v11012_v35 = vld [vmem:[#allocation61_spill] sm:$0xff] }
 0x1d2   : > { %v3983_v50 = vor.u32 %v3982_v24, %v3981_v40  ;;  %v4481_v24 = vrot.slane %v9397_v5, 3  ;;  %v11018_v5 = vld [vmem:[#allocation67_spill] sm:$0xff] }
 0x1d5   : > { %7155 = vmatmul.mubr.msk.bf16.gmra.mrb[28].mxu1 %vm720_vm2, %v9536_v36  ;;  %v3955_v36 = vor.u32 %v3954_v3, %v3953_v38  ;;  %v11003_v38 = vld [vmem:[#allocation55_spill] sm:$0xff]  ;;  %v11004_v3 = vld [vmem:[#allocation54_spill] sm:$0xff] }
 0x1d6   : > { %7158 = vmatprep.mubr.msk.bf16.mxu1 %vm720_vm2, %v9549_v44  ;;  %v10990_v44 = vld [vmem:[#allocation40_spill] sm:$0xff]  ;;  %v3989_v21 = vrot.slane %v11003_v38, 2 }
 0x1d7   : > { %7419 = vmatmul.mubr.msk.bf16.gmra.mrb[28].mxu0 %vm720_vm2, %v3948_v26  ;;  %v3956_v9 = vsel %vm3881_vm6, %v3951_v43, %v3955_v36  ;;  %v3962_v62 = vrot.slane %v10990_v44, 3  ;;  %v3960_v10 = vsel %vm3881_vm6, %v3955_v36, %v3959_v52  ;;  %v3985_v43 = vrot.slane %v11001_v17, 2  ;;  %v11006_v36 = vld [vmem:[#allocation56_spill] sm:$0xff]  ;;  %v11008_v44 = vld [vmem:[#allocation59_spill] sm:$0xff] }
 0x1d8   : > { %7422 = vmatprep.mubr.msk.bf16.mxu0 %vm720_vm2, %v3952_v16  ;;  %v3990_v16 = vrot.slane %v11004_v3, 3  ;;  %v4489_v3 = vrot.slane %v11018_v5, 3 }
 0x1da   : > { %v3991_v60 = vor.u32 %v3990_v16, %v3989_v21  ;;  %v11019_v16 = vld [vmem:[#allocation68_spill] sm:$0xff] }
 0x1dd   : > { %7159 = vmatmul.mubr.msk.bf16.gmra.mrb[32].mxu1 %vm720_vm2, %v9552_v56  ;;  %v3963_v56 = vor.u32 %v3962_v62, %v3961_v12  ;;  %v3997_v12 = vrot.slane %v11007_v8, 2  ;;  %v3998_v62 = vrot.slane %v11008_v44, 3  ;;  %v4497_v8 = vrot.slane %v9492_v61, 3 }
 0x1de   : > { %7162 = vmatprep.mubr.msk.bf16.mxu1 %vm720_vm2, %v9565_v48  ;;  %v10994_v48 = vld [vmem:[#allocation44_spill] sm:$0xff] }
 0x1df   : > { %7423 = vmatmul.mubr.msk.bf16.gmra.mrb[32].mxu0 %vm720_vm2, %v3956_v9  ;;  %v3964_v41 = vsel %vm3881_vm6, %v3959_v52, %v3963_v56  ;;  %v3970_v0 = vrot.slane %v10994_v48, 3  ;;  %v3968_v22 = vsel %vm3881_vm6, %v3963_v56, %v3967_v25  ;;  %v3994_v52 = vrot.slane %v11006_v36, 3 }
 0x1e0   : > { %7426 = vmatprep.mubr.msk.bf16.mxu0 %vm720_vm2, %v3960_v10  ;;  %v3999_v2 = vor.u32 %v3998_v62, %v3997_v12  ;;  %v11010_v56 = vshrl.u32 %v11009_v14, 16  ;;  %v4008_v48 = vrot.slane %v4006_v13, 2  ;;  %v8423_v12 = vld [vmem:[%s8515_s10 + $0x68] sm:$0xff]   ;;  %v8425_v13 = vld [vmem:[%s8515_s10 + $0x78] sm:$0xff]  }
 0x1e1   : > { %v3995_v10 = vor.u32 %v3994_v52, %v3993_v28  ;;  %v11021_v28 = vld [vmem:[#allocation70_spill] sm:$0xff]  ;;  %v4499_v44 = vrot.slane %v8423_v12, 3 }
 0x1e2   : > { %v4495_v36 = vrot.slane %v11021_v28, 3 }
 0x1e4   : > { %v4498_v62 = vsel %vm4477_vm7, %v4495_v36, %v4497_v8 }
 0x1e5   : > { %7163 = vmatmul.mubr.msk.bf16.gmra.mrb[36].mxu1 %vm720_vm2, %v9568_v51  ;;  %v3971_v51 = vor.u32 %v3970_v0, %v3969_v47  ;;  %v4000_v47 = vsel %vm3881_vm6, %v3995_v10, %v3999_v2  ;;  %v4011_v0 = vrot.slane %v4009_v55, 3  ;;  %v4503_v55 = vrot.slane %v8425_v13, 3 }
 0x1e6   : > { %7166 = vmatprep.mubr.msk.bf16.mxu1 %vm720_vm2, %v9581_v6  ;;  %v10998_v6 = vld [vmem:[#allocation48_spill] sm:$0xff] }
 0x1e7   : > { %7427 = vmatmul.mubr.msk.bf16.gmra.mrb[36].mxu0 %vm720_vm2, %v3964_v41  ;;  %v3972_v1 = vsel %vm3881_vm6, %v3967_v25, %v3971_v51  ;;  %v3978_v19 = vrot.slane %v10998_v6, 3  ;;  %v3976_v59 = vsel %vm3881_vm6, %v3971_v51, %v3975_v15  ;;  %v4001_v25 = vrot.slane %v11010_v56, 2  ;;  %v8426_v56 = vld [vmem:[%s8515_s10 + $0x80] sm:$0xff]  }
 0x1e8   : > { %7430 = vmatprep.mubr.msk.bf16.mxu0 %vm720_vm2, %v3968_v22  ;;  %v11011_v41 = vshll.u32 %v11009_v14, 16  ;;  %v2025_v22 = vrot.slane %v11009_v14, 1  ;;  %v4012_v57 = vor.u32 %v4011_v0, %v4008_v48  ;;  %v4017_v51 = vrot.slane %v4015_v11, 2  ;;  %v8428_v0 = vld [vmem:[%s8515_s10 + $0x90] sm:$0xff]  }
 0x1ea   : > { %v4002_v4 = vrot.slane %v11011_v41, 3  ;;  %v2026_v32 = vsel %vm1501_vm5, %v9644_v7, %v2025_v22  ;;  %v8427_v41 = vld [vmem:[%s8515_s10 + $0x88] sm:$0xff]  }
 0x1ed   : > { %7167 = vmatmul.mubr.msk.bf16.gmra.mrb[40].mxu1 %vm720_vm2, %v9584_v58  ;;  %v3979_v58 = vor.u32 %v3978_v19, %v3977_v42  ;;  %v2027_v42 = vrot.slane %v11012_v35, 1  ;;  %v11013_v19 = vld [vmem:[#allocation62_spill] sm:$0xff] }
 0x1ee   : > { %7170 = vmatprep.mubr.msk.bf16.mxu1 %vm720_vm2, %v9597_v31  ;;  %v11002_v31 = vld [vmem:[#allocation52_spill] sm:$0xff] }
 0x1ef   : > { %7431 = vmatmul.mubr.msk.bf16.gmra.mrb[40].mxu0 %vm720_vm2, %v3972_v1  ;;  %v3980_v37 = vsel %vm3881_vm6, %v3975_v15, %v3979_v58  ;;  %v3986_v26 = vrot.slane %v11002_v31, 3  ;;  %v3984_v39 = vsel %vm3881_vm6, %v3979_v58, %v3983_v50  ;;  %v4020_v15 = vrot.slane %v4018_v34, 3  ;;  %v11015_v58 = vld [vmem:[#allocation64_spill] sm:$0xff] }
 0x1f0   : > { %7434 = vmatprep.mubr.msk.bf16.mxu0 %vm720_vm2, %v3976_v59  ;;  %v2028_v7 = vsel %vm1501_vm5, %v2025_v22, %v2027_v42  ;;  %v4478_v59 = vrot.slane %v11013_v19, 3  ;;  %v4509_v22 = vrot.slane %v8428_v0, 3  ;;  %v8432_v42 = vld [vmem:[%s8515_s10 + $0xb0] sm:$0xff]  }
 0x1f1   : > { %v4021_v6 = vor.u32 %v4020_v15, %v4017_v51  ;;  %v8431_v51 = vld [vmem:[%s8515_s10 + $0xa8] sm:$0xff]  }
 0x1f2   : > { %v4515_v15 = vrot.slane %v8431_v51, 3 }
 0x1f3   : > { %v4022_v40 = vsel %vm3881_vm6, %v4012_v57, %v4021_v6  ;;  %v4517_v6 = vrot.slane %v8432_v42, 3 }
 0x1f5   : > { %7171 = vmatmul.mubr.msk.bf16.gmra.mrb[44].mxu1 %vm720_vm2, %v9600_v27  ;;  %v3987_v27 = vor.u32 %v3986_v26, %v3985_v43  ;;  %v11016_v43 = vld [vmem:[#allocation65_spill] sm:$0xff]  ;;  %v11017_v26 = vld [vmem:[#allocation66_spill] sm:$0xff] }
 0x1f6   : > { %7174 = vmatprep.mubr.msk.bf16.mxu1 %vm720_vm2, %v9613_v45  ;;  %v4485_v31 = vrot.slane %v11016_v43, 3  ;;  %v8436_v43 = vld [vmem:[%s8515_s10 + $0xd0] sm:$0xff]  }
 0x1f7   : > { %7435 = vmatmul.mubr.msk.bf16.gmra.mrb[44].mxu0 %vm720_vm2, %v3980_v37  ;;  %v3988_v45 = vsel %vm3881_vm6, %v3983_v50, %v3987_v27  ;;  %v3992_v9 = vsel %vm3881_vm6, %v3987_v27, %v3991_v60  ;;  %v4483_v50 = vrot.slane %v11015_v58, 3  ;;  %v4491_v27 = vrot.slane %v11019_v16, 3 }
 0x1f8   : > { %7438 = vmatprep.mubr.msk.bf16.mxu0 %vm720_vm2, %v3984_v39  ;;  %v4487_v39 = vrot.slane %v11017_v26, 3 }
 0x1f9   : > { %v4484_v17 = vsel %vm4477_vm7, %v4481_v24, %v4483_v50  ;;  %v4486_v38 = vsel %vm4477_vm7, %v4483_v50, %v4485_v31 }
 0x1fa   : > { %v4488_v21 = vsel %vm4477_vm7, %v4485_v31, %v4487_v39  ;;  %v4525_v31 = vrot.slane %v8436_v43, 3 }
 0x1fd   : > { %7175 = vmatmul.mubr.msk.bf16.gmra.mrb[48].mxu1 %vm720_vm2, %v9616_v46  ;;  %v5275_v46 = vsel %vm2989_vm4, %v8153_v20, 0  ;;  %v4492_v20 = vsel %vm4477_vm7, %v4489_v3, %v4491_v27 }
 0x1fe   : > { %7178 = vmatprep.mubr.msk.bf16.mxu1 %vm720_vm2, %v9629_v53  ;;  %7521 = vmatpush3.bf16.msra.mxu1 %v5275_v46  ;;  %v3996_v53 = vsel %vm3881_vm6, %v3991_v60, %v3995_v10  ;;  %v4490_v60 = vsel %vm4477_vm7, %v4487_v39, %v4489_v3  ;;  %v4500_v46 = vsel %vm4477_vm7, %v4497_v8, %v4499_v44  ;;  %v8424_v10 = vld [vmem:[%s8515_s10 + $0x70] sm:$0xff]   ;;  %v8437_v39 = vld [vmem:[%s8515_s10 + $0xd8] sm:$0xff]  }
 0x1ff   : > { %7439 = vmatmul.mubr.msk.bf16.gmra.mrb[48].mxu0 %vm720_vm2, %v3988_v45  ;;  %v11020_v45 = vld [vmem:[#allocation69_spill] sm:$0xff] }
 0x200   : > { %7442 = vmatprep.mubr.msk.bf16.mxu0 %vm720_vm2, %v3992_v9  ;;  %v4493_v18 = vrot.slane %v11020_v45, 3 }
 0x202   : > { %v4494_v52 = vsel %vm4477_vm7, %v4491_v27, %v4493_v18  ;;  %v4496_v9 = vsel %vm4477_vm7, %v4493_v18, %v4495_v36  ;;  %v8439_v18 = vld [vmem:[%s8515_s10 + $0xe8] sm:$0xff]  }
 0x203   : > { %v4531_v28 = vrot.slane %v8439_v18, 3 }
 0x205   : > { %7179 = vmatmul.mubr.msk.bf16.gmra.mrb[52].mxu1 %vm720_vm2, %v9633_v33  ;;  %v4003_v33 = vor.u32 %v4002_v4, %v4001_v25  ;;  %v4505_v25 = vrot.slane %v8426_v56, 3  ;;  %v4507_v4 = vrot.slane %v8427_v41, 3 }
 0x206   : > { %7182 = vmatprep.mubr.msk.bf16.mxu1 %vm720_vm2, %v9652_v29 }
 0x207   : > { %7443 = vmatmul.mubr.msk.bf16.gmra.mrb[52].mxu0 %vm720_vm2, %v3996_v53  ;;  %v4004_v29 = vsel %vm3881_vm6, %v3999_v2, %v4003_v33  ;;  %v4013_v1 = vsel %vm3881_vm6, %v4003_v33, %v4012_v57  ;;  %v4501_v2 = vrot.slane %v8424_v10, 3  ;;  %v4508_v48 = vsel %vm4477_vm7, %v4505_v25, %v4507_v4  ;;  %v8429_v33 = vld [vmem:[%s8515_s10 + $0x98] sm:$0xff]  }
 0x208   : > { %7446 = vmatprep.mubr.msk.bf16.mxu0 %vm720_vm2, %v4000_v47  ;;  %v4506_v47 = vsel %vm4477_vm7, %v4503_v55, %v4505_v25  ;;  %v4511_v11 = vrot.slane %v8429_v33, 3  ;;  %v4510_v34 = vsel %vm4477_vm7, %v4507_v4, %v4509_v22  ;;  %v8441_v10 = vld [vmem:[%s8515_s10 + $0xf8] sm:$0xff]   ;;  %v4537_v25 = vrot.slane %v11009_v14, 3 }
 0x209   : > { %v4502_v53 = vsel %vm4477_vm7, %v4499_v44, %v4501_v2  ;;  %v4504_v61 = vsel %vm4477_vm7, %v4501_v2, %v4503_v55  ;;  %v8440_v44 = vld [vmem:[%s8515_s10 + $0xf0] sm:$0xff]   ;;  %v4535_v2 = vrot.slane %v8441_v10, 3  ;;  %v4539_v4 = vrot.slane %v9638_v30, 3 }
 0x20a   : > { %v4512_v57 = vsel %vm4477_vm7, %v4509_v22, %v4511_v11  ;;  %v4541_v14 = vrot.slane %v9664_v54, 3 }
 0x20b   : > { %v4540_v0 = vsel %vm4477_vm7, %v4537_v25, %v4539_v4 }
 0x20c   : > { %v4542_v30 = vsel %vm4477_vm7, %v4539_v4, %v4541_v14 }
 0x20d   : > { %7183 = vmatmul.mubr.msk.bf16.gmra.mrb[56].mxu1 %vm720_vm2, %v9656_v49  ;;  %v11014_v49 = vld [vmem:[#allocation63_spill] sm:$0xff] }
 0x20e   : > { %7186 = vmatprep.mubr.msk.bf16.mxu1 %vm720_vm2, %v2026_v32  ;;  %v4479_v23 = vrot.slane %v11014_v49, 3  ;;  %v8430_v32 = vld [vmem:[%s8515_s10 + $0xa0] sm:$0xff]  }
 0x20f   : > { %7447 = vmatmul.mubr.msk.bf16.gmra.mrb[56].mxu0 %vm720_vm2, %v4004_v29  ;;  %v4513_v29 = vrot.slane %v8430_v32, 3 }
 0x210   : > { %7450 = vmatprep.mubr.msk.bf16.mxu0 %vm720_vm2, %v4013_v1  ;;  %v4480_v63 = vsel %vm4477_vm7, %v4478_v59, %v4479_v23  ;;  %v4482_v37 = vsel %vm4477_vm7, %v4479_v23, %v4481_v24  ;;  %v4518_v59 = vsel %vm4477_vm7, %v4515_v15, %v4517_v6  ;;  %v8434_v23 = vld [vmem:[%s8515_s10 + $0xc0] sm:$0xff]  }
 0x211   : > { %v4514_v1 = vsel %vm4477_vm7, %v4511_v11, %v4513_v29  ;;  %v4516_v35 = vsel %vm4477_vm7, %v4513_v29, %v4515_v15 }
 0x215   : > { %7187 = vmatmul.mubr.msk.bf16.gmra.mrb[60].mxu1 %vm720_vm2, %v2028_v7  ;;  %v8433_v7 = vld [vmem:[%s8515_s10 + $0xb8] sm:$0xff]  }
 0x216   : > { %v4519_v19 = vrot.slane %v8433_v7, 3 }
 0x217   : > { %7451 = vmatmul.mubr.msk.bf16.gmra.mrb[60].mxu0 %vm720_vm2, %v4022_v40  ;;  %v4521_v40 = vrot.slane %v8434_v23, 3 }
 0x218   : > { %7456 = vmatprep.mubr.msk.bf16.mxu0 %vm720_vm2, %v4480_v63  ;;  %v4520_v49 = vsel %vm4477_vm7, %v4517_v6, %v4519_v19  ;;  %v8435_v63 = vld [vmem:[%s8515_s10 + $0xc8] sm:$0xff]  }
 0x219   : > { %v4523_v24 = vrot.slane %v8435_v63, 3  ;;  %v4522_v58 = vsel %vm4477_vm7, %v4519_v19, %v4521_v40 }
 0x21b   : > { %v4524_v50 = vsel %vm4477_vm7, %v4521_v40, %v4523_v24  ;;  %v4526_v5 = vsel %vm4477_vm7, %v4523_v24, %v4525_v31 }
 0x21f   : > { %7457 = vmatmul.mubr.msk.bf16.vlgmr.msra.gmra.mrb[0].mxu0 %vm720_vm2, %v4482_v37 }
 0x220   : > { %7460 = vmatprep.mubr.msk.bf16.mxu0 %vm720_vm2, %v4484_v17 }
 0x227   : > { %7461 = vmatmul.mubr.msk.bf16.gmra.mrb[4].mxu0 %vm720_vm2, %v4486_v38  ;;  %v4527_v38 = vrot.slane %v8437_v39, 3 }
 0x228   : > { %7464 = vmatprep.mubr.msk.bf16.mxu0 %vm720_vm2, %v4488_v21 }
 0x229   : > { %v4528_v3 = vsel %vm4477_vm7, %v4525_v31, %v4527_v38 }
 0x22f   : > { %7465 = vmatmul.mubr.msk.bf16.gmra.mrb[8].mxu0 %vm720_vm2, %v4490_v60  ;;  %v8438_v60 = vld [vmem:[%s8515_s10 + $0xe0] sm:$0xff]  }
 0x230   : > { %7468 = vmatprep.mubr.msk.bf16.mxu0 %vm720_vm2, %v4492_v20  ;;  %v4529_v20 = vrot.slane %v8438_v60, 3 }
 0x237   : > { %7469 = vmatmul.mubr.msk.bf16.gmra.mrb[12].mxu0 %vm720_vm2, %v4494_v52  ;;  %v4530_v52 = vsel %vm4477_vm7, %v4527_v38, %v4529_v20 }
 0x238   : > { %7472 = vmatprep.mubr.msk.bf16.mxu0 %vm720_vm2, %v4496_v9  ;;  %v4532_v9 = vsel %vm4477_vm7, %v4529_v20, %v4531_v28 }
 0x23f   : > { %7473 = vmatmul.mubr.msk.bf16.gmra.mrb[16].mxu0 %vm720_vm2, %v4498_v62  ;;  %v4533_v62 = vrot.slane %v8440_v44, 3 }
 0x240   : > { %7476 = vmatprep.mubr.msk.bf16.mxu0 %vm720_vm2, %v4500_v46 }
 0x241   : > { %v4534_v55 = vsel %vm4477_vm7, %v4531_v28, %v4533_v62 }
 0x247   : > { %7477 = vmatmul.mubr.msk.bf16.gmra.mrb[20].mxu0 %vm720_vm2, %v4502_v53  ;;  %v4536_v53 = vsel %vm4477_vm7, %v4533_v62, %v4535_v2 }
 0x248   : > { %7480 = vmatprep.mubr.msk.bf16.mxu0 %vm720_vm2, %v4504_v61 }
 0x24f   : > { %7481 = vmatmul.mubr.msk.bf16.gmra.mrb[24].mxu0 %vm720_vm2, %v4506_v47 }
 0x250   : > { %7484 = vmatprep.mubr.msk.bf16.mxu0 %vm720_vm2, %v4508_v48  ;;  %v4538_v48 = vsel %vm4477_vm7, %v4535_v2, %v4537_v25 }
 0x257   : > { %7485 = vmatmul.mubr.msk.bf16.gmra.mrb[28].mxu0 %vm720_vm2, %v4510_v34 }
 0x258   : > { %7488 = vmatprep.mubr.msk.bf16.mxu0 %vm720_vm2, %v4512_v57 }
 0x25f   : > { %7489 = vmatmul.mubr.msk.bf16.gmra.mrb[32].mxu0 %vm720_vm2, %v4514_v1 }
 0x260   : > { %7492 = vmatprep.mubr.msk.bf16.mxu0 %vm720_vm2, %v4516_v35 }
 0x267   : > { %7493 = vmatmul.mubr.msk.bf16.gmra.mrb[36].mxu0 %vm720_vm2, %v4518_v59 }
 0x268   : > { %7496 = vmatprep.mubr.msk.bf16.mxu0 %vm720_vm2, %v4520_v49 }
 0x26f   : > { %7497 = vmatmul.mubr.msk.bf16.gmra.mrb[40].mxu0 %vm720_vm2, %v4522_v58 }
 0x270   : > { %v9952_v37 = vpop.f32.mrb[0].mxu1  ;;  %7500 = vmatprep.mubr.msk.bf16.mxu0 %vm720_vm2, %v4524_v50 }
 0x271   : > { %v9954_v17 = vpop.f32.mrb[1].mxu1 }
 0x272   : > { %v9958_v26 = vpop.f32.mrb[2].mxu1 }
 0x273   : > { %v9961_v21 = vpop.f32.mrb[3].mxu1 }
 0x277   : > { %7501 = vmatmul.mubr.msk.bf16.gmra.mrb[44].mxu0 %vm720_vm2, %v4526_v5 }
 0x278   : > { %v9966_v16 = vpop.f32.mrb[4].mxu1  ;;  %7504 = vmatprep.mubr.msk.bf16.mxu0 %vm720_vm2, %v4528_v3 }
 0x279   : > { %v9968_v27 = vpop.f32.mrb[5].mxu1 }
 0x27a   : > { %v9972_v45 = vpop.f32.mrb[6].mxu1 }
 0x27b   : > { %v9975_v36 = vpop.f32.mrb[7].mxu1 }
 0x27f   : > { %7505 = vmatmul.mubr.msk.bf16.gmra.mrb[48].mxu0 %vm720_vm2, %v4530_v52 }
 0x280   : > { %v9980_v8 = vpop.f32.mrb[8].mxu1  ;;  %7508 = vmatprep.mubr.msk.bf16.mxu0 %vm720_vm2, %v4532_v9 }
 0x281   : > { %v9982_v12 = vpop.f32.mrb[9].mxu1 }
 0x282   : > { %v9986_v46 = vpop.f32.mrb[10].mxu1 }
 0x283   : > { %v9989_v13 = vpop.f32.mrb[11].mxu1 }
 0x287   : > { %7509 = vmatmul.mubr.msk.bf16.gmra.mrb[52].mxu0 %vm720_vm2, %v4534_v55 }
 0x288   : > { %v9994_v61 = vpop.f32.mrb[12].mxu1  ;;  %7512 = vmatprep.mubr.msk.bf16.mxu0 %vm720_vm2, %v4536_v53 }
 0x289   : > { %v9996_v56 = vpop.f32.mrb[13].mxu1 }
 0x28a   : > { %v10000_v41 = vpop.f32.mrb[14].mxu1 }
 0x28b   : > { %v10003_v47 = vpop.f32.mrb[15].mxu1 }
 0x28f   : > { %7513 = vmatmul.mubr.msk.bf16.gmra.mrb[56].mxu0 %vm720_vm2, %v4538_v48 }
 0x290   : > { %v10008_v22 = vpop.f32.mrb[16].mxu1  ;;  %7516 = vmatprep.mubr.msk.bf16.mxu0 %vm720_vm2, %v4540_v0 }
 0x291   : > { %v10010_v33 = vpop.f32.mrb[17].mxu1 }
 0x292   : > { %v10014_v11 = vpop.f32.mrb[18].mxu1 }
 0x293   : > { %v10016_v34 = vpop.f32.mrb[19].mxu1 }
 0x297   : > { %7517 = vmatmul.mubr.msk.bf16.gmra.mrb[60].mxu0 %vm720_vm2, %v4542_v30 }
 0x298   : > { %v10020_v57 = vpop.f32.mrb[20].mxu1 }
 0x299   : > { %v10022_v32 = vpop.f32.mrb[21].mxu1 }
 0x29a   : > { %v10024_v29 = vpop.f32.mrb[22].mxu1 }
 0x29b   : > { %v10026_v51 = vpop.f32.mrb[23].mxu1 }
 0x2a0   : > { %v10028_v15 = vpop.f32.mrb[24].mxu1 }
 0x2a1   : > { %v10030_v1 = vpop.f32.mrb[25].mxu1 }
 0x2a2   : > { %v10032_v54 = vpop.f32.mrb[26].mxu1 }
 0x2a3   : > { %v10034_v35 = vpop.f32.mrb[27].mxu1 }
 0x2a8   : > { %v10036_v42 = vpop.f32.mrb[28].mxu1 }
 0x2a9   : > { %v10038_v6 = vpop.f32.mrb[29].mxu1 }
 0x2aa   : > { %v10040_v7 = vpop.f32.mrb[30].mxu1 }
 0x2ab   : > { %v10042_v19 = vpop.f32.mrb[31].mxu1 }
 0x2b0   : > { %v10044_v59 = vpop.f32.mrb[32].mxu1 }
 0x2b1   : > { %v10046_v49 = vpop.f32.mrb[33].mxu1 }
 0x2b2   : > { %v10048_v23 = vpop.f32.mrb[34].mxu1 }
 0x2b3   : > { %v10050_v40 = vpop.f32.mrb[35].mxu1 }
 0x2b8   : > { %v10052_v63 = vpop.f32.mrb[36].mxu1 }
 0x2b9   : > { %v10054_v24 = vpop.f32.mrb[37].mxu1 }
 0x2ba   : > { %v10056_v58 = vpop.f32.mrb[38].mxu1 }
 0x2bb   : > { %v10058_v50 = vpop.f32.mrb[39].mxu1 }
 0x2c0   : > { %v10060_v43 = vpop.f32.mrb[40].mxu1 }
 0x2c1   : > { %v10062_v31 = vpop.f32.mrb[41].mxu1 }
 0x2c2   : > { %v10064_v39 = vpop.f32.mrb[42].mxu1 }
 0x2c3   : > { %v10066_v38 = vpop.f32.mrb[43].mxu1 }
 0x2c8   : > { %v10068_v5 = vpop.f32.mrb[44].mxu1 }
 0x2c9   : > { %v10070_v3 = vpop.f32.mrb[45].mxu1 }
 0x2ca   : > { %v10072_v60 = vpop.f32.mrb[46].mxu1 }
 0x2cb   : > { %v10074_v20 = vpop.f32.mrb[47].mxu1 }
 0x2d0   : > { %v10076_v18 = vpop.f32.mrb[48].mxu1 }
 0x2d1   : > { %11022 = vst [vmem:[#allocation3_spill] sm:$0xff] %v10076_v18  ;;  %v10078_v28 = vpop.f32.mrb[49].mxu1 }
 0x2d2   : > { %11023 = vst [vmem:[#allocation2_spill] sm:$0xff] %v10078_v28  ;;  %v10080_v52 = vpop.f32.mrb[50].mxu1 }
 0x2d3   : > { %11024 = vst [vmem:[#allocation5_spill] sm:$0xff] %v10080_v52  ;;  %v10082_v9 = vpop.f32.mrb[51].mxu1 }
 0x2d4   : > { %11025 = vst [vmem:[#allocation4_spill] sm:$0xff] %v10082_v9 }
 0x2d8   : > { %v10084_v44 = vpop.f32.mrb[52].mxu1 }
 0x2d9   : > { %11026 = vst [vmem:[#allocation7_spill] sm:$0xff] %v10084_v44  ;;  %v10086_v62 = vpop.f32.mrb[53].mxu1 }
 0x2da   : > { %11027 = vst [vmem:[#allocation6_spill] sm:$0xff] %v10086_v62  ;;  %v10088_v10 = vpop.f32.mrb[54].mxu1 }
 0x2db   : > { %11028 = vst [vmem:[#allocation9_spill] sm:$0xff] %v10088_v10  ;;  %v10090_v2 = vpop.f32.mrb[55].mxu1 }
 0x2dc   : > { %11029 = vst [vmem:[#allocation8_spill] sm:$0xff] %v10090_v2  ;;  %v10111_v2 = vld [vmem:[%s10805_s3] ss:$0 sm:$0xff] }
 0x2e0   : > { %v10092_v55 = vpop.f32.mrb[56].mxu1 }
 0x2e1   : > { %11030 = vst [vmem:[#allocation11_spill] sm:$0xff] %v10092_v55  ;;  %v10094_v53 = vpop.f32.mrb[57].mxu1 }
 0x2e2   : > { %11031 = vst [vmem:[#allocation10_spill] sm:$0xff] %v10094_v53  ;;  %v10096_v25 = vpop.f32.mrb[58].mxu1 }
 0x2e3   : > { %11032 = vst [vmem:[#allocation13_spill] sm:$0xff] %v10096_v25  ;;  %v10098_v4 = vpop.f32.mrb[59].mxu1 }
 0x2e4   : > { %11033 = vst [vmem:[#allocation12_spill] sm:$0xff] %v10098_v4 }
 0x2e8   : > { %v10100_v48 = vpop.f32.mrb[60].mxu1 }
 0x2e9   : > { %11034 = vst [vmem:[#allocation15_spill] sm:$0xff] %v10100_v48  ;;  %v10102_v0 = vpop.f32.mrb[61].mxu1 }
 0x2ea   : > { %11035 = vst [vmem:[#allocation14_spill] sm:$0xff] %v10102_v0  ;;  %v10104_v14 = vpop.f32.mrb[62].mxu1 }
 0x2eb   : > { %11036 = vst [vmem:[#allocation17_spill] sm:$0xff] %v10104_v14  ;;  %v10106_v30 = vpop.f32.mrb[63].mxu1 }
 0x2ec   : > { %11037 = vst [vmem:[#allocation16_spill] sm:$0xff] %v10106_v30 }
 0x2f2   : > { %v7458_v62 = vpop.f32.mrb[0].mxu0 }
 0x2f3   : > { %v7586_v53 = vadd.f32 %v7458_v62, %v9952_v37  ;;  %v4676_v55 = vpop.f32.mrb[1].mxu0 }
 0x2f4   : > { %v7587_v25 = vadd.f32 %v4676_v55, %v9954_v17  ;;  %v7459_v4 = vpop.f32.mrb[2].mxu0 }
 0x2f5   : > { %v5004_v48 = vadd.f32 %v7586_v53, %v10111_v2  ;;  %v7588_v0 = vadd.f32 %v7459_v4, %v9958_v26  ;;  %v4679_v10 = vpop.f32.mrb[3].mxu0 }
 0x2f6   : > { %v5002_v14 = vadd.f32 %v7587_v25, %v10111_v2  ;;  %v7589_v30 = vadd.f32 %v4679_v10, %v9961_v21 }
 0x2f7   : > { %v5005_v44 = vadd.f32 %v7588_v0, %v10111_v2  ;;  %v5068_v52 = vmax.f32 %v5004_v48, 0.0 }
 0x2f8   : > { %v5003_v9 = vadd.f32 %v7589_v30, %v10111_v2  ;;  %v5066_v37 = vmax.f32 %v5002_v14, 0.0 }
 0x2f9   : > { %v5069_v28 = vmax.f32 %v5005_v44, 0.0 }
 0x2fa   : > { %v5067_v62 = vmax.f32 %v5003_v9, 0.0  ;;  %v7462_v18 = vpop.f32.mrb[4].mxu0 }
 0x2fb   : > { %v5131_v17 = vpack.c.bf16 %v5069_v28, %v5068_v52  ;;  %v7590_v55 = vadd.f32 %v7462_v18, %v9966_v16  ;;  %v4692_v53 = vpop.f32.mrb[5].mxu0 }
 0x2fc   : > { %v5130_v26 = vpack.c.bf16 %v5067_v62, %v5066_v37  ;;  %v7591_v4 = vadd.f32 %v4692_v53, %v9968_v27  ;;  %v7463_v25 = vpop.f32.mrb[6].mxu0 }
 0x2fd   : > { %v5008_v21 = vadd.f32 %v7590_v55, %v10111_v2  ;;  %v7592_v10 = vadd.f32 %v7463_v25, %v9972_v45  ;;  %v4695_v0 = vpop.f32.mrb[7].mxu0 }
 0x2fe   : > { %v5006_v48 = vadd.f32 %v7591_v4, %v10111_v2  ;;  %v7593_v44 = vadd.f32 %v4695_v0, %v9975_v36  ;;  %7522 = vmatprep.mubr.msk.bf16.mxu1 %vm5176_vm8, %v5130_v26 }
 0x2ff   : > { %v5009_v28 = vadd.f32 %v7592_v10, %v10111_v2  ;;  %7523 = vmatmul.mubr.msk.bf16.vlgmr.msra.gmra.mrb[64].mxu1 %vm5176_vm8, %v5131_v17  ;;  %v5072_v18 = vmax.f32 %v5008_v21, 0.0 }
 0x300   : > { %v5007_v16 = vadd.f32 %v7593_v44, %v10111_v2  ;;  %v5070_v52 = vmax.f32 %v5006_v48, 0.0 }
 0x301   : > { %v5073_v27 = vmax.f32 %v5009_v28, 0.0 }
 0x302   : > { %v5071_v9 = vmax.f32 %v5007_v16, 0.0  ;;  %v7466_v14 = vpop.f32.mrb[8].mxu0 }
 0x303   : > { %v5133_v30 = vpack.c.bf16 %v5073_v27, %v5072_v18  ;;  %v7594_v45 = vadd.f32 %v7466_v14, %v9980_v8  ;;  %v4708_v37 = vpop.f32.mrb[9].mxu0 }
 0x304   : > { %v5132_v62 = vpack.c.bf16 %v5071_v9, %v5070_v52  ;;  %v7595_v36 = vadd.f32 %v4708_v37, %v9982_v12  ;;  %v7467_v55 = vpop.f32.mrb[10].mxu0 }
 0x305   : > { %v5012_v53 = vadd.f32 %v7594_v45, %v10111_v2  ;;  %v7596_v26 = vadd.f32 %v7467_v55, %v9986_v46  ;;  %v4711_v17 = vpop.f32.mrb[11].mxu0 }
 0x306   : > { %v5010_v4 = vadd.f32 %v7595_v36, %v10111_v2  ;;  %v7597_v25 = vadd.f32 %v4711_v17, %v9989_v13  ;;  %7526 = vmatprep.mubr.msk.bf16.mxu1 %vm5176_vm8, %v5132_v62 }
 0x307   : > { %v5013_v21 = vadd.f32 %v7596_v26, %v10111_v2  ;;  %7527 = vmatmul.mubr.msk.bf16.gmra.mrb[68].mxu1 %vm5176_vm8, %v5133_v30  ;;  %v5076_v10 = vmax.f32 %v5012_v53, 0.0 }
 0x308   : > { %v5011_v8 = vadd.f32 %v7597_v25, %v10111_v2  ;;  %v5074_v0 = vmax.f32 %v5010_v4, 0.0 }
 0x309   : > { %v5077_v12 = vmax.f32 %v5013_v21, 0.0 }
 0x30a   : > { %v5075_v48 = vmax.f32 %v5011_v8, 0.0  ;;  %v7470_v44 = vpop.f32.mrb[12].mxu0 }
 0x30b   : > { %v5135_v28 = vpack.c.bf16 %v5077_v12, %v5076_v10  ;;  %v7598_v46 = vadd.f32 %v7470_v44, %v9994_v61  ;;  %v4724_v16 = vpop.f32.mrb[13].mxu0 }
 0x30c   : > { %v5134_v18 = vpack.c.bf16 %v5075_v48, %v5074_v0  ;;  %v7599_v13 = vadd.f32 %v4724_v16, %v9996_v56  ;;  %v7471_v27 = vpop.f32.mrb[14].mxu0 }
 0x30d   : > { %v5016_v52 = vadd.f32 %v7598_v46, %v10111_v2  ;;  %v7600_v9 = vadd.f32 %v7471_v27, %v10000_v41  ;;  %v4727_v14 = vpop.f32.mrb[15].mxu0 }
 0x30e   : > { %v5014_v30 = vadd.f32 %v7599_v13, %v10111_v2  ;;  %v7601_v45 = vadd.f32 %v4727_v14, %v10003_v47  ;;  %7530 = vmatprep.mubr.msk.bf16.mxu1 %vm5176_vm8, %v5134_v18 }
 0x30f   : > { %v5017_v37 = vadd.f32 %v7600_v9, %v10111_v2  ;;  %7531 = vmatmul.mubr.msk.bf16.gmra.mrb[72].mxu1 %vm5176_vm8, %v5135_v28  ;;  %v5080_v62 = vmax.f32 %v5016_v52, 0.0 }
 0x310   : > { %v5015_v61 = vadd.f32 %v7601_v45, %v10111_v2  ;;  %v5078_v36 = vmax.f32 %v5014_v30, 0.0 }
 0x311   : > { %v5081_v56 = vmax.f32 %v5017_v37, 0.0 }
 0x312   : > { %v5079_v55 = vmax.f32 %v5015_v61, 0.0  ;;  %v7474_v53 = vpop.f32.mrb[16].mxu0 }
 0x313   : > { %v5137_v26 = vpack.c.bf16 %v5081_v56, %v5080_v62  ;;  %v7602_v41 = vadd.f32 %v7474_v53, %v10008_v22  ;;  %v4740_v17 = vpop.f32.mrb[17].mxu0 }
 0x314   : > { %v5136_v4 = vpack.c.bf16 %v5079_v55, %v5078_v36  ;;  %v7603_v47 = vadd.f32 %v4740_v17, %v10010_v33  ;;  %v7475_v25 = vpop.f32.mrb[18].mxu0 }
 0x315   : > { %v5020_v21 = vadd.f32 %v7602_v41, %v10111_v2  ;;  %v7604_v8 = vadd.f32 %v7475_v25, %v10014_v11  ;;  %v4743_v10 = vpop.f32.mrb[19].mxu0 }
 0x316   : > { %v5018_v12 = vadd.f32 %v7603_v47, %v10111_v2  ;;  %v7605_v0 = vadd.f32 %v4743_v10, %v10016_v34  ;;  %7534 = vmatprep.mubr.msk.bf16.mxu1 %vm5176_vm8, %v5136_v4 }
 0x317   : > { %v5021_v48 = vadd.f32 %v7604_v8, %v10111_v2  ;;  %7535 = vmatmul.mubr.msk.bf16.gmra.mrb[76].mxu1 %vm5176_vm8, %v5137_v26  ;;  %v5084_v44 = vmax.f32 %v5020_v21, 0.0 }
 0x318   : > { %v5019_v22 = vadd.f32 %v7605_v0, %v10111_v2  ;;  %v5082_v28 = vmax.f32 %v5018_v12, 0.0 }
 0x319   : > { %v5085_v33 = vmax.f32 %v5021_v48, 0.0 }
 0x31a   : > { %v5083_v46 = vmax.f32 %v5019_v22, 0.0  ;;  %v7478_v16 = vpop.f32.mrb[20].mxu0 }
 0x31b   : > { %v5139_v18 = vpack.c.bf16 %v5085_v33, %v5084_v44  ;;  %v7606_v11 = vadd.f32 %v7478_v16, %v10020_v57  ;;  %v4756_v13 = vpop.f32.mrb[21].mxu0 }
 0x31c   : > { %v5138_v27 = vpack.c.bf16 %v5083_v46, %v5082_v28  ;;  %v7607_v34 = vadd.f32 %v4756_v13, %v10022_v32  ;;  %v7479_v52 = vpop.f32.mrb[22].mxu0 }
 0x31d   : > { %v5024_v9 = vadd.f32 %v7606_v11, %v10111_v2  ;;  %v7608_v14 = vadd.f32 %v7479_v52, %v10024_v29  ;;  %v4759_v30 = vpop.f32.mrb[23].mxu0 }
 0x31e   : > { %v5022_v45 = vadd.f32 %v7607_v34, %v10111_v2  ;;  %v7609_v37 = vadd.f32 %v4759_v30, %v10026_v51  ;;  %7538 = vmatprep.mubr.msk.bf16.mxu1 %vm5176_vm8, %v5138_v27 }
 0x31f   : > { %v5025_v61 = vadd.f32 %v7608_v14, %v10111_v2  ;;  %7539 = vmatmul.mubr.msk.bf16.gmra.mrb[80].mxu1 %vm5176_vm8, %v5139_v18  ;;  %v5088_v62 = vmax.f32 %v5024_v9, 0.0 }
 0x320   : > { %v5023_v57 = vadd.f32 %v7609_v37, %v10111_v2  ;;  %v5086_v56 = vmax.f32 %v5022_v45, 0.0 }
 0x321   : > { %v5089_v32 = vmax.f32 %v5025_v61, 0.0 }
 0x322   : > { %v5087_v36 = vmax.f32 %v5023_v57, 0.0  ;;  %v7482_v55 = vpop.f32.mrb[24].mxu0 }
 0x323   : > { %v5141_v53 = vpack.c.bf16 %v5089_v32, %v5088_v62  ;;  %v7610_v29 = vadd.f32 %v7482_v55, %v10028_v15  ;;  %v4772_v26 = vpop.f32.mrb[25].mxu0 }
 0x324   : > { %v5140_v41 = vpack.c.bf16 %v5087_v36, %v5086_v56  ;;  %v7611_v51 = vadd.f32 %v4772_v26, %v10030_v1  ;;  %v7483_v17 = vpop.f32.mrb[26].mxu0 }
 0x325   : > { %v5028_v4 = vadd.f32 %v7610_v29, %v10111_v2  ;;  %v7612_v47 = vadd.f32 %v7483_v17, %v10032_v54  ;;  %v4775_v25 = vpop.f32.mrb[27].mxu0 }
 0x326   : > { %v5026_v21 = vadd.f32 %v7611_v51, %v10111_v2  ;;  %v7613_v8 = vadd.f32 %v4775_v25, %v10034_v35  ;;  %7542 = vmatprep.mubr.msk.bf16.mxu1 %vm5176_vm8, %v5140_v41 }
 0x327   : > { %v5029_v10 = vadd.f32 %v7612_v47, %v10111_v2  ;;  %7543 = vmatmul.mubr.msk.bf16.gmra.mrb[84].mxu1 %vm5176_vm8, %v5141_v53  ;;  %v5092_v12 = vmax.f32 %v5028_v4, 0.0 }
 0x328   : > { %v5027_v15 = vadd.f32 %v7613_v8, %v10111_v2  ;;  %v5090_v0 = vmax.f32 %v5026_v21, 0.0 }
 0x329   : > { %v5093_v1 = vmax.f32 %v5029_v10, 0.0 }
 0x32a   : > { %v5091_v48 = vmax.f32 %v5027_v15, 0.0  ;;  %v7486_v22 = vpop.f32.mrb[28].mxu0 }
 0x32b   : > { %v5143_v44 = vpack.c.bf16 %v5093_v1, %v5092_v12  ;;  %v7614_v54 = vadd.f32 %v7486_v22, %v10036_v42  ;;  %v4788_v33 = vpop.f32.mrb[29].mxu0 }
 0x32c   : > { %v5142_v28 = vpack.c.bf16 %v5091_v48, %v5090_v0  ;;  %v7615_v35 = vadd.f32 %v4788_v33, %v10038_v6  ;;  %v7487_v46 = vpop.f32.mrb[30].mxu0 }
 0x32d   : > { %v5032_v16 = vadd.f32 %v7614_v54, %v10111_v2  ;;  %v7616_v18 = vadd.f32 %v7487_v46, %v10040_v7  ;;  %v4791_v11 = vpop.f32.mrb[31].mxu0 }
 0x32e   : > { %v5030_v13 = vadd.f32 %v7615_v35, %v10111_v2  ;;  %v7617_v27 = vadd.f32 %v4791_v11, %v10042_v19  ;;  %7546 = vmatprep.mubr.msk.bf16.mxu1 %vm5176_vm8, %v5142_v28 }
 0x32f   : > { %v5033_v34 = vadd.f32 %v7616_v18, %v10111_v2  ;;  %7547 = vmatmul.mubr.msk.bf16.gmra.mrb[88].mxu1 %vm5176_vm8, %v5143_v44  ;;  %v5096_v52 = vmax.f32 %v5032_v16, 0.0 }
 0x330   : > { %v5031_v42 = vadd.f32 %v7617_v27, %v10111_v2  ;;  %v5094_v9 = vmax.f32 %v5030_v13, 0.0 }
 0x331   : > { %v5097_v6 = vmax.f32 %v5033_v34, 0.0 }
 0x332   : > { %v5095_v14 = vmax.f32 %v5031_v42, 0.0  ;;  %v7490_v30 = vpop.f32.mrb[32].mxu0 }
 0x333   : > { %v5145_v45 = vpack.c.bf16 %v5097_v6, %v5096_v52  ;;  %v7618_v7 = vadd.f32 %v7490_v30, %v10044_v59  ;;  %v4804_v37 = vpop.f32.mrb[33].mxu0 }
 0x334   : > { %v5144_v61 = vpack.c.bf16 %v5095_v14, %v5094_v9  ;;  %v7619_v19 = vadd.f32 %v4804_v37, %v10046_v49  ;;  %v7491_v57 = vpop.f32.mrb[34].mxu0 }
 0x335   : > { %v5036_v62 = vadd.f32 %v7618_v7, %v10111_v2  ;;  %v7620_v32 = vadd.f32 %v7491_v57, %v10048_v23  ;;  %v4807_v56 = vpop.f32.mrb[35].mxu0 }
 0x336   : > { %v5034_v36 = vadd.f32 %v7619_v19, %v10111_v2  ;;  %v7621_v55 = vadd.f32 %v4807_v56, %v10050_v40  ;;  %7550 = vmatprep.mubr.msk.bf16.mxu1 %vm5176_vm8, %v5144_v61 }
 0x337   : > { %v5037_v53 = vadd.f32 %v7620_v32, %v10111_v2  ;;  %7551 = vmatmul.mubr.msk.bf16.gmra.mrb[92].mxu1 %vm5176_vm8, %v5145_v45  ;;  %v5100_v29 = vmax.f32 %v5036_v62, 0.0 }
 0x338   : > { %v5035_v59 = vadd.f32 %v7621_v55, %v10111_v2  ;;  %v5098_v26 = vmax.f32 %v5034_v36, 0.0 }
 0x339   : > { %v5101_v49 = vmax.f32 %v5037_v53, 0.0 }
 0x33a   : > { %v5099_v41 = vmax.f32 %v5035_v59, 0.0  ;;  %v7494_v51 = vpop.f32.mrb[36].mxu0 }
 0x33b   : > { %v5147_v17 = vpack.c.bf16 %v5101_v49, %v5100_v29  ;;  %v7622_v23 = vadd.f32 %v7494_v51, %v10052_v63  ;;  %v4820_v4 = vpop.f32.mrb[37].mxu0 }
 0x33c   : > { %v5146_v47 = vpack.c.bf16 %v5099_v41, %v5098_v26  ;;  %v7623_v40 = vadd.f32 %v4820_v4, %v10054_v24  ;;  %v7495_v25 = vpop.f32.mrb[38].mxu0  ;;  %v11039_v26 = vld [vmem:[#allocation2_spill] sm:$0xff] }
 0x33d   : > { %v5040_v21 = vadd.f32 %v7622_v23, %v10111_v2  ;;  %v7624_v8 = vadd.f32 %v7495_v25, %v10056_v58  ;;  %v4823_v10 = vpop.f32.mrb[39].mxu0 }
 0x33e   : > { %v5038_v15 = vadd.f32 %v7623_v40, %v10111_v2  ;;  %v7625_v12 = vadd.f32 %v4823_v10, %v10058_v50  ;;  %7554 = vmatprep.mubr.msk.bf16.mxu1 %vm5176_vm8, %v5146_v47  ;;  %v11041_v40 = vld [vmem:[#allocation4_spill] sm:$0xff] }
 0x33f   : > { %v5041_v1 = vadd.f32 %v7624_v8, %v10111_v2  ;;  %7555 = vmatmul.mubr.msk.bf16.gmra.mrb[96].mxu1 %vm5176_vm8, %v5147_v17  ;;  %v5104_v0 = vmax.f32 %v5040_v21, 0.0  ;;  %v11040_v17 = vld [vmem:[#allocation5_spill] sm:$0xff] }
 0x340   : > { %v5039_v63 = vadd.f32 %v7625_v12, %v10111_v2  ;;  %v5102_v48 = vmax.f32 %v5038_v15, 0.0 }
 0x341   : > { %v5105_v24 = vmax.f32 %v5041_v1, 0.0 }
 0x342   : > { %v5103_v22 = vmax.f32 %v5039_v63, 0.0  ;;  %v7498_v44 = vpop.f32.mrb[40].mxu0 }
 0x343   : > { %v5149_v54 = vpack.c.bf16 %v5105_v24, %v5104_v0  ;;  %v7626_v58 = vadd.f32 %v7498_v44, %v10060_v43  ;;  %v4836_v33 = vpop.f32.mrb[41].mxu0  ;;  %v11042_v24 = vld [vmem:[#allocation7_spill] sm:$0xff] }
 0x344   : > { %v5148_v28 = vpack.c.bf16 %v5103_v22, %v5102_v48  ;;  %v7627_v50 = vadd.f32 %v4836_v33, %v10062_v31  ;;  %v7499_v35 = vpop.f32.mrb[42].mxu0 }
 0x345   : > { %v5044_v46 = vadd.f32 %v7626_v58, %v10111_v2  ;;  %v7628_v16 = vadd.f32 %v7499_v35, %v10064_v39  ;;  %v4839_v18 = vpop.f32.mrb[43].mxu0 }
 0x346   : > { %v5042_v11 = vadd.f32 %v7627_v50, %v10111_v2  ;;  %v7629_v13 = vadd.f32 %v4839_v18, %v10066_v38  ;;  %7558 = vmatprep.mubr.msk.bf16.mxu1 %vm5176_vm8, %v5148_v28  ;;  %v11044_v50 = vld [vmem:[#allocation9_spill] sm:$0xff]  ;;  %v11045_v18 = vld [vmem:[#allocation8_spill] sm:$0xff] }
 0x347   : > { %v5045_v27 = vadd.f32 %v7628_v16, %v10111_v2  ;;  %7559 = vmatmul.mubr.msk.bf16.gmra.mrb[100].mxu1 %vm5176_vm8, %v5149_v54  ;;  %v5108_v34 = vmax.f32 %v5044_v46, 0.0  ;;  %v11043_v54 = vld [vmem:[#allocation6_spill] sm:$0xff] }
 0x348   : > { %v5043_v43 = vadd.f32 %v7629_v13, %v10111_v2  ;;  %v5106_v42 = vmax.f32 %v5042_v11, 0.0 }
 0x349   : > { %v5109_v31 = vmax.f32 %v5045_v27, 0.0 }
 0x34a   : > { %v5107_v52 = vmax.f32 %v5043_v43, 0.0  ;;  %v7502_v6 = vpop.f32.mrb[44].mxu0 }
 0x34b   : > { %v5151_v9 = vpack.c.bf16 %v5109_v31, %v5108_v34  ;;  %v7630_v39 = vadd.f32 %v7502_v6, %v10068_v5  ;;  %v4852_v14 = vpop.f32.mrb[45].mxu0 }
 0x34c   : > { %v5150_v30 = vpack.c.bf16 %v5107_v52, %v5106_v42  ;;  %v7631_v38 = vadd.f32 %v4852_v14, %v10070_v3  ;;  %v7503_v45 = vpop.f32.mrb[46].mxu0 }
 0x34d   : > { %v5048_v7 = vadd.f32 %v7630_v39, %v10111_v2  ;;  %v7632_v37 = vadd.f32 %v7503_v45, %v10072_v60  ;;  %v4855_v61 = vpop.f32.mrb[47].mxu0  ;;  %v11038_v60 = vld [vmem:[#allocation3_spill] sm:$0xff] }
 0x34e   : > { %v5046_v19 = vadd.f32 %v7631_v38, %v10111_v2  ;;  %v7633_v57 = vadd.f32 %v4855_v61, %v10074_v20  ;;  %7562 = vmatprep.mubr.msk.bf16.mxu1 %vm5176_vm8, %v5150_v30  ;;  %v11047_v38 = vld [vmem:[#allocation10_spill] sm:$0xff]  ;;  %v11048_v61 = vld [vmem:[#allocation13_spill] sm:$0xff] }
 0x34f   : > { %v5049_v62 = vadd.f32 %v7632_v37, %v10111_v2  ;;  %7563 = vmatmul.mubr.msk.bf16.gmra.mrb[104].mxu1 %vm5176_vm8, %v5151_v9  ;;  %v5112_v32 = vmax.f32 %v5048_v7, 0.0  ;;  %v11046_v9 = vld [vmem:[#allocation11_spill] sm:$0xff] }
 0x350   : > { %v5047_v5 = vadd.f32 %v7633_v57, %v10111_v2  ;;  %v5110_v56 = vmax.f32 %v5046_v19, 0.0 }
 0x351   : > { %v5113_v3 = vmax.f32 %v5049_v62, 0.0 }
 0x352   : > { %v5111_v36 = vmax.f32 %v5047_v5, 0.0  ;;  %v7506_v55 = vpop.f32.mrb[48].mxu0  ;;  %v11049_v5 = vld [vmem:[#allocation12_spill] sm:$0xff] }
 0x353   : > { %v5153_v53 = vpack.c.bf16 %v5113_v3, %v5112_v32  ;;  %v7634_v59 = vadd.f32 %v7506_v55, %v11038_v60  ;;  %v4868_v29 = vpop.f32.mrb[49].mxu0 }
 0x354   : > { %v5152_v49 = vpack.c.bf16 %v5111_v36, %v5110_v56  ;;  %v7635_v20 = vadd.f32 %v4868_v29, %v11039_v26  ;;  %v7507_v41 = vpop.f32.mrb[50].mxu0 }
 0x355   : > { %v5052_v51 = vadd.f32 %v7634_v59, %v10111_v2  ;;  %v7636_v23 = vadd.f32 %v7507_v41, %v11040_v17  ;;  %v4871_v4 = vpop.f32.mrb[51].mxu0 }
 0x356   : > { %v5050_v47 = vadd.f32 %v7635_v20, %v10111_v2  ;;  %v7637_v25 = vadd.f32 %v4871_v4, %v11041_v40  ;;  %7566 = vmatprep.mubr.msk.bf16.mxu1 %vm5176_vm8, %v5152_v49  ;;  %v11050_v49 = vld [vmem:[#allocation15_spill] sm:$0xff] }
 0x357   : > { %v5053_v21 = vadd.f32 %v7636_v23, %v10111_v2  ;;  %7567 = vmatmul.mubr.msk.bf16.gmra.mrb[108].mxu1 %vm5176_vm8, %v5153_v53  ;;  %v5116_v10 = vmax.f32 %v5052_v51, 0.0  ;;  %v11051_v51 = vld [vmem:[#allocation14_spill] sm:$0xff] }
 0x358   : > { %v5051_v8 = vadd.f32 %v7637_v25, %v10111_v2  ;;  %v5114_v12 = vmax.f32 %v5050_v47, 0.0  ;;  %v11052_v47 = vld [vmem:[#allocation17_spill] sm:$0xff] }
 0x359   : > { %v5117_v15 = vmax.f32 %v5053_v21, 0.0 }
 0x35a   : > { %v5115_v1 = vmax.f32 %v5051_v8, 0.0  ;;  %v7510_v63 = vpop.f32.mrb[52].mxu0  ;;  %v11053_v8 = vld [vmem:[#allocation16_spill] sm:$0xff] }
 0x35b   : > { %v5155_v0 = vpack.c.bf16 %v5117_v15, %v5116_v10  ;;  %v7638_v48 = vadd.f32 %v7510_v63, %v11042_v24  ;;  %v4884_v22 = vpop.f32.mrb[53].mxu0 }
 0x35c   : > { %v5154_v44 = vpack.c.bf16 %v5115_v1, %v5114_v12  ;;  %v7639_v58 = vadd.f32 %v4884_v22, %v11043_v54  ;;  %v7511_v33 = vpop.f32.mrb[54].mxu0 }
 0x35d   : > { %v5056_v28 = vadd.f32 %v7638_v48, %v10111_v2  ;;  %v7640_v35 = vadd.f32 %v7511_v33, %v11044_v50  ;;  %v4887_v46 = vpop.f32.mrb[55].mxu0 }
 0x35e   : > { %v5054_v16 = vadd.f32 %v7639_v58, %v10111_v2  ;;  %v7641_v11 = vadd.f32 %v4887_v46, %v11045_v18  ;;  %7570 = vmatprep.mubr.msk.bf16.mxu1 %vm5176_vm8, %v5154_v44  ;;  %v10276_v44 = vld [vmem:[%s10807_s5] ss:$0 sm:$0xff] }
 0x35f   : > { %v5057_v13 = vadd.f32 %v7640_v35, %v10111_v2  ;;  %7571 = vmatmul.mubr.msk.bf16.gmra.mrb[112].mxu1 %vm5176_vm8, %v5155_v0  ;;  %v5120_v43 = vmax.f32 %v5056_v28, 0.0 }
 0x360   : > { %v5055_v27 = vadd.f32 %v7641_v11, %v10111_v2  ;;  %v5118_v31 = vmax.f32 %v5054_v16, 0.0 }
 0x361   : > { %v5121_v34 = vmax.f32 %v5057_v13, 0.0 }
 0x362   : > { %v5119_v42 = vmax.f32 %v5055_v27, 0.0  ;;  %v7514_v52 = vpop.f32.mrb[56].mxu0 }
 0x363   : > { %v5157_v6 = vpack.c.bf16 %v5121_v34, %v5120_v43  ;;  %v7642_v39 = vadd.f32 %v7514_v52, %v11046_v9  ;;  %v4900_v14 = vpop.f32.mrb[57].mxu0 }
 0x364   : > { %v5156_v30 = vpack.c.bf16 %v5119_v42, %v5118_v31  ;;  %v7643_v45 = vadd.f32 %v4900_v14, %v11047_v38  ;;  %v7515_v7 = vpop.f32.mrb[58].mxu0 }
 0x365   : > { %v5060_v37 = vadd.f32 %v7642_v39, %v10111_v2  ;;  %v7644_v19 = vadd.f32 %v7515_v7, %v11048_v61  ;;  %v4903_v57 = vpop.f32.mrb[59].mxu0 }
 0x366   : > { %v5058_v62 = vadd.f32 %v7643_v45, %v10111_v2  ;;  %v7645_v32 = vadd.f32 %v4903_v57, %v11049_v5  ;;  %7574 = vmatprep.mubr.msk.bf16.mxu1 %vm5176_vm8, %v5156_v30 }
 0x367   : > { %v5061_v3 = vadd.f32 %v7644_v19, %v10111_v2  ;;  %7575 = vmatmul.mubr.msk.bf16.gmra.mrb[116].mxu1 %vm5176_vm8, %v5157_v6  ;;  %v5124_v36 = vmax.f32 %v5060_v37, 0.0 }
 0x368   : > { %v5059_v56 = vadd.f32 %v7645_v32, %v10111_v2  ;;  %v5122_v53 = vmax.f32 %v5058_v62, 0.0 }
 0x369   : > { %v5125_v55 = vmax.f32 %v5061_v3, 0.0  ;;  %v5566_v3 = vlaneseq }
 0x36a   : > { %v5123_v60 = vmax.f32 %v5059_v56, 0.0  ;;  %v7518_v59 = vpop.f32.mrb[60].mxu0 }
 0x36b   : > { %v5159_v29 = vpack.c.bf16 %v5125_v55, %v5124_v36  ;;  %v7646_v26 = vadd.f32 %v7518_v59, %v11050_v49  ;;  %v4916_v20 = vpop.f32.mrb[61].mxu0 }
 0x36c   : > { %v5158_v41 = vpack.c.bf16 %v5123_v60, %v5122_v53  ;;  %v7647_v17 = vadd.f32 %v4916_v20, %v11051_v51  ;;  %v7519_v23 = vpop.f32.mrb[62].mxu0 }
 0x36d   : > { %v5064_v4 = vadd.f32 %v7646_v26, %v10111_v2  ;;  %v7648_v40 = vadd.f32 %v7519_v23, %v11052_v47  ;;  %v4919_v25 = vpop.f32.mrb[63].mxu0 }
 0x36e   : > { %v5062_v21 = vadd.f32 %v7647_v17, %v10111_v2  ;;  %v7649_v10 = vadd.f32 %v4919_v25, %v11053_v8  ;;  %7578 = vmatprep.mubr.msk.bf16.mxu1 %vm5176_vm8, %v5158_v41  ;;  %v10329_v41 = vand.u32 127, %v5566_v3 }
 0x36f   : > { %v5065_v15 = vadd.f32 %v7648_v40, %v10111_v2  ;;  %7579 = vmatmul.mubr.msk.bf16.gmra.mrb[120].mxu1 %vm5176_vm8, %v5159_v29  ;;  %v5128_v1 = vmax.f32 %v5064_v4, 0.0 }
 0x370   : > { %v5063_v12 = vadd.f32 %v7649_v10, %v10111_v2  ;;  %v5126_v0 = vmax.f32 %v5062_v21, 0.0  ;;  %vm5568_vm9 = vcmp.lt.s32.totalorder %v10329_v41, 3 }
 0x371   : > { %v5129_v63 = vmax.f32 %v5065_v15, 0.0 }
 0x372   : > { %v5127_v24 = vmax.f32 %v5063_v12, 0.0 }
 0x373   : > { %v5161_v48 = vpack.c.bf16 %v5129_v63, %v5128_v1 }
 0x374   : > { %v5160_v22 = vpack.c.bf16 %v5127_v24, %v5126_v0 }
 0x376   : > { %7582 = vmatprep.mubr.msk.bf16.mxu1 %vm5176_vm8, %v5160_v22 }
 0x377   : > { %7583 = vmatmul.mubr.msk.bf16.gmra.mrb[124].mxu1 %vm5176_vm8, %v5161_v48 }
 0x3d2   : > { %v7524_v54 = vpop.f32.mrb[64].mxu1 }
 0x3d3   : > { %v10279_v58 = vadd.f32 %v7524_v54, %v10276_v44  ;;  %v5311_v2 = vpop.f32.mrb[65].mxu1 }
 0x3d4   : > { %v10282_v33 = vadd.f32 %v10276_v44, %v5311_v2  ;;  %v7525_v28 = vpop.f32.mrb[66].mxu1 }
 0x3d5   : > { %v6530_v50 = vmul.f32 -1.442695, %v10279_v58  ;;  %v10286_v35 = vadd.f32 %v7525_v28, %v10276_v44  ;;  %v5314_v46 = vpop.f32.mrb[67].mxu1 }
 0x3d6   : > { %v6528_v16 = vmul.f32 -1.442695, %v10282_v33  ;;  %v10290_v18 = vadd.f32 %v10276_v44, %v5314_v46 }
 0x3d7   : > { %8154 = vpow2.f32 %v6530_v50  ;;  %v6531_v11 = vmul.f32 -1.442695, %v10286_v35 }
 0x3d8   : > { %8156 = vpow2.f32 %v6528_v16  ;;  %v6529_v13 = vmul.f32 -1.442695, %v10290_v18 }
 0x3d9   : > { %8158 = vpow2.f32 %v6531_v11 }
 0x3da   : > { %8160 = vpow2.f32 %v6529_v13  ;;  %v7528_v27 = vpop.f32.mrb[68].mxu1 }
 0x3db   : > { %v10295_v43 = vadd.f32 %v7528_v27, %v10276_v44  ;;  %v5327_v34 = vpop.f32.mrb[69].mxu1 }
 0x3dc   : > { %v10298_v31 = vadd.f32 %v10276_v44, %v5327_v34  ;;  %v7529_v42 = vpop.f32.mrb[70].mxu1 }
 0x3dd   : > { %v6534_v52 = vmul.f32 -1.442695, %v10295_v43  ;;  %v10302_v6 = vadd.f32 %v7529_v42, %v10276_v44  ;;  %v5330_v9 = vpop.f32.mrb[71].mxu1 }
 0x3de   : > { %v6532_v39 = vmul.f32 -1.442695, %v10298_v31  ;;  %v10306_v14 = vadd.f32 %v10276_v44, %v5330_v9 }
 0x3df   : > { %8162 = vpow2.f32 %v6534_v52  ;;  %v6535_v30 = vmul.f32 -1.442695, %v10302_v6 }
 0x3e0   : > { %8164 = vpow2.f32 %v6532_v39  ;;  %v6533_v38 = vmul.f32 -1.442695, %v10306_v14 }
 0x3e1   : > { %v8155_v45 = vpop.eup %8154  ;;  %8166 = vpow2.f32 %v6535_v30 }
 0x3e2   : > { %v8157_v7 = vpop.eup %8156  ;;  %v5763_v37 = vadd.f32 1.0, %v8155_v45  ;;  %8168 = vpow2.f32 %v6533_v38  ;;  %v7532_v61 = vpop.f32.mrb[72].mxu1 }
 0x3e3   : > { %v8159_v19 = vpop.eup %8158  ;;  %v5761_v57 = vadd.f32 1.0, %v8157_v7  ;;  %v10312_v62 = vadd.f32 %v7532_v61, %v10276_v44  ;;  %v5343_v5 = vpop.f32.mrb[73].mxu1 }
 0x3e4   : > { %v8161_v32 = vpop.eup %8160  ;;  %8170 = vrcp.f32 %v5763_v37  ;;  %v5764_v56 = vadd.f32 1.0, %v8159_v19  ;;  %v10315_v36 = vadd.f32 %v10276_v44, %v5343_v5  ;;  %v7533_v55 = vpop.f32.mrb[74].mxu1 }
 0x3e5   : > { %8172 = vrcp.f32 %v5761_v57  ;;  %v5762_v53 = vadd.f32 1.0, %v8161_v32  ;;  %v6538_v60 = vmul.f32 -1.442695, %v10312_v62  ;;  %v10319_v59 = vadd.f32 %v7533_v55, %v10276_v44  ;;  %v5346_v29 = vpop.f32.mrb[75].mxu1 }
 0x3e6   : > { %8174 = vrcp.f32 %v5764_v56  ;;  %v6536_v49 = vmul.f32 -1.442695, %v10315_v36  ;;  %v10326_v26 = vadd.f32 %v10276_v44, %v5346_v29 }
 0x3e7   : > { %8176 = vrcp.f32 %v5762_v53  ;;  %v6539_v20 = vmul.f32 -1.442695, %v10319_v59 }
 0x3e8   : > { %8178 = vpow2.f32 %v6538_v60  ;;  %v6537_v51 = vmul.f32 -1.442695, %v10326_v26 }
 0x3e9   : > { %v8163_v17 = vpop.eup %8162  ;;  %8180 = vpow2.f32 %v6536_v49 }
 0x3ea   : > { %v8165_v23 = vpop.eup %8164  ;;  %v5767_v4 = vadd.f32 1.0, %v8163_v17  ;;  %8182 = vpow2.f32 %v6539_v20  ;;  %v7536_v47 = vpop.f32.mrb[76].mxu1 }
 0x3eb   : > { %v8167_v40 = vpop.eup %8166  ;;  %v5765_v25 = vadd.f32 1.0, %v8165_v23  ;;  %8184 = vpow2.f32 %v6537_v51  ;;  %v10333_v21 = vadd.f32 %v7536_v47, %v10276_v44  ;;  %v5359_v8 = vpop.f32.mrb[77].mxu1 }
 0x3ec   : > { %v8169_v10 = vpop.eup %8168  ;;  %8186 = vrcp.f32 %v5767_v4  ;;  %v5768_v15 = vadd.f32 1.0, %v8167_v40  ;;  %v10337_v12 = vadd.f32 %v10276_v44, %v5359_v8  ;;  %v7537_v1 = vpop.f32.mrb[78].mxu1 }
 0x3ed   : > { %8188 = vrcp.f32 %v5765_v25  ;;  %v5766_v63 = vadd.f32 1.0, %v8169_v10  ;;  %v6542_v0 = vmul.f32 -1.442695, %v10333_v21  ;;  %v10346_v24 = vadd.f32 %v7537_v1, %v10276_v44  ;;  %v5362_v48 = vpop.f32.mrb[79].mxu1 }
 0x3ee   : > { %v8171_v22 = vpop.eup %8170  ;;  %8190 = vrcp.f32 %v5768_v15  ;;  %v6540_v54 = vmul.f32 -1.442695, %v10337_v12  ;;  %v10350_v2 = vadd.f32 %v10276_v44, %v5362_v48 }
 0x3ef   : > { %v8173_v28 = vpop.eup %8172  ;;  %v5955_v50 = vsel %vm5568_vm9, %v8171_v22, %v10279_v58  ;;  %8192 = vrcp.f32 %v5766_v63  ;;  %v6543_v46 = vmul.f32 -1.442695, %v10346_v24 }
 0x3f0   : > { %v8175_v16 = vpop.eup %8174  ;;  %6019 = vst [vmem:[%s10342_s15 + $0x10] sm:$0xff] %v5955_v50  ;;  %v5953_v11 = vsel %vm5568_vm9, %v8173_v28, %v10282_v33  ;;  %8194 = vpow2.f32 %v6542_v0  ;;  %v6541_v13 = vmul.f32 -1.442695, %v10350_v2 }
 0x3f1   : > { %v8177_v27 = vpop.eup %8176  ;;  %6017 = vst [vmem:[%s10342_s15] sm:$0xff] %v5953_v11  ;;  %v5956_v34 = vsel %vm5568_vm9, %v8175_v16, %v10286_v35  ;;  %8196 = vpow2.f32 %v6540_v54 }
 0x3f2   : > { %v8179_v58 = vpop.eup %8178  ;;  %6020 = vst [vmem:[%s10342_s15 + $0x18] sm:$0xff] %v5956_v34  ;;  %v5954_v42 = vsel %vm5568_vm9, %v8177_v27, %v10290_v18  ;;  %8198 = vpow2.f32 %v6543_v46  ;;  %v7540_v52 = vpop.f32.mrb[80].mxu1 }
 0x3f3   : > { %v8181_v9 = vpop.eup %8180  ;;  %6018 = vst [vmem:[%s10342_s15 + $0x8] sm:$0xff] %v5954_v42  ;;  %v5771_v33 = vadd.f32 1.0, %v8179_v58  ;;  %8200 = vpow2.f32 %v6541_v13  ;;  %v10371_v39 = vadd.f32 %v7540_v52, %v10276_v44  ;;  %v5375_v30 = vpop.f32.mrb[81].mxu1 }
 0x3f4   : > { %v8183_v38 = vpop.eup %8182  ;;  %v5769_v45 = vadd.f32 1.0, %v8181_v9  ;;  %v10374_v35 = vadd.f32 %v10276_v44, %v5375_v30  ;;  %v7541_v7 = vpop.f32.mrb[82].mxu1 }
 0x3f5   : > { %v8185_v37 = vpop.eup %8184  ;;  %8202 = vrcp.f32 %v5771_v33  ;;  %v5772_v18 = vadd.f32 1.0, %v8183_v38  ;;  %v6546_v61 = vmul.f32 -1.442695, %v10371_v39  ;;  %v10378_v19 = vadd.f32 %v7541_v7, %v10276_v44  ;;  %v5378_v57 = vpop.f32.mrb[83].mxu1 }
 0x3f6   : > { %v8187_v5 = vpop.eup %8186  ;;  %8204 = vrcp.f32 %v5769_v45  ;;  %v5770_v32 = vadd.f32 1.0, %v8185_v37  ;;  %v6544_v3 = vmul.f32 -1.442695, %v10374_v35  ;;  %v10382_v56 = vadd.f32 %v10276_v44, %v5378_v57 }
 0x3f7   : > { %v8189_v55 = vpop.eup %8188  ;;  %v5959_v53 = vsel %vm5568_vm9, %v8187_v5, %v10295_v43  ;;  %8206 = vrcp.f32 %v5772_v18  ;;  %v6547_v60 = vmul.f32 -1.442695, %v10378_v19 }
 0x3f8   : > { %v8191_v29 = vpop.eup %8190  ;;  %6023 = vst [vmem:[%s10342_s15 + $0x30] sm:$0xff] %v5959_v53  ;;  %v5957_v49 = vsel %vm5568_vm9, %v8189_v55, %v10298_v31  ;;  %8208 = vrcp.f32 %v5770_v32  ;;  %v6545_v20 = vmul.f32 -1.442695, %v10382_v56 }
 0x3f9   : > { %v8193_v51 = vpop.eup %8192  ;;  %6021 = vst [vmem:[%s10342_s15 + $0x20] sm:$0xff] %v5957_v49  ;;  %v5960_v17 = vsel %vm5568_vm9, %v8191_v29, %v10302_v6  ;;  %8210 = vpow2.f32 %v6546_v61 }
 0x3fa   : > { %v8195_v43 = vpop.eup %8194  ;;  %6024 = vst [vmem:[%s10342_s15 + $0x38] sm:$0xff] %v5960_v17  ;;  %v5958_v23 = vsel %vm5568_vm9, %v8193_v51, %v10306_v14  ;;  %8212 = vpow2.f32 %v6544_v3  ;;  %v7544_v4 = vpop.f32.mrb[84].mxu1 }
 0x3fb   : > { %v8197_v47 = vpop.eup %8196  ;;  %6022 = vst [vmem:[%s10342_s15 + $0x28] sm:$0xff] %v5958_v23  ;;  %v5775_v31 = vadd.f32 1.0, %v8195_v43  ;;  %8214 = vpow2.f32 %v6547_v60  ;;  %v10403_v40 = vadd.f32 %v7544_v4, %v10276_v44  ;;  %v5391_v25 = vpop.f32.mrb[85].mxu1 }
 0x3fc   : > { %v8199_v8 = vpop.eup %8198  ;;  %v5773_v10 = vadd.f32 1.0, %v8197_v47  ;;  %8216 = vpow2.f32 %v6545_v20  ;;  %v10406_v6 = vadd.f32 %v10276_v44, %v5391_v25  ;;  %v7545_v15 = vpop.f32.mrb[86].mxu1 }
 0x3fd   : > { %v8201_v1 = vpop.eup %8200  ;;  %8218 = vrcp.f32 %v5775_v31  ;;  %v5776_v14 = vadd.f32 1.0, %v8199_v8  ;;  %v6550_v63 = vmul.f32 -1.442695, %v10403_v40  ;;  %v10410_v0 = vadd.f32 %v7545_v15, %v10276_v44  ;;  %v5394_v48 = vpop.f32.mrb[87].mxu1 }
 0x3fe   : > { %8220 = vrcp.f32 %v5773_v10  ;;  %v5774_v22 = vadd.f32 1.0, %v8201_v1  ;;  %v6548_v54 = vmul.f32 -1.442695, %v10406_v6  ;;  %v10414_v28 = vadd.f32 %v10276_v44, %v5394_v48 }
 0x3ff   : > { %v8203_v50 = vpop.eup %8202  ;;  %8222 = vrcp.f32 %v5776_v14  ;;  %v6551_v46 = vmul.f32 -1.442695, %v10410_v0 }
 0x400   : > { %v8205_v16 = vpop.eup %8204  ;;  %v5963_v11 = vsel %vm5568_vm9, %v8203_v50, %v10312_v62  ;;  %8224 = vrcp.f32 %v5774_v22  ;;  %v6549_v13 = vmul.f32 -1.442695, %v10414_v28 }
 0x401   : > { %v8207_v27 = vpop.eup %8206  ;;  %6027 = vst [vmem:[%s10342_s15 + $0x50] sm:$0xff] %v5963_v11  ;;  %v5961_v34 = vsel %vm5568_vm9, %v8205_v16, %v10315_v36  ;;  %8226 = vpow2.f32 %v6550_v63 }
 0x402   : > { %v8209_v58 = vpop.eup %8208  ;;  %6025 = vst [vmem:[%s10342_s15 + $0x40] sm:$0xff] %v5961_v34  ;;  %v5964_v42 = vsel %vm5568_vm9, %v8207_v27, %v10319_v59  ;;  %8228 = vpow2.f32 %v6548_v54  ;;  %v7548_v52 = vpop.f32.mrb[88].mxu1 }
 0x403   : > { %v8211_v62 = vpop.eup %8210  ;;  %6028 = vst [vmem:[%s10342_s15 + $0x58] sm:$0xff] %v5964_v42  ;;  %v5962_v9 = vsel %vm5568_vm9, %v8209_v58, %v10326_v26  ;;  %8230 = vpow2.f32 %v6551_v46  ;;  %v10434_v33 = vadd.f32 %v7548_v52, %v10276_v44  ;;  %v5407_v36 = vpop.f32.mrb[89].mxu1 }
 0x404   : > { %v8213_v30 = vpop.eup %8212  ;;  %6026 = vst [vmem:[%s10342_s15 + $0x48] sm:$0xff] %v5962_v9  ;;  %v5779_v38 = vadd.f32 1.0, %v8211_v62  ;;  %8232 = vpow2.f32 %v6549_v13  ;;  %v10438_v45 = vadd.f32 %v10276_v44, %v5407_v36  ;;  %v7549_v59 = vpop.f32.mrb[90].mxu1 }
 0x405   : > { %v8215_v7 = vpop.eup %8214  ;;  %v5777_v37 = vadd.f32 1.0, %v8213_v30  ;;  %v10441_v18 = vadd.f32 %v7549_v59, %v10276_v44  ;;  %v5410_v26 = vpop.f32.mrb[91].mxu1  ;;  %v6554_v5 = vmul.f32 -1.442695, %v10434_v33 }
 0x406   : > { %v8217_v61 = vpop.eup %8216  ;;  %8234 = vrcp.f32 %v5779_v38  ;;  %v5780_v57 = vadd.f32 1.0, %v8215_v7  ;;  %v10445_v32 = vadd.f32 %v10276_v44, %v5410_v26  ;;  %v6552_v53 = vmul.f32 -1.442695, %v10438_v45 }
 0x407   : > { %v8219_v3 = vpop.eup %8218  ;;  %8236 = vrcp.f32 %v5777_v37  ;;  %v5778_v55 = vadd.f32 1.0, %v8217_v61  ;;  %v6555_v49 = vmul.f32 -1.442695, %v10441_v18 }
 0x408   : > { %v8221_v60 = vpop.eup %8220  ;;  %v5967_v29 = vsel %vm5568_vm9, %v8219_v3, %v10333_v21  ;;  %8238 = vrcp.f32 %v5780_v57  ;;  %v6553_v17 = vmul.f32 -1.442695, %v10445_v32 }
 0x409   : > { %v8223_v20 = vpop.eup %8222  ;;  %6031 = vst [vmem:[%s10342_s15 + $0x70] sm:$0xff] %v5967_v29  ;;  %v5965_v51 = vsel %vm5568_vm9, %v8221_v60, %v10337_v12  ;;  %8240 = vrcp.f32 %v5778_v55 }
 0x40a   : > { %v8225_v43 = vpop.eup %8224  ;;  %6029 = vst [vmem:[%s10342_s15 + $0x60] sm:$0xff] %v5965_v51  ;;  %v5968_v23 = vsel %vm5568_vm9, %v8223_v20, %v10346_v24  ;;  %8242 = vpow2.f32 %v6554_v5  ;;  %v7552_v21 = vpop.f32.mrb[92].mxu1 }
 0x40b   : > { %v8227_v4 = vpop.eup %8226  ;;  %6032 = vst [vmem:[%s10342_s15 + $0x78] sm:$0xff] %v5968_v23  ;;  %v5966_v47 = vsel %vm5568_vm9, %v8225_v43, %v10350_v2  ;;  %8244 = vpow2.f32 %v6552_v53  ;;  %v10466_v12 = vadd.f32 %v7552_v21, %v10276_v44  ;;  %v5423_v31 = vpop.f32.mrb[93].mxu1 }
 0x40c   : > { %v8229_v25 = vpop.eup %8228  ;;  %6030 = vst [vmem:[%s10342_s15 + $0x68] sm:$0xff] %v5966_v47  ;;  %v5783_v8 = vadd.f32 1.0, %v8227_v4  ;;  %8246 = vpow2.f32 %v6555_v49  ;;  %v10470_v10 = vadd.f32 %v10276_v44, %v5423_v31  ;;  %v7553_v24 = vpop.f32.mrb[94].mxu1 }
 0x40d   : > { %v8231_v15 = vpop.eup %8230  ;;  %v5781_v1 = vadd.f32 1.0, %v8229_v25  ;;  %8248 = vpow2.f32 %v6553_v17  ;;  %v10473_v14 = vadd.f32 %v7553_v24, %v10276_v44  ;;  %v5426_v2 = vpop.f32.mrb[95].mxu1  ;;  %v6558_v22 = vmul.f32 -1.442695, %v10466_v12 }
 0x40e   : > { %v8233_v63 = vpop.eup %8232  ;;  %8250 = vrcp.f32 %v5783_v8  ;;  %v5784_v48 = vadd.f32 1.0, %v8231_v15  ;;  %v10477_v54 = vadd.f32 %v10276_v44, %v5426_v2  ;;  %v6556_v46 = vmul.f32 -1.442695, %v10470_v10 }
 0x40f   : > { %8252 = vrcp.f32 %v5781_v1  ;;  %v5782_v50 = vadd.f32 1.0, %v8233_v63  ;;  %v6559_v11 = vmul.f32 -1.442695, %v10473_v14 }
 0x410   : > { %v8235_v16 = vpop.eup %8234  ;;  %8254 = vrcp.f32 %v5784_v48  ;;  %v6557_v34 = vmul.f32 -1.442695, %v10477_v54 }
 0x411   : > { %v8237_v13 = vpop.eup %8236  ;;  %v5971_v27 = vsel %vm5568_vm9, %v8235_v16, %v10371_v39  ;;  %8256 = vrcp.f32 %v5782_v50 }
 0x412   : > { %v8239_v58 = vpop.eup %8238  ;;  %6035 = vst [vmem:[%s10342_s15 + $0x90] sm:$0xff] %v5971_v27  ;;  %v5969_v42 = vsel %vm5568_vm9, %v8237_v13, %v10374_v35  ;;  %8258 = vpow2.f32 %v6558_v22  ;;  %v7556_v52 = vpop.f32.mrb[96].mxu1 }
 0x413   : > { %v8241_v62 = vpop.eup %8240  ;;  %6033 = vst [vmem:[%s10342_s15 + $0x80] sm:$0xff] %v5969_v42  ;;  %v5972_v9 = vsel %vm5568_vm9, %v8239_v58, %v10378_v19  ;;  %8260 = vpow2.f32 %v6556_v46  ;;  %v10494_v39 = vadd.f32 %v7556_v52, %v10276_v44  ;;  %v5439_v36 = vpop.f32.mrb[97].mxu1 }
 0x414   : > { %v8243_v30 = vpop.eup %8242  ;;  %6036 = vst [vmem:[%s10342_s15 + $0x98] sm:$0xff] %v5972_v9  ;;  %v5970_v35 = vsel %vm5568_vm9, %v8241_v62, %v10382_v56  ;;  %8262 = vpow2.f32 %v6559_v11  ;;  %v10501_v38 = vadd.f32 %v10276_v44, %v5439_v36  ;;  %v7557_v59 = vpop.f32.mrb[98].mxu1 }
 0x415   : > { %v8245_v7 = vpop.eup %8244  ;;  %6034 = vst [vmem:[%s10342_s15 + $0x88] sm:$0xff] %v5970_v35  ;;  %v5787_v37 = vadd.f32 1.0, %v8243_v30  ;;  %8264 = vpow2.f32 %v6557_v34  ;;  %v10505_v19 = vadd.f32 %v7557_v59, %v10276_v44  ;;  %v5442_v26 = vpop.f32.mrb[99].mxu1  ;;  %v6562_v55 = vmul.f32 -1.442695, %v10494_v39 }
 0x416   : > { %v8247_v61 = vpop.eup %8246  ;;  %v5785_v57 = vadd.f32 1.0, %v8245_v7  ;;  %v10508_v5 = vadd.f32 %v10276_v44, %v5442_v26  ;;  %v6560_v29 = vmul.f32 -1.442695, %v10501_v38 }
 0x417   : > { %v8249_v56 = vpop.eup %8248  ;;  %8266 = vrcp.f32 %v5787_v37  ;;  %v5788_v3 = vadd.f32 1.0, %v8247_v61  ;;  %v6563_v51 = vmul.f32 -1.442695, %v10505_v19 }
 0x418   : > { %v8251_v53 = vpop.eup %8250  ;;  %8268 = vrcp.f32 %v5785_v57  ;;  %v5786_v60 = vadd.f32 1.0, %v8249_v56  ;;  %v6561_v23 = vmul.f32 -1.442695, %v10508_v5 }
 0x419   : > { %v8253_v49 = vpop.eup %8252  ;;  %v5975_v20 = vsel %vm5568_vm9, %v8251_v53, %v10403_v40  ;;  %8270 = vrcp.f32 %v5788_v3 }
 0x41a   : > { %v8255_v17 = vpop.eup %8254  ;;  %6039 = vst [vmem:[%s10342_s15 + $0xb0] sm:$0xff] %v5975_v20  ;;  %v5973_v43 = vsel %vm5568_vm9, %v8253_v49, %v10406_v6  ;;  %8272 = vrcp.f32 %v5786_v60  ;;  %v7560_v21 = vpop.f32.mrb[100].mxu1 }
 0x41b   : > { %v8257_v4 = vpop.eup %8256  ;;  %6037 = vst [vmem:[%s10342_s15 + $0xa0] sm:$0xff] %v5973_v43  ;;  %v5976_v40 = vsel %vm5568_vm9, %v8255_v17, %v10410_v0  ;;  %8274 = vpow2.f32 %v6562_v55  ;;  %v10526_v47 = vadd.f32 %v7560_v21, %v10276_v44  ;;  %v5455_v31 = vpop.f32.mrb[101].mxu1 }
 0x41c   : > { %v8259_v25 = vpop.eup %8258  ;;  %6040 = vst [vmem:[%s10342_s15 + $0xb8] sm:$0xff] %v5976_v40  ;;  %v5974_v6 = vsel %vm5568_vm9, %v8257_v4, %v10414_v28  ;;  %8276 = vpow2.f32 %v6560_v29  ;;  %v10533_v8 = vadd.f32 %v10276_v44, %v5455_v31  ;;  %v7561_v24 = vpop.f32.mrb[102].mxu1 }
 0x41d   : > { %v8261_v15 = vpop.eup %8260  ;;  %6038 = vst [vmem:[%s10342_s15 + $0xa8] sm:$0xff] %v5974_v6  ;;  %v5791_v1 = vadd.f32 1.0, %v8259_v25  ;;  %8278 = vpow2.f32 %v6563_v51  ;;  %v10537_v0 = vadd.f32 %v7561_v24, %v10276_v44  ;;  %v5458_v2 = vpop.f32.mrb[103].mxu1  ;;  %v6566_v46 = vmul.f32 -1.442695, %v10526_v47 }
 0x41e   : > { %v8263_v63 = vpop.eup %8262  ;;  %v5789_v48 = vadd.f32 1.0, %v8261_v15  ;;  %8280 = vpow2.f32 %v6561_v23  ;;  %v10540_v22 = vadd.f32 %v10276_v44, %v5458_v2  ;;  %v6564_v11 = vmul.f32 -1.442695, %v10533_v8 }
 0x41f   : > { %v8265_v28 = vpop.eup %8264  ;;  %8282 = vrcp.f32 %v5791_v1  ;;  %v5792_v50 = vadd.f32 1.0, %v8263_v63  ;;  %v6567_v27 = vmul.f32 -1.442695, %v10537_v0 }
 0x420   : > { %8284 = vrcp.f32 %v5789_v48  ;;  %v5790_v16 = vadd.f32 1.0, %v8265_v28  ;;  %v6565_v42 = vmul.f32 -1.442695, %v10540_v22 }
 0x421   : > { %v8267_v13 = vpop.eup %8266  ;;  %8286 = vrcp.f32 %v5792_v50 }
 0x422   : > { %v8269_v34 = vpop.eup %8268  ;;  %v5979_v58 = vsel %vm5568_vm9, %v8267_v13, %v10434_v33  ;;  %8288 = vrcp.f32 %v5790_v16  ;;  %v7564_v52 = vpop.f32.mrb[104].mxu1 }
 0x423   : > { %v8271_v62 = vpop.eup %8270  ;;  %6043 = vst [vmem:[%s10342_s15 + $0xd0] sm:$0xff] %v5979_v58  ;;  %v5977_v9 = vsel %vm5568_vm9, %v8269_v34, %v10438_v45  ;;  %8290 = vpow2.f32 %v6566_v46  ;;  %v10554_v36 = vadd.f32 %v7564_v52, %v10276_v44  ;;  %v5471_v30 = vpop.f32.mrb[105].mxu1 }
 0x424   : > { %v8273_v35 = vpop.eup %8272  ;;  %6041 = vst [vmem:[%s10342_s15 + $0xc0] sm:$0xff] %v5977_v9  ;;  %v5980_v33 = vsel %vm5568_vm9, %v8271_v62, %v10441_v18  ;;  %8292 = vpow2.f32 %v6564_v11  ;;  %v10561_v59 = vadd.f32 %v10276_v44, %v5471_v30  ;;  %v7565_v7 = vpop.f32.mrb[106].mxu1 }
 0x425   : > { %v8275_v37 = vpop.eup %8274  ;;  %6044 = vst [vmem:[%s10342_s15 + $0xd8] sm:$0xff] %v5980_v33  ;;  %v5978_v45 = vsel %vm5568_vm9, %v8273_v35, %v10445_v32  ;;  %8294 = vpow2.f32 %v6567_v27  ;;  %v6570_v26 = vmul.f32 -1.442695, %v10554_v36  ;;  %v10569_v61 = vadd.f32 %v7565_v7, %v10276_v44  ;;  %v5474_v57 = vpop.f32.mrb[107].mxu1 }
 0x426   : > { %v8277_v56 = vpop.eup %8276  ;;  %6042 = vst [vmem:[%s10342_s15 + $0xc8] sm:$0xff] %v5978_v45  ;;  %v5795_v18 = vadd.f32 1.0, %v8275_v37  ;;  %8296 = vpow2.f32 %v6565_v42  ;;  %v10573_v3 = vadd.f32 %v10276_v44, %v5474_v57  ;;  %v6568_v29 = vmul.f32 -1.442695, %v10561_v59 }
 0x427   : > { %v8279_v55 = vpop.eup %8278  ;;  %v5793_v53 = vadd.f32 1.0, %v8277_v56  ;;  %8298 = vpow2.f32 %v6570_v26  ;;  %v6571_v51 = vmul.f32 -1.442695, %v10569_v61 }
 0x428   : > { %v8281_v60 = vpop.eup %8280  ;;  %8300 = vrcp.f32 %v5795_v18  ;;  %v5796_v32 = vadd.f32 1.0, %v8279_v55  ;;  %v6569_v23 = vmul.f32 -1.442695, %v10573_v3 }
 0x429   : > { %v8283_v49 = vpop.eup %8282  ;;  %8302 = vrcp.f32 %v5793_v53  ;;  %v5794_v20 = vadd.f32 1.0, %v8281_v60 }
 0x42a   : > { %v8285_v17 = vpop.eup %8284  ;;  %v5983_v43 = vsel %vm5568_vm9, %v8283_v49, %v10466_v12  ;;  %8304 = vrcp.f32 %v5796_v32  ;;  %v7568_v21 = vpop.f32.mrb[108].mxu1 }
 0x42b   : > { %v8287_v4 = vpop.eup %8286  ;;  %6047 = vst [vmem:[%s10342_s15 + $0xf0] sm:$0xff] %v5983_v43  ;;  %v5981_v40 = vsel %vm5568_vm9, %v8285_v17, %v10470_v10  ;;  %8306 = vrcp.f32 %v5794_v20  ;;  %v10586_v31 = vadd.f32 %v7568_v21, %v10276_v44  ;;  %v5487_v25 = vpop.f32.mrb[109].mxu1 }
 0x42c   : > { %v8289_v6 = vpop.eup %8288  ;;  %6045 = vst [vmem:[%s10342_s15 + $0xe0] sm:$0xff] %v5981_v40  ;;  %v5984_v12 = vsel %vm5568_vm9, %v8287_v4, %v10473_v14  ;;  %8308 = vpow2.f32 %v6568_v29  ;;  %v7569_v24 = vpop.f32.mrb[110].mxu1  ;;  %v10598_v2 = vadd.f32 %v10276_v44, %v5487_v25 }
 0x42d   : > { %v8291_v15 = vpop.eup %8290  ;;  %6048 = vst [vmem:[%s10342_s15 + $0xf8] sm:$0xff] %v5984_v12  ;;  %v5982_v10 = vsel %vm5568_vm9, %v8289_v6, %v10477_v54  ;;  %8310 = vpow2.f32 %v6571_v51  ;;  %v6574_v1 = vmul.f32 -1.442695, %v10586_v31  ;;  %v5490_v63 = vpop.f32.mrb[111].mxu1  ;;  %v10602_v14 = vadd.f32 %v7569_v24, %v10276_v44 }
 0x42e   : > { %v8293_v48 = vpop.eup %8292  ;;  %6046 = vst [vmem:[%s10342_s15 + $0xe8] sm:$0xff] %v5982_v10  ;;  %v5799_v28 = vadd.f32 1.0, %v8291_v15  ;;  %8312 = vpow2.f32 %v6569_v23  ;;  %v10605_v16 = vadd.f32 %v10276_v44, %v5490_v63  ;;  %v6572_v34 = vmul.f32 -1.442695, %v10598_v2 }
 0x42f   : > { %v8295_v50 = vpop.eup %8294  ;;  %v5797_v46 = vadd.f32 1.0, %v8293_v48  ;;  %8314 = vpow2.f32 %v6574_v1  ;;  %v6575_v52 = vmul.f32 -1.442695, %v10602_v14 }
 0x430   : > { %v8297_v54 = vpop.eup %8296  ;;  %8316 = vrcp.f32 %v5799_v28  ;;  %v5800_v11 = vadd.f32 1.0, %v8295_v50  ;;  %v6573_v35 = vmul.f32 -1.442695, %v10605_v16 }
 0x431   : > { %v8299_v13 = vpop.eup %8298  ;;  %8318 = vrcp.f32 %v5797_v46  ;;  %v5798_v27 = vadd.f32 1.0, %v8297_v54 }
 0x432   : > { %v8301_v58 = vpop.eup %8300  ;;  %8320 = vrcp.f32 %v5800_v11  ;;  %v5803_v42 = vadd.f32 1.0, %v8299_v13  ;;  %v7572_v62 = vpop.f32.mrb[112].mxu1 }
 0x433   : > { %v8303_v9 = vpop.eup %8302  ;;  %v5987_v30 = vsel %vm5568_vm9, %v8301_v58, %v10494_v39  ;;  %8322 = vrcp.f32 %v5798_v27  ;;  %v10614_v33 = vadd.f32 %v7572_v62, %v10276_v44  ;;  %v5503_v7 = vpop.f32.mrb[113].mxu1 }
 0x434   : > { %v8305_v37 = vpop.eup %8304  ;;  %6051 = vst [vmem:[%s10342_s15 + $0x110] sm:$0xff] %v5987_v30  ;;  %v5985_v45 = vsel %vm5568_vm9, %v8303_v9, %v10501_v38  ;;  %8324 = vrcp.f32 %v5803_v42  ;;  %v7573_v26 = vpop.f32.mrb[114].mxu1  ;;  %v10626_v18 = vadd.f32 %v10276_v44, %v5503_v7 }
 0x435   : > { %v8307_v57 = vpop.eup %8306  ;;  %6049 = vst [vmem:[%s10342_s15 + $0x100] sm:$0xff] %v5985_v45  ;;  %v5988_v39 = vsel %vm5568_vm9, %v8305_v37, %v10505_v19  ;;  %8326 = vpow2.f32 %v6572_v34  ;;  %v6578_v56 = vmul.f32 -1.442695, %v10614_v33  ;;  %v5506_v55 = vpop.f32.mrb[115].mxu1  ;;  %v10633_v60 = vadd.f32 %v7573_v26, %v10276_v44 }
 0x436   : > { %v8309_v53 = vpop.eup %8308  ;;  %6052 = vst [vmem:[%s10342_s15 + $0x118] sm:$0xff] %v5988_v39  ;;  %v5986_v38 = vsel %vm5568_vm9, %v8307_v57, %v10508_v5  ;;  %8328 = vpow2.f32 %v6575_v52  ;;  %v10637_v29 = vadd.f32 %v10276_v44, %v5506_v55  ;;  %v6576_v5 = vmul.f32 -1.442695, %v10626_v18 }
 0x437   : > { %v8311_v32 = vpop.eup %8310  ;;  %6050 = vst [vmem:[%s10342_s15 + $0x108] sm:$0xff] %v5986_v38  ;;  %v5801_v19 = vadd.f32 1.0, %v8309_v53  ;;  %8330 = vpow2.f32 %v6573_v35  ;;  %v6579_v21 = vmul.f32 -1.442695, %v10633_v60 }
 0x438   : > { %v8313_v49 = vpop.eup %8312  ;;  %v5804_v20 = vadd.f32 1.0, %v8311_v32  ;;  %8332 = vpow2.f32 %v6578_v56  ;;  %v6577_v6 = vmul.f32 -1.442695, %v10637_v29 }
 0x439   : > { %v8315_v51 = vpop.eup %8314  ;;  %8334 = vrcp.f32 %v5801_v19  ;;  %v5802_v17 = vadd.f32 1.0, %v8313_v49 }
 0x43a   : > { %v8317_v43 = vpop.eup %8316  ;;  %8336 = vrcp.f32 %v5804_v20  ;;  %v5807_v23 = vadd.f32 1.0, %v8315_v51  ;;  %v7576_v4 = vpop.f32.mrb[116].mxu1  ;;  %v8442_v20 = vld [vmem:[%s10807_s5] ss:$0 sm:$0xff] }
 0x43b   : > { %v8319_v40 = vpop.eup %8318  ;;  %v5991_v25 = vsel %vm5568_vm9, %v8317_v43, %v10526_v47  ;;  %8338 = vrcp.f32 %v5802_v17  ;;  %v10646_v12 = vadd.f32 %v7576_v4, %v10276_v44  ;;  %v5519_v24 = vpop.f32.mrb[117].mxu1 }
 0x43c   : > { %v8321_v15 = vpop.eup %8320  ;;  %6055 = vst [vmem:[%s10342_s15 + $0x130] sm:$0xff] %v5991_v25  ;;  %v5989_v10 = vsel %vm5568_vm9, %v8319_v40, %v10533_v8  ;;  %8340 = vrcp.f32 %v5807_v23  ;;  %v10653_v1 = vadd.f32 %v10276_v44, %v5519_v24  ;;  %v7577_v47 = vpop.f32.mrb[118].mxu1 }
 0x43d   : > { %v8323_v63 = vpop.eup %8322  ;;  %6053 = vst [vmem:[%s10342_s15 + $0x120] sm:$0xff] %v5989_v10  ;;  %v5992_v48 = vsel %vm5568_vm9, %v8321_v15, %v10537_v0  ;;  %8342 = vpow2.f32 %v6576_v5  ;;  %v6582_v28 = vmul.f32 -1.442695, %v10646_v12  ;;  %v5522_v50 = vpop.f32.mrb[119].mxu1  ;;  %v10666_v11 = vadd.f32 %v7577_v47, %v10276_v44 }
 0x43e   : > { %v8325_v46 = vpop.eup %8324  ;;  %6056 = vst [vmem:[%s10342_s15 + $0x138] sm:$0xff] %v5992_v48  ;;  %v5990_v8 = vsel %vm5568_vm9, %v8323_v63, %v10540_v22  ;;  %8344 = vpow2.f32 %v6579_v21  ;;  %v6580_v54 = vmul.f32 -1.442695, %v10653_v1  ;;  %v10673_v27 = vadd.f32 %v10276_v44, %v5522_v50 }
 0x43f   : > { %v8327_v13 = vpop.eup %8326  ;;  %6054 = vst [vmem:[%s10342_s15 + $0x128] sm:$0xff] %v5990_v8  ;;  %v5995_v0 = vsel %vm5568_vm9, %v8325_v46, %v10554_v36  ;;  %8346 = vpow2.f32 %v6577_v6  ;;  %v6583_v9 = vmul.f32 -1.442695, %v10666_v11 }
 0x440   : > { %v8329_v34 = vpop.eup %8328  ;;  %6059 = vst [vmem:[%s10342_s15 + $0x150] sm:$0xff] %v5995_v0  ;;  %v5805_v58 = vadd.f32 1.0, %v8327_v13  ;;  %8348 = vpow2.f32 %v6582_v28  ;;  %v6581_v7 = vmul.f32 -1.442695, %v10673_v27 }
 0x441   : > { %v8331_v22 = vpop.eup %8330  ;;  %v5808_v42 = vadd.f32 1.0, %v8329_v34  ;;  %8350 = vpow2.f32 %v6580_v54 }
 0x442   : > { %v8333_v52 = vpop.eup %8332  ;;  %8352 = vrcp.f32 %v5805_v58  ;;  %v5806_v62 = vadd.f32 1.0, %v8331_v22  ;;  %v7580_v30 = vpop.f32.mrb[120].mxu1 }
 0x443   : > { %v8335_v35 = vpop.eup %8334  ;;  %8354 = vrcp.f32 %v5808_v42  ;;  %v5811_v36 = vadd.f32 1.0, %v8333_v52  ;;  %v10679_v37 = vadd.f32 %v7580_v30, %v10276_v44  ;;  %v5535_v45 = vpop.f32.mrb[121].mxu1 }
 0x444   : > { %v8337_v26 = vpop.eup %8336  ;;  %v5993_v57 = vsel %vm5568_vm9, %v8335_v35, %v10561_v59  ;;  %8356 = vrcp.f32 %v5806_v62  ;;  %v10685_v39 = vadd.f32 %v10276_v44, %v5535_v45  ;;  %v7581_v56 = vpop.f32.mrb[122].mxu1 }
 0x445   : > { %v8339_v55 = vpop.eup %8338  ;;  %6057 = vst [vmem:[%s10342_s15 + $0x140] sm:$0xff] %v5993_v57  ;;  %v5996_v53 = vsel %vm5568_vm9, %v8337_v26, %v10569_v61  ;;  %8358 = vrcp.f32 %v5811_v36  ;;  %v6586_v38 = vmul.f32 -1.442695, %v10679_v37  ;;  %v5538_v32 = vpop.f32.mrb[123].mxu1  ;;  %v10704_v51 = vadd.f32 %v8442_v20, %v7581_v56 }
 0x446   : > { %v8341_v19 = vpop.eup %8340  ;;  %6060 = vst [vmem:[%s10342_s15 + $0x158] sm:$0xff] %v5996_v53  ;;  %v5994_v59 = vsel %vm5568_vm9, %v8339_v55, %v10573_v3  ;;  %8360 = vpow2.f32 %v6583_v9  ;;  %v6584_v44 = vmul.f32 -1.442695, %v10685_v39  ;;  %v10707_v3 = vadd.f32 %v8442_v20, %v5538_v32 }
 0x447   : > { %v8343_v49 = vpop.eup %8342  ;;  %6058 = vst [vmem:[%s10342_s15 + $0x148] sm:$0xff] %v5994_v59  ;;  %v5999_v61 = vsel %vm5568_vm9, %v8341_v19, %v10586_v31  ;;  %8362 = vpow2.f32 %v6581_v7  ;;  %v6587_v6 = vmul.f32 -1.442695, %v10704_v51 }
 0x448   : > { %v8345_v17 = vpop.eup %8344  ;;  %6063 = vst [vmem:[%s10342_s15 + $0x170] sm:$0xff] %v5999_v61  ;;  %v5809_v5 = vadd.f32 1.0, %v8343_v49  ;;  %8364 = vpow2.f32 %v6586_v38  ;;  %v6585_v63 = vmul.f32 -1.442695, %v10707_v3 }
 0x449   : > { %v8347_v43 = vpop.eup %8346  ;;  %v5812_v23 = vadd.f32 1.0, %v8345_v17  ;;  %8366 = vpow2.f32 %v6584_v44 }
 0x44a   : > { %v8349_v21 = vpop.eup %8348  ;;  %8368 = vrcp.f32 %v5809_v5  ;;  %v5810_v4 = vadd.f32 1.0, %v8347_v43  ;;  %v7584_v31 = vpop.f32.mrb[124].mxu1 }
 0x44b   : > { %v8351_v40 = vpop.eup %8350  ;;  %8370 = vrcp.f32 %v5812_v23  ;;  %v5815_v25 = vadd.f32 1.0, %v8349_v21  ;;  %v10710_v24 = vadd.f32 %v8442_v20, %v7584_v31  ;;  %v5551_v15 = vpop.f32.mrb[125].mxu1 }
 0x44c   : > { %v8353_v10 = vpop.eup %8352  ;;  %8372 = vrcp.f32 %v5810_v4  ;;  %v5813_v47 = vadd.f32 1.0, %v8351_v40  ;;  %v10713_v48 = vadd.f32 %v8442_v20, %v5551_v15  ;;  %v7585_v28 = vpop.f32.mrb[126].mxu1 }
 0x44d   : > { %v8355_v50 = vpop.eup %8354  ;;  %v5997_v46 = vsel %vm5568_vm9, %v8353_v10, %v10598_v2  ;;  %8374 = vrcp.f32 %v5815_v25  ;;  %v6590_v8 = vmul.f32 -1.442695, %v10710_v24  ;;  %v5554_v54 = vpop.f32.mrb[127].mxu1  ;;  %v10728_v22 = vadd.f32 %v8442_v20, %v7585_v28 }
 0x44e   : > { %v8357_v13 = vpop.eup %8356  ;;  %6061 = vst [vmem:[%s10342_s15 + $0x160] sm:$0xff] %v5997_v46  ;;  %v6000_v0 = vsel %vm5568_vm9, %v8355_v50, %v10602_v14  ;;  %8376 = vrcp.f32 %v5813_v47  ;;  %v6588_v34 = vmul.f32 -1.442695, %v10713_v48  ;;  %v10734_v14 = vadd.f32 %v8442_v20, %v5554_v54 }
 0x44f   : > { %v8359_v58 = vpop.eup %8358  ;;  %6064 = vst [vmem:[%s10342_s15 + $0x178] sm:$0xff] %v6000_v0  ;;  %v5998_v2 = vsel %vm5568_vm9, %v8357_v13, %v10605_v16  ;;  %8378 = vpow2.f32 %v6587_v6  ;;  %v6591_v7 = vmul.f32 -1.442695, %v10728_v22 }
 0x450   : > { %v8361_v42 = vpop.eup %8360  ;;  %6062 = vst [vmem:[%s10342_s15 + $0x168] sm:$0xff] %v5998_v2  ;;  %v6003_v52 = vsel %vm5568_vm9, %v8359_v58, %v10614_v33  ;;  %8380 = vpow2.f32 %v6585_v63  ;;  %v6589_v26 = vmul.f32 -1.442695, %v10734_v14 }
 0x451   : > { %v8363_v62 = vpop.eup %8362  ;;  %6067 = vst [vmem:[%s10342_s15 + $0x190] sm:$0xff] %v6003_v52  ;;  %v5816_v9 = vadd.f32 1.0, %v8361_v42  ;;  %8382 = vpow2.f32 %v6590_v8 }
 0x452   : > { %v8365_v30 = vpop.eup %8364  ;;  %v5814_v35 = vadd.f32 1.0, %v8363_v62  ;;  %8384 = vpow2.f32 %v6588_v34 }
 0x453   : > { %v8367_v16 = vpop.eup %8366  ;;  %8386 = vrcp.f32 %v5816_v9  ;;  %v5819_v36 = vadd.f32 1.0, %v8365_v30 }
 0x454   : > { %v8369_v45 = vpop.eup %8368  ;;  %8388 = vrcp.f32 %v5814_v35  ;;  %v5817_v33 = vadd.f32 1.0, %v8367_v16 }
 0x455   : > { %v8371_v57 = vpop.eup %8370  ;;  %v6001_v56 = vsel %vm5568_vm9, %v8369_v45, %v10626_v18  ;;  %8390 = vrcp.f32 %v5819_v36 }
 0x456   : > { %v8373_v55 = vpop.eup %8372  ;;  %6065 = vst [vmem:[%s10342_s15 + $0x180] sm:$0xff] %v6001_v56  ;;  %v6004_v53 = vsel %vm5568_vm9, %v8371_v57, %v10633_v60  ;;  %8392 = vrcp.f32 %v5817_v33 }
 0x457   : > { %v8375_v38 = vpop.eup %8374  ;;  %6068 = vst [vmem:[%s10342_s15 + $0x198] sm:$0xff] %v6004_v53  ;;  %v6002_v32 = vsel %vm5568_vm9, %v8373_v55, %v10637_v29  ;;  %8394 = vpow2.f32 %v6591_v7 }
 0x458   : > { %v8377_v19 = vpop.eup %8376  ;;  %6066 = vst [vmem:[%s10342_s15 + $0x188] sm:$0xff] %v6002_v32  ;;  %v6007_v18 = vsel %vm5568_vm9, %v8375_v38, %v10646_v12  ;;  %8396 = vpow2.f32 %v6589_v26 }
 0x459   : > { %v8379_v59 = vpop.eup %8378  ;;  %6071 = vst [vmem:[%s10342_s15 + $0x1b0] sm:$0xff] %v6007_v18  ;;  %v6005_v60 = vsel %vm5568_vm9, %v8377_v19, %v10653_v1 }
 0x45a   : > { %v8381_v44 = vpop.eup %8380  ;;  %6069 = vst [vmem:[%s10342_s15 + $0x1a0] sm:$0xff] %v6005_v60  ;;  %v5820_v49 = vadd.f32 1.0, %v8379_v59 }
 0x45b   : > { %v8383_v61 = vpop.eup %8382  ;;  %v5818_v29 = vadd.f32 1.0, %v8381_v44 }
 0x45c   : > { %v8385_v20 = vpop.eup %8384  ;;  %8398 = vrcp.f32 %v5820_v49  ;;  %v5823_v17 = vadd.f32 1.0, %v8383_v61 }
 0x45d   : > { %v8387_v5 = vpop.eup %8386  ;;  %8400 = vrcp.f32 %v5818_v29  ;;  %v5821_v12 = vadd.f32 1.0, %v8385_v20 }
 0x45e   : > { %v8389_v43 = vpop.eup %8388  ;;  %v6008_v1 = vsel %vm5568_vm9, %v8387_v5, %v10666_v11  ;;  %8402 = vrcp.f32 %v5823_v17 }
 0x45f   : > { %v8391_v23 = vpop.eup %8390  ;;  %6072 = vst [vmem:[%s10342_s15 + $0x1b8] sm:$0xff] %v6008_v1  ;;  %v6006_v21 = vsel %vm5568_vm9, %v8389_v43, %v10673_v27  ;;  %8404 = vrcp.f32 %v5821_v12 }
 0x460   : > { %v8393_v4 = vpop.eup %8392  ;;  %6070 = vst [vmem:[%s10342_s15 + $0x1a8] sm:$0xff] %v6006_v21  ;;  %v6011_v31 = vsel %vm5568_vm9, %v8391_v23, %v10679_v37 }
 0x461   : > { %v8395_v40 = vpop.eup %8394  ;;  %6075 = vst [vmem:[%s10342_s15 + $0x1d0] sm:$0xff] %v6011_v31  ;;  %v6009_v11 = vsel %vm5568_vm9, %v8393_v4, %v10685_v39 }
 0x462   : > { %v8397_v25 = vpop.eup %8396  ;;  %6073 = vst [vmem:[%s10342_s15 + $0x1c0] sm:$0xff] %v6009_v11  ;;  %v5824_v27 = vadd.f32 1.0, %v8395_v40 }
 0x463   : > { %v5822_v6 = vadd.f32 1.0, %v8397_v25 }
 0x464   : > { %8406 = vrcp.f32 %v5824_v27 }
 0x465   : > { %8408 = vrcp.f32 %v5822_v6 }
 0x466   : > { %v8399_v15 = vpop.eup %8398 }
 0x467   : > { %v8401_v10 = vpop.eup %8400  ;;  %v6012_v37 = vsel %vm5568_vm9, %v8399_v15, %v10704_v51 }
 0x468   : > { %v8403_v47 = vpop.eup %8402  ;;  %6076 = vst [vmem:[%s10342_s15 + $0x1d8] sm:$0xff] %v6012_v37  ;;  %v6010_v39 = vsel %vm5568_vm9, %v8401_v10, %v10707_v3 }
 0x469   : > { %v8405_v63 = vpop.eup %8404  ;;  %6074 = vst [vmem:[%s10342_s15 + $0x1c8] sm:$0xff] %v6010_v39  ;;  %v6015_v28 = vsel %vm5568_vm9, %v8403_v47, %v10710_v24 }
 0x46a   : > { %6079 = vst [vmem:[%s10342_s15 + $0x1f0] sm:$0xff] %v6015_v28  ;;  %v6013_v50 = vsel %vm5568_vm9, %v8405_v63, %v10713_v48 }
 0x46b   : > { %6077 = vst [vmem:[%s10342_s15 + $0x1e0] sm:$0xff] %v6013_v50 }
 0x46e   : > { %v8407_v46 = vpop.eup %8406 }
 0x46f   : > { %v8409_v51 = vpop.eup %8408  ;;  %v6016_v8 = vsel %vm5568_vm9, %v8407_v46, %v10728_v22 }
 0x470   : > { %6080 = vst [vmem:[%s10342_s15 + $0x1f8] sm:$0xff] %v6016_v8  ;;  %v6014_v3 = vsel %vm5568_vm9, %v8409_v51, %v10734_v14 }
 0x471   : > { %6078 = vst [vmem:[%s10342_s15 + $0x1e8] sm:$0xff] %v6014_v3 }
 0x472 PF: > { %s16_s21 = sadd.s32 1, %s8449_s21  }
 0x473   : > { %p13_p6 = scmp.ge.s32.totalorder %s16_s21, 4  }
 0x475   :  { %15 = sbr.rel (!%p13_p6) target bundleno = 1 (0x1), region = 85 }

</bundles_post_ra>
